<compile_context>
chip_gen: v7x
topology: tpu7x:2x2x1
jax: 0.10.0
libtpu: 0.0.40
codegen_flags: <defaults>
</compile_context>

<pallas_src>
import functools

import jax
import jax.numpy as jnp
from jax.experimental import pallas as pl
from jax.experimental.pallas import tpu as pltpu

EPS = 1e-5
LANE = 128       # lane width: pad tail feature dims / input K to this
NEG_INF = -1e30  # folded softmax mask value for padded output lanes


def _pad_to(a, target, axis):
    pad = target - a.shape[axis]
    if pad <= 0:
        return a
    widths = [(0, 0)] * a.ndim
    widths[axis] = (0, pad)
    return jnp.pad(a, widths)   # zero padding: keeps padded lanes exactly 0


def _round_up(n, m):
    return ((n + m - 1) // m) * m


def mlp_kernel(x_ref,
               w1_ref, g1_ref, t1_ref,
               w2_ref, g2_ref, t2_ref,
               w3_ref, g3_ref, t3_ref,
               we_ref, be_ref, wo_ref, bo_ref,
               probs_ref, emb_ref, logits_ref,
               *, use_bn):
    def matmul(h, w_ref):
        # bf16 x bf16 on the MXU, f32 accumulation.
        return jnp.dot(h.astype(jnp.bfloat16), w_ref[...],
                       preferred_element_type=jnp.float32)

    def bn_relu(h, g_ref, t_ref):
        if use_bn:
            # BatchNorm1d with batch statistics (biased variance), folded into a
            # single scale/shift.  The preceding Linear bias is dropped in the
            # wrapper: it is exactly cancelled by the mean subtraction here.
            # TODO(synk): in a batched-grid variant the batch-axis sums could go
            # through an MXU ones-row matmul instead of sublane reductions.
            mean = jnp.mean(h, axis=0, keepdims=True)
            hc = h - mean
            var = jnp.mean(hc * hc, axis=0, keepdims=True)
            scale = g_ref[...] * jax.lax.rsqrt(var + EPS)
            return jnp.maximum(hc * scale + t_ref[...], 0.0)
        # B == 1 branch of the module: plain Linear bias + ReLU (t_ref holds b).
        return jnp.maximum(h + t_ref[...], 0.0)

    h = x_ref[...]                                        # bf16 input
    h = bn_relu(matmul(h, w1_ref), g1_ref, t1_ref)        # fc1 -> (bn1) -> relu
    h = bn_relu(matmul(h, w2_ref), g2_ref, t2_ref)        # fc2 -> (bn2) -> relu
    h = bn_relu(matmul(h, w3_ref), g3_ref, t3_ref)        # fc3 -> (bn3) -> relu
    # dropout1/2/3 = identity (inference).

    emb = jnp.maximum(matmul(h, we_ref) + be_ref[...], 0.0)   # embeddings -> relu
    # Padded output lanes of bo hold -1e30 => exp underflows to exactly 0, so no
    # explicit mask is needed in the softmax.
    logits = matmul(emb, wo_ref) + bo_ref[...]                  # output layer

    m = jnp.max(logits, axis=1, keepdims=True)
    e = jnp.exp(logits - m)
    probs = e * pl.reciprocal(jnp.sum(e, axis=1, keepdims=True), approx=False)

    # Lane-dense (B, 128) stores -> unmasked vst.
    probs_ref[...] = probs
    emb_ref[...] = emb
    logits_ref[...] = logits


def make_params(key, input_dim, output_dim):
    """Deterministic parameter init (PyTorch Linear-style uniform +-1/sqrt(fan_in))."""
    dims = [(input_dim, 2048), (2048, 256), (256, 64), (64, 32), (32, output_dim)]
    params = []
    for fin, fout in dims:
        key, kw, kb = jax.random.split(key, 3)
        bound = 1.0 / jnp.sqrt(fin)
        w = jax.random.uniform(kw, (fin, fout), jnp.float32, -bound, bound)
        b = jax.random.uniform(kb, (1, fout), jnp.float32, -bound, bound)
        params.append((w, b))
    # BatchNorm params (gamma=1, beta=0 at init) for the first three layers.
    bn_params = [(jnp.ones((1, n), jnp.float32), jnp.zeros((1, n), jnp.float32))
                 for n in (2048, 256, 64)]
    return params, bn_params


def mlp_forward(x, params, bn_params):
    B, input_dim = x.shape
    (w1, b1), (w2, b2), (w3, b3), (we, be), (wo, bo) = params
    (g1, bt1), (g2, bt2), (g3, bt3) = bn_params
    output_dim = wo.shape[1]
    emb_dim = we.shape[1]
    use_bn = B > 1   # matches the module's `if x.size(0) > 1` branch

    # Lane-align the contraction dim of the first matmul and ship x as bf16
    # (the MXU operand was bf16 anyway; this halves the x DMA).
    kpad = _round_up(input_dim, LANE)
    xb = _pad_to(x, kpad, 1).astype(jnp.bfloat16)               # (B, kpad)
    w1b = _pad_to(w1, kpad, 0).astype(jnp.bfloat16)             # (kpad, 2048)
    w2b = w2.astype(jnp.bfloat16)                               # (2048, 256)
    w3b = _pad_to(w3, LANE, 1).astype(jnp.bfloat16)             # (256, 128)
    web = _pad_to(_pad_to(we, LANE, 0), LANE, 1).astype(jnp.bfloat16)  # (128,128)
    wob = _pad_to(_pad_to(wo, LANE, 0), LANE, 1).astype(jnp.bfloat16)  # (128,128)

    if use_bn:
        # Linear biases b1/b2/b3 are exactly cancelled by the mean subtraction.
        s1, t1 = g1, bt1
        s2, t2 = g2, bt2
        # NOTE: layer-3 gamma/beta MUST be zero-padded (not ones) so padded lanes
        # stay exactly 0 after ReLU and do not leak into emb/logits.
        s3, t3 = _pad_to(g3, LANE, 1), _pad_to(bt3, LANE, 1)
    else:
        s1, t1 = g1, b1          # s* unused in the no-BN path
        s2, t2 = g2, b2
        s3, t3 = _pad_to(g3, LANE, 1), _pad_to(b3, LANE, 1)

    bep = _pad_to(be, LANE, 1)
    # Fold the softmax padding mask into the output bias: padded lanes = -1e30.
    bop = jnp.full((1, LANE), NEG_INF, jnp.float32).at[:, :output_dim].set(bo)

    args = (xb,
            w1b, s1, t1,
            w2b, s2, t2,
            w3b, s3, t3,
            web, bep, wob, bop)

    vmem = pl.BlockSpec(memory_space=pltpu.MemorySpace.VMEM)
    out_shapes = (
        jax.ShapeDtypeStruct((B, LANE), jnp.float32),  # probabilities (padded)
        jax.ShapeDtypeStruct((B, LANE), jnp.float32),  # embeddings    (padded)
        jax.ShapeDtypeStruct((B, LANE), jnp.float32),  # logits        (padded)
    )

    # Everything is resident: size the scoped VMEM limit from the real footprint
    # (v5e default is only 16 MiB), capped at v7x's 64 MiB physical VMEM.
    arg_bytes = sum(int(a.size) * a.dtype.itemsize for a in args)
    out_bytes = 3 * B * LANE * 4
    act_bytes = B * (2048 + 256 + 2 * LANE) * 4          # f32 intermediates
    vmem_limit = int(min(max(2 * (arg_bytes + out_bytes + act_bytes), 32 << 20),
                         64 << 20))

    probs_p, emb_p, logits_p = pl.pallas_call(
        functools.partial(mlp_kernel, use_bn=use_bn),
        out_shape=out_shapes,
        in_specs=[vmem] * len(args),
        out_specs=(vmem, vmem, vmem),
        compiler_params=pltpu.CompilerParams(vmem_limit_bytes=vmem_limit),
    )(*args)

    return (probs_p[:, :output_dim], emb_p[:, :emb_dim], logits_p[:, :output_dim])


def mlp_reference(x, params, bn_params):
    """Plain-JAX f32 reference with the original module's exact semantics."""
    (w1, b1), (w2, b2), (w3, b3), (we, be), (wo, bo) = params
    (g1, bt1), (g2, bt2), (g3, bt3) = bn_params
    use_bn = x.shape[0] > 1

    def bn(h, g, bt):
        mean = jnp.mean(h, axis=0, keepdims=True)
        var = jnp.mean((h - mean) ** 2, axis=0, keepdims=True)
        return (h - mean) / jnp.sqrt(var + EPS) * g + bt

    def block(h, w, b, g, bt):
        h = h @ w + b
        if use_bn:
            h = bn(h, g, bt)
        return jnp.maximum(h, 0.0)

    h = block(x, w1, b1, g1, bt1)
    h = block(h, w2, b2, g2, bt2)
    h = block(h, w3, b3, g3, bt3)
    emb = jnp.maximum(h @ we + be, 0.0)
    logits = emb @ wo + bo
    probs = jax.nn.softmax(logits, axis=1)
    return probs, emb, logits


def _check(x, params, bn_params, output_dim):
    probs, emb, logits = mlp_forward(x, params, bn_params)
    jax.block_until_ready((probs, emb, logits))
    probs_r, emb_r, logits_r = mlp_reference(x, params, bn_params)
    # Kernel uses bf16 weights / bf16 MXU operands => bf16-level tolerance
    # (tolerance is input_dim-dependent; these hold at the small demo shapes).
    assert jnp.allclose(probs, probs_r, atol=2e-2, rtol=2e-2), \
        float(jnp.max(jnp.abs(probs - probs_r)))
    assert jnp.allclose(emb, emb_r, atol=5e-2, rtol=5e-2), \
        float(jnp.max(jnp.abs(emb - emb_r)))
    assert jnp.allclose(logits, logits_r, atol=5e-2, rtol=5e-2), \
        float(jnp.max(jnp.abs(logits - logits_r)))
    assert jnp.allclose(jnp.sum(probs, axis=1), 1.0, atol=1e-5)
    B = x.shape[0]
    assert probs.shape == (B, output_dim) and emb.shape == (B, 32) \
        and logits.shape == (B, output_dim)


if __name__ == "__main__":
    B, input_dim, output_dim = 8, 32, 10
    key = jax.random.PRNGKey(0)
    key, kx = jax.random.split(key)
    x = jax.random.normal(kx, (B, input_dim), jnp.float32)

    params, bn_params = make_params(key, input_dim, output_dim)

    # B > 1: BatchNorm (batch statistics) path.
    _check(x, params, bn_params, output_dim)
    # B == 1: the module's no-BatchNorm branch.
    _check(x[:1], params, bn_params, output_dim)

    print("KERNEL_OK")
</pallas_src>

<mosaic_0001>
module attributes {stable_mosaic.version = 11 : i64} {
  func.func @mlp_kernel(%arg0: memref<8x128xbf16, #tpu.memory_space<vmem>>, %arg1: memref<128x2048xbf16, #tpu.memory_space<vmem>>, %arg2: memref<1x2048xf32, #tpu.memory_space<vmem>>, %arg3: memref<1x2048xf32, #tpu.memory_space<vmem>>, %arg4: memref<2048x256xbf16, #tpu.memory_space<vmem>>, %arg5: memref<1x256xf32, #tpu.memory_space<vmem>>, %arg6: memref<1x256xf32, #tpu.memory_space<vmem>>, %arg7: memref<256x128xbf16, #tpu.memory_space<vmem>>, %arg8: memref<1x128xf32, #tpu.memory_space<vmem>>, %arg9: memref<1x128xf32, #tpu.memory_space<vmem>>, %arg10: memref<128x128xbf16, #tpu.memory_space<vmem>>, %arg11: memref<1x128xf32, #tpu.memory_space<vmem>>, %arg12: memref<128x128xbf16, #tpu.memory_space<vmem>>, %arg13: memref<1x128xf32, #tpu.memory_space<vmem>>, %arg14: memref<8x128xf32, #tpu.memory_space<vmem>>, %arg15: memref<8x128xf32, #tpu.memory_space<vmem>>, %arg16: memref<8x128xf32, #tpu.memory_space<vmem>>) attributes {dimension_semantics = [], scalar_prefetch = 0 : i64, scratch_operands = 0 : i64, tpu.core_type = #tpu.core_type<tc>} {
    %c0 = arith.constant 0 : index
    %c0_0 = arith.constant 0 : index
    %0 = vector.load %arg0[%c0, %c0_0] : memref<8x128xbf16, #tpu.memory_space<vmem>>, vector<8x128xbf16>
    %c0_1 = arith.constant 0 : index
    %c0_2 = arith.constant 0 : index
    %1 = vector.load %arg1[%c0_1, %c0_2] : memref<128x2048xbf16, #tpu.memory_space<vmem>>, vector<128x2048xbf16>
    %cst = arith.constant dense<0.000000e+00> : vector<8x2048xf32>
    %2 = tpu.matmul %0, %1, %cst {dimension_numbers = #tpu.dot_dimension_numbers<[1], [0], [0], [1], [0, 0, 1, 1], [], []>} : vector<8x128xbf16>, vector<128x2048xbf16>, vector<8x2048xf32> -> vector<8x2048xf32>
    %cst_3 = arith.constant dense<0.000000e+00> : vector<2048xf32>
    %3 = vector.multi_reduction <add>, %2, %cst_3 [0] : vector<8x2048xf32> to vector<2048xf32>
    %4 = vector.shape_cast %3 : vector<2048xf32> to vector<1x2048xf32>
    %cst_4 = arith.constant 8.000000e+00 : f32
    %5 = vector.broadcast %cst_4 : f32 to vector<1x2048xf32>
    %6 = arith.divf %4, %5 : vector<1x2048xf32>
    %7 = vector.broadcast %6 : vector<1x2048xf32> to vector<8x2048xf32>
    %8 = arith.subf %2, %7 : vector<8x2048xf32>
    %9 = arith.mulf %8, %8 : vector<8x2048xf32>
    %cst_5 = arith.constant dense<0.000000e+00> : vector<2048xf32>
    %10 = vector.multi_reduction <add>, %9, %cst_5 [0] : vector<8x2048xf32> to vector<2048xf32>
    %11 = vector.shape_cast %10 : vector<2048xf32> to vector<1x2048xf32>
    %cst_6 = arith.constant 8.000000e+00 : f32
    %12 = vector.broadcast %cst_6 : f32 to vector<1x2048xf32>
    %13 = arith.divf %11, %12 : vector<1x2048xf32>
    %c0_7 = arith.constant 0 : index
    %c0_8 = arith.constant 0 : index
    %14 = vector.load %arg2[%c0_7, %c0_8] : memref<1x2048xf32, #tpu.memory_space<vmem>>, vector<1x2048xf32>
    %cst_9 = arith.constant 9.99999974E-6 : f32
    %15 = vector.broadcast %cst_9 : f32 to vector<1x2048xf32>
    %16 = arith.addf %13, %15 : vector<1x2048xf32>
    %17 = math.rsqrt %16 : vector<1x2048xf32>
    %18 = arith.mulf %14, %17 : vector<1x2048xf32>
    %19 = vector.broadcast %18 : vector<1x2048xf32> to vector<8x2048xf32>
    %20 = arith.mulf %8, %19 : vector<8x2048xf32>
    %c0_10 = arith.constant 0 : index
    %c0_11 = arith.constant 0 : index
    %21 = vector.load %arg3[%c0_10, %c0_11] : memref<1x2048xf32, #tpu.memory_space<vmem>>, vector<1x2048xf32>
    %22 = vector.broadcast %21 : vector<1x2048xf32> to vector<8x2048xf32>
    %23 = arith.addf %20, %22 : vector<8x2048xf32>
    %cst_12 = arith.constant 0.000000e+00 : f32
    %24 = vector.broadcast %cst_12 : f32 to vector<8x2048xf32>
    %25 = arith.maximumf %23, %24 : vector<8x2048xf32>
    %26 = arith.truncf %25 : vector<8x2048xf32> to vector<8x2048xbf16>
    %c0_13 = arith.constant 0 : index
    %c0_14 = arith.constant 0 : index
    %27 = vector.load %arg4[%c0_13, %c0_14] : memref<2048x256xbf16, #tpu.memory_space<vmem>>, vector<2048x256xbf16>
    %cst_15 = arith.constant dense<0.000000e+00> : vector<8x256xf32>
    %28 = tpu.matmul %26, %27, %cst_15 {dimension_numbers = #tpu.dot_dimension_numbers<[1], [0], [0], [1], [0, 0, 1, 1], [], []>} : vector<8x2048xbf16>, vector<2048x256xbf16>, vector<8x256xf32> -> vector<8x256xf32>
    %cst_16 = arith.constant dense<0.000000e+00> : vector<256xf32>
    %29 = vector.multi_reduction <add>, %28, %cst_16 [0] : vector<8x256xf32> to vector<256xf32>
    %30 = vector.shape_cast %29 : vector<256xf32> to vector<1x256xf32>
    %cst_17 = arith.constant 8.000000e+00 : f32
    %31 = vector.broadcast %cst_17 : f32 to vector<1x256xf32>
    %32 = arith.divf %30, %31 : vector<1x256xf32>
    %33 = vector.broadcast %32 : vector<1x256xf32> to vector<8x256xf32>
    %34 = arith.subf %28, %33 : vector<8x256xf32>
    %35 = arith.mulf %34, %34 : vector<8x256xf32>
    %cst_18 = arith.constant dense<0.000000e+00> : vector<256xf32>
    %36 = vector.multi_reduction <add>, %35, %cst_18 [0] : vector<8x256xf32> to vector<256xf32>
    %37 = vector.shape_cast %36 : vector<256xf32> to vector<1x256xf32>
    %cst_19 = arith.constant 8.000000e+00 : f32
    %38 = vector.broadcast %cst_19 : f32 to vector<1x256xf32>
    %39 = arith.divf %37, %38 : vector<1x256xf32>
    %c0_20 = arith.constant 0 : index
    %c0_21 = arith.constant 0 : index
    %40 = vector.load %arg5[%c0_20, %c0_21] : memref<1x256xf32, #tpu.memory_space<vmem>>, vector<1x256xf32>
    %cst_22 = arith.constant 9.99999974E-6 : f32
    %41 = vector.broadcast %cst_22 : f32 to vector<1x256xf32>
    %42 = arith.addf %39, %41 : vector<1x256xf32>
    %43 = math.rsqrt %42 : vector<1x256xf32>
    %44 = arith.mulf %40, %43 : vector<1x256xf32>
    %45 = vector.broadcast %44 : vector<1x256xf32> to vector<8x256xf32>
    %46 = arith.mulf %34, %45 : vector<8x256xf32>
    %c0_23 = arith.constant 0 : index
    %c0_24 = arith.constant 0 : index
    %47 = vector.load %arg6[%c0_23, %c0_24] : memref<1x256xf32, #tpu.memory_space<vmem>>, vector<1x256xf32>
    %48 = vector.broadcast %47 : vector<1x256xf32> to vector<8x256xf32>
    %49 = arith.addf %46, %48 : vector<8x256xf32>
    %cst_25 = arith.constant 0.000000e+00 : f32
    %50 = vector.broadcast %cst_25 : f32 to vector<8x256xf32>
    %51 = arith.maximumf %49, %50 : vector<8x256xf32>
    %52 = arith.truncf %51 : vector<8x256xf32> to vector<8x256xbf16>
    %c0_26 = arith.constant 0 : index
    %c0_27 = arith.constant 0 : index
    %53 = vector.load %arg7[%c0_26, %c0_27] : memref<256x128xbf16, #tpu.memory_space<vmem>>, vector<256x128xbf16>
    %cst_28 = arith.constant dense<0.000000e+00> : vector<8x128xf32>
    %54 = tpu.matmul %52, %53, %cst_28 {dimension_numbers = #tpu.dot_dimension_numbers<[1], [0], [0], [1], [0, 0, 1, 1], [], []>} : vector<8x256xbf16>, vector<256x128xbf16>, vector<8x128xf32> -> vector<8x128xf32>
    %cst_29 = arith.constant dense<0.000000e+00> : vector<128xf32>
    %55 = vector.multi_reduction <add>, %54, %cst_29 [0] : vector<8x128xf32> to vector<128xf32>
    %56 = vector.shape_cast %55 : vector<128xf32> to vector<1x128xf32>
    %cst_30 = arith.constant 8.000000e+00 : f32
    %57 = vector.broadcast %cst_30 : f32 to vector<1x128xf32>
    %58 = arith.divf %56, %57 : vector<1x128xf32>
    %59 = vector.broadcast %58 : vector<1x128xf32> to vector<8x128xf32>
    %60 = arith.subf %54, %59 : vector<8x128xf32>
    %61 = arith.mulf %60, %60 : vector<8x128xf32>
    %cst_31 = arith.constant dense<0.000000e+00> : vector<128xf32>
    %62 = vector.multi_reduction <add>, %61, %cst_31 [0] : vector<8x128xf32> to vector<128xf32>
    %63 = vector.shape_cast %62 : vector<128xf32> to vector<1x128xf32>
    %cst_32 = arith.constant 8.000000e+00 : f32
    %64 = vector.broadcast %cst_32 : f32 to vector<1x128xf32>
    %65 = arith.divf %63, %64 : vector<1x128xf32>
    %c0_33 = arith.constant 0 : index
    %c0_34 = arith.constant 0 : index
    %66 = vector.load %arg8[%c0_33, %c0_34] : memref<1x128xf32, #tpu.memory_space<vmem>>, vector<1x128xf32>
    %cst_35 = arith.constant 9.99999974E-6 : f32
    %67 = vector.broadcast %cst_35 : f32 to vector<1x128xf32>
    %68 = arith.addf %65, %67 : vector<1x128xf32>
    %69 = math.rsqrt %68 : vector<1x128xf32>
    %70 = arith.mulf %66, %69 : vector<1x128xf32>
    %71 = vector.broadcast %70 : vector<1x128xf32> to vector<8x128xf32>
    %72 = arith.mulf %60, %71 : vector<8x128xf32>
    %c0_36 = arith.constant 0 : index
    %c0_37 = arith.constant 0 : index
    %73 = vector.load %arg9[%c0_36, %c0_37] : memref<1x128xf32, #tpu.memory_space<vmem>>, vector<1x128xf32>
    %74 = vector.broadcast %73 : vector<1x128xf32> to vector<8x128xf32>
    %75 = arith.addf %72, %74 : vector<8x128xf32>
    %cst_38 = arith.constant 0.000000e+00 : f32
    %76 = vector.broadcast %cst_38 : f32 to vector<8x128xf32>
    %77 = arith.maximumf %75, %76 : vector<8x128xf32>
    %78 = arith.truncf %77 : vector<8x128xf32> to vector<8x128xbf16>
    %c0_39 = arith.constant 0 : index
    %c0_40 = arith.constant 0 : index
    %79 = vector.load %arg10[%c0_39, %c0_40] : memref<128x128xbf16, #tpu.memory_space<vmem>>, vector<128x128xbf16>
    %cst_41 = arith.constant dense<0.000000e+00> : vector<8x128xf32>
    %80 = tpu.matmul %78, %79, %cst_41 {dimension_numbers = #tpu.dot_dimension_numbers<[1], [0], [0], [1], [0, 0, 1, 1], [], []>} : vector<8x128xbf16>, vector<128x128xbf16>, vector<8x128xf32> -> vector<8x128xf32>
    %c0_42 = arith.constant 0 : index
    %c0_43 = arith.constant 0 : index
    %81 = vector.load %arg11[%c0_42, %c0_43] : memref<1x128xf32, #tpu.memory_space<vmem>>, vector<1x128xf32>
    %82 = vector.broadcast %81 : vector<1x128xf32> to vector<8x128xf32>
    %83 = arith.addf %80, %82 : vector<8x128xf32>
    %cst_44 = arith.constant 0.000000e+00 : f32
    %84 = vector.broadcast %cst_44 : f32 to vector<8x128xf32>
    %85 = arith.maximumf %83, %84 : vector<8x128xf32>
    %86 = arith.truncf %85 : vector<8x128xf32> to vector<8x128xbf16>
    %c0_45 = arith.constant 0 : index
    %c0_46 = arith.constant 0 : index
    %87 = vector.load %arg12[%c0_45, %c0_46] : memref<128x128xbf16, #tpu.memory_space<vmem>>, vector<128x128xbf16>
    %cst_47 = arith.constant dense<0.000000e+00> : vector<8x128xf32>
    %88 = tpu.matmul %86, %87, %cst_47 {dimension_numbers = #tpu.dot_dimension_numbers<[1], [0], [0], [1], [0, 0, 1, 1], [], []>} : vector<8x128xbf16>, vector<128x128xbf16>, vector<8x128xf32> -> vector<8x128xf32>
    %c0_48 = arith.constant 0 : index
    %c0_49 = arith.constant 0 : index
    %89 = vector.load %arg13[%c0_48, %c0_49] : memref<1x128xf32, #tpu.memory_space<vmem>>, vector<1x128xf32>
    %90 = vector.broadcast %89 : vector<1x128xf32> to vector<8x128xf32>
    %91 = arith.addf %88, %90 : vector<8x128xf32>
    %cst_50 = arith.constant dense<0xFF800000> : vector<8xf32>
    %92 = vector.multi_reduction <maximumf>, %91, %cst_50 [1] : vector<8x128xf32> to vector<8xf32>
    %93 = vector.shape_cast %92 : vector<8xf32> to vector<8x1xf32>
    %94 = vector.broadcast %93 : vector<8x1xf32> to vector<8x128xf32>
    %95 = arith.subf %91, %94 : vector<8x128xf32>
    %96 = math.exp %95 : vector<8x128xf32>
    %cst_51 = arith.constant dense<0.000000e+00> : vector<8xf32>
    %97 = vector.multi_reduction <add>, %96, %cst_51 [1] : vector<8x128xf32> to vector<8xf32>
    %98 = vector.shape_cast %97 : vector<8xf32> to vector<8x1xf32>
    %99 = tpu.reciprocal %98 : vector<8x1xf32> -> vector<8x1xf32>
    %100 = vector.broadcast %99 : vector<8x1xf32> to vector<8x128xf32>
    %101 = arith.mulf %96, %100 : vector<8x128xf32>
    %c0_52 = arith.constant 0 : index
    %c0_53 = arith.constant 0 : index
    %102 = vector.load %arg14[%c0_52, %c0_53] : memref<8x128xf32, #tpu.memory_space<vmem>>, vector<8x128xf32>
    tpu.vector_store %arg14[%c0_52, %c0_53], %101 {strides = array<i32>} : memref<8x128xf32, #tpu.memory_space<vmem>>, vector<8x128xf32>,
    %c0_54 = arith.constant 0 : index
    %c0_55 = arith.constant 0 : index
    %103 = vector.load %arg15[%c0_54, %c0_55] : memref<8x128xf32, #tpu.memory_space<vmem>>, vector<8x128xf32>
    tpu.vector_store %arg15[%c0_54, %c0_55], %85 {strides = array<i32>} : memref<8x128xf32, #tpu.memory_space<vmem>>, vector<8x128xf32>,
    %c0_56 = arith.constant 0 : index
    %c0_57 = arith.constant 0 : index
    %104 = vector.load %arg16[%c0_56, %c0_57] : memref<8x128xf32, #tpu.memory_space<vmem>>, vector<8x128xf32>
    tpu.vector_store %arg16[%c0_56, %c0_57], %91 {strides = array<i32>} : memref<8x128xf32, #tpu.memory_space<vmem>>, vector<8x128xf32>,
    return
  }
}

</mosaic_0001>

<bundles_post_ra>
// kernel: tpu_custom_call.1
= control target key start
LH: loop header
LB: loop body
LE: loop exit
PB: predicated region body
PF: predicated region fallthrough
CT: control target
= control target key end

     0   :  { %s6151_s0 = inlined_call_operand.hbm [shape: bf16[8,128], index: 0, kind: input, shape index: {}]   ;;  %s6152_s1 = inlined_call_operand.hbm [shape: bf16[128,2048], index: 1, kind: input, shape index: {}]   ;;  %s6153_s2 = inlined_call_operand.hbm [shape: f32[1,2048], index: 2, kind: input, shape index: {}]   ;;  %s6154_s3 = inlined_call_operand.hbm [shape: f32[1,2048], index: 3, kind: input, shape index: {}]   ;;  %s6155_s4 = inlined_call_operand.hbm [shape: bf16[2048,256], index: 4, kind: input, shape index: {}]   ;;  %s6156_s5 = inlined_call_operand.vmem [shape: f32[1,256], index: 5, kind: input, shape index: {}]   ;;  %s6157_s6 = inlined_call_operand.vmem [shape: f32[1,256], index: 6, kind: input, shape index: {}]   ;;  %s6158_s7 = inlined_call_operand.hbm [shape: bf16[256,128], index: 7, kind: input, shape index: {}]   ;;  %s6159_s8 = inlined_call_operand.vmem [shape: f32[1,128], index: 8, kind: input, shape index: {}]   ;;  %s6160_s9 = inlined_call_operand.vmem [shape: f32[1,128], index: 9, kind: input, shape index: {}]   ;;  %s6161_s10 = inlined_call_operand.hbm [shape: bf16[128,128], index: 10, kind: input, shape index: {}]   ;;  %s6162_s11 = inlined_call_operand.vmem [shape: f32[1,128], index: 11, kind: input, shape index: {}]   ;;  %s6163_s12 = inlined_call_operand.hbm [shape: bf16[128,128], index: 12, kind: input, shape index: {}]   ;;  %s6164_s13 = inlined_call_operand.vmem [shape: f32[1,128], index: 13, kind: input, shape index: {}]   ;;  %s6165_s14 = inlined_call_operand.hbm [shape: f32[8,128], index: 14, kind: output, shape index: {0}]   ;;  %s6166_s15 = inlined_call_operand.hbm [shape: f32[8,128], index: 15, kind: output, shape index: {1}]   ;;  %s6167_s16 = inlined_call_operand.hbm [shape: f32[8,128], index: 16, kind: output, shape index: {2}]  }
   0x1   :  { %6170 = sst [smem:[#allocation27_spill]] %s6151_s0 }
   0x2   :  { %6171 = sst [smem:[#allocation28_spill]] %s6165_s14 }
   0x3   :  { %22 = vsyncpa [#allocation3], 0 }
   0x4   :  { %23 = vsyncpa [#allocation6], 0 }
   0x5   :  { %24 = vsyncpa [#allocation9], 0 }
   0x6   :  { %25 = vsyncpa [#allocation12], 0 }
   0x7   :  { %26 = vsyncpa [#allocation15], 0 }
   0x8   :  { %27 = vsyncpa [#allocation4], 0 }
   0x9   :  { %28 = vsyncpa [#allocation18], 0  ;;  %s5590_s21 = smov [#allocation5]   ;;  %s5334_s25 = scalar_lea.hbm %s6152_s1, 16384 }
   0xa   :  { %s44_s22 = sshll.u32 %s5590_s21, 4  ;;  %p5335_p0 = scmp.ne.s32.totalorder %s6152_s1, %s5334_s25  ;;  %s45_s22 = int_to_ptr.vmem [resolvable:$true] %s44_s22 }
   0xb   :  { %p5338_p1 = scmp.lt.u32.totalorder %s5334_s25, %s6152_s1 }
   0xd   :  { %p5340_p2 = pnand %p5338_p1, %p5335_p0 }
   0xf   :  { %5343 = shalt.err (!%p5340_p2)
}
  0x10   :  { %s5344_s30 = scalar_lea.vmem %s45_s22, 16384  ;;  %p5349_p4 = scmp.lt.s32.totalorder %s45_s22, %s45_s22 }
  0x11   :  { %p5345_p3 = scmp.ne.s32.totalorder %s45_s22, %s5344_s30  ;;  %p5350_p5 = scmp.lt.s32.totalorder %s5344_s30, %s5344_s30 }
  0x13   :  { %p5351_p6 = por %p5350_p5, %p5349_p4 }
  0x15   :  { %p5352_p7 = pnand %p5351_p6, %p5345_p3 }
  0x17   :  { %5355 = shalt.err (!%p5352_p7)
}
  0x18   :  { %s5591_s0 = smov 1024   ;;  %s5592_s17 = smov 64  }
  0x19   :  { %50 = dma.hbm_to_vmem [thread:$0]  %s6152_s1, 16384, %s45_s22, [#allocation6], %s5591_s0, %s5591_s0, %s5592_s17  }
  0x1a   :  { %s5593_s20 = smov [#allocation8]   ;;  %s5594_s23 = smov [#allocation11]  }
  0x1b   :  { %s67_s21 = sshll.u32 %s5593_s20, 4  ;;  %s92_s24 = sshll.u32 %s5594_s23, 4  ;;  %s68_s21 = int_to_ptr.vmem [resolvable:$true] %s67_s21  ;;  %s93_s24 = int_to_ptr.vmem [resolvable:$true] %s92_s24 }
  0x1c   :  { %s5356_s27 = scalar_lea.hbm %s6154_s3, 256 }
  0x1d   :  { %p5357_p8 = scmp.ne.s32.totalorder %s6154_s3, %s5356_s27  ;;  %p5360_p9 = scmp.lt.u32.totalorder %s5356_s27, %s6154_s3 }
  0x1f   :  { %p5362_p10 = pnand %p5360_p9, %p5357_p8 }
  0x21   :  { %5365 = shalt.err (!%p5362_p10)
}
  0x22   :  { %s5366_s1 = scalar_lea.vmem %s68_s21, 256  ;;  %p5371_p12 = scmp.lt.s32.totalorder %s68_s21, %s68_s21 }
  0x23   :  { %p5367_p11 = scmp.ne.s32.totalorder %s68_s21, %s5366_s1  ;;  %p5372_p13 = scmp.lt.s32.totalorder %s5366_s1, %s5366_s1 }
  0x25   :  { %p5373_p0 = por %p5372_p13, %p5371_p12 }
  0x27   :  { %p5374_p1 = pnand %p5373_p0, %p5367_p11 }
  0x29   :  { %5377 = shalt.err (!%p5374_p1)
}
  0x2a   :  { %70 = dma.hbm_to_vmem [thread:$0]  %s6154_s3, 256, %s68_s21, [#allocation9]  }
  0x2b   :  { %s5378_s20 = scalar_lea.hbm %s6158_s7, 2048 }
  0x2c   :  { %p5379_p2 = scmp.ne.s32.totalorder %s6158_s7, %s5378_s20  ;;  %p5382_p3 = scmp.lt.u32.totalorder %s5378_s20, %s6158_s7 }
  0x2e   :  { %p5384_p4 = pnand %p5382_p3, %p5379_p2 }
  0x30   :  { %5387 = shalt.err (!%p5384_p4)
}
  0x31   :  { %s5388_s27 = scalar_lea.vmem %s93_s24, 2048  ;;  %p5393_p6 = scmp.lt.s32.totalorder %s93_s24, %s93_s24 }
  0x32   :  { %p5389_p5 = scmp.ne.s32.totalorder %s93_s24, %s5388_s27  ;;  %p5394_p7 = scmp.lt.s32.totalorder %s5388_s27, %s5388_s27 }
  0x34   :  { %p5395_p8 = por %p5394_p7, %p5393_p6 }
  0x36   :  { %p5396_p9 = pnand %p5395_p8, %p5389_p5 }
  0x38   :  { %5399 = shalt.err (!%p5396_p9)
}
  0x39   :  { %s5595_s3 = smov 4   ;;  %s5596_s29 = smov [#allocation2]  }
  0x3a   :  { %98 = dma.hbm_to_vmem [thread:$0]  %s6158_s7, 2048, %s93_s24, [#allocation12], %s5592_s17, %s5592_s17, %s5595_s3  }
  0x3b   :  { %s35_s30 = sshll.u32 %s5596_s29, 4  ;;  %s5597_s1 = smov [#allocation7]   ;;  %s36_s30 = int_to_ptr.vmem [resolvable:$true] %s35_s30 }
  0x3c   :  { %s57_s22 = sshll.u32 %s5597_s1, 4  ;;  %s6172_s19 = sld [smem:[#allocation27_spill]]  ;;  %s58_s22 = int_to_ptr.vmem [resolvable:$true] %s57_s22 }
  0x42   :  { %s5400_s20 = scalar_lea.hbm %s6172_s19, 64 }
  0x43   :  { %p5401_p10 = scmp.ne.s32.totalorder %s6172_s19, %s5400_s20  ;;  %p5404_p11 = scmp.lt.u32.totalorder %s5400_s20, %s6172_s19 }
  0x45   :  { %p5406_p12 = pnand %p5404_p11, %p5401_p10 }
  0x47   :  { %5409 = shalt.err (!%p5406_p12)
}
  0x48   :  { %s5410_s7 = scalar_lea.vmem %s36_s30, 64  ;;  %p5415_p0 = scmp.lt.s32.totalorder %s36_s30, %s36_s30 }
  0x49   :  { %p5411_p13 = scmp.ne.s32.totalorder %s36_s30, %s5410_s7  ;;  %p5416_p1 = scmp.lt.s32.totalorder %s5410_s7, %s5410_s7 }
  0x4b   :  { %p5417_p2 = por %p5416_p1, %p5415_p0 }
  0x4d   :  { %p5418_p3 = pnand %p5417_p2, %p5411_p13 }
  0x4f   :  { %5421 = shalt.err (!%p5418_p3)
}
  0x50   :  { %38 = dma.hbm_to_vmem [thread:$0]  %s6172_s19, 64, %s36_s30, [#allocation3]  }
  0x51   :  { %s5422_s29 = scalar_lea.hbm %s6153_s2, 256 }
  0x52   :  { %p5423_p4 = scmp.ne.s32.totalorder %s6153_s2, %s5422_s29  ;;  %p5426_p5 = scmp.lt.u32.totalorder %s5422_s29, %s6153_s2 }
  0x54   :  { %p5428_p6 = pnand %p5426_p5, %p5423_p4 }
  0x56   :  { %5431 = shalt.err (!%p5428_p6)
}
  0x57   :  { %s5432_s14 = scalar_lea.vmem %s58_s22, 256  ;;  %p5437_p8 = scmp.lt.s32.totalorder %s58_s22, %s58_s22 }
  0x58   :  { %p5433_p7 = scmp.ne.s32.totalorder %s58_s22, %s5432_s14  ;;  %p5438_p9 = scmp.lt.s32.totalorder %s5432_s14, %s5432_s14 }
  0x5a   :  { %p5439_p10 = por %p5438_p9, %p5437_p8 }
  0x5c   :  { %p5440_p11 = pnand %p5439_p10, %p5433_p7 }
  0x5e   :  { %5443 = shalt.err (!%p5440_p11)
}
  0x5f   :  { %60 = dma.hbm_to_vmem [thread:$0]  %s6153_s2, 256, %s58_s22, [#allocation6]  }
  0x60   :  { %s5598_s23 = smov [#allocation10]   ;;  %s5444_s24 = scalar_lea.hbm %s6155_s4, 32768 }
  0x61   :  { %s76_s25 = sshll.u32 %s5598_s23, 4  ;;  %p5445_p12 = scmp.ne.s32.totalorder %s6155_s4, %s5444_s24  ;;  %s77_s25 = int_to_ptr.vmem [resolvable:$true] %s76_s25 }
  0x62   :  { %p5448_p13 = scmp.lt.u32.totalorder %s5444_s24, %s6155_s4 }
  0x64   :  { %p5450_p0 = pnand %p5448_p13, %p5445_p12 }
  0x66   :  { %5453 = shalt.err (!%p5450_p0)
}
  0x67   :  { %s5454_s1 = scalar_lea.vmem %s77_s25, 32768  ;;  %p5459_p2 = scmp.lt.s32.totalorder %s77_s25, %s77_s25 }
  0x68   :  { %p5455_p1 = scmp.ne.s32.totalorder %s77_s25, %s5454_s1  ;;  %p5460_p3 = scmp.lt.s32.totalorder %s5454_s1, %s5454_s1 }
  0x6a   :  { %p5461_p4 = por %p5460_p3, %p5459_p2 }
  0x6c   :  { %p5462_p5 = pnand %p5461_p4, %p5455_p1 }
  0x6e   :  { %5465 = shalt.err (!%p5462_p5)
}
  0x6f   :  { %s5599_s2 = smov 128   ;;  %s5600_s22 = smov 8  }
  0x70   :  { %82 = dma.hbm_to_vmem [thread:$0]  %s6155_s4, 32768, %s77_s25, [#allocation9], %s5599_s2, %s5599_s2, %s5600_s22  }
  0x71   :  { %s5601_s20 = smov [#allocation13]   ;;  %s5602_s30 = smov [#allocation14]  }
  0x72   :  { %s108_s14 = sshll.u32 %s5601_s20, 4  ;;  %s122_s19 = sshll.u32 %s5602_s30, 4  ;;  %s109_s14 = int_to_ptr.vmem [resolvable:$true] %s108_s14  ;;  %s123_s19 = int_to_ptr.vmem [resolvable:$true] %s122_s19 }
  0x73   :  { %s5466_s7 = scalar_lea.hbm %s6161_s10, 1024 }
  0x74   :  { %p5467_p6 = scmp.ne.s32.totalorder %s6161_s10, %s5466_s7  ;;  %p5470_p7 = scmp.lt.u32.totalorder %s5466_s7, %s6161_s10 }
  0x76   :  { %p5472_p8 = pnand %p5470_p7, %p5467_p6 }
  0x78   :  { %5475 = shalt.err (!%p5472_p8)
}
  0x79   :  { %s5476_s4 = scalar_lea.vmem %s109_s14, 1024  ;;  %p5481_p10 = scmp.lt.s32.totalorder %s109_s14, %s109_s14 }
  0x7a   :  { %p5477_p9 = scmp.ne.s32.totalorder %s109_s14, %s5476_s4  ;;  %p5482_p11 = scmp.lt.s32.totalorder %s5476_s4, %s5476_s4 }
  0x7c   :  { %p5483_p12 = por %p5482_p11, %p5481_p10 }
  0x7e   :  { %p5484_p13 = pnand %p5483_p12, %p5477_p9 }
  0x80   :  { %5487 = shalt.err (!%p5484_p13)
}
  0x81   :  { %114 = dma.hbm_to_vmem [thread:$0]  %s6161_s10, 1024, %s109_s14, [#allocation12], %s5592_s17, %s5592_s17, %s5595_s3  }
  0x82   :  { %s5488_s22 = scalar_lea.hbm %s6163_s12, 1024 }
  0x83   :  { %p5489_p0 = scmp.ne.s32.totalorder %s6163_s12, %s5488_s22  ;;  %p5492_p1 = scmp.lt.u32.totalorder %s5488_s22, %s6163_s12 }
  0x85   :  { %p5494_p2 = pnand %p5492_p1, %p5489_p0 }
  0x87   :  { %5497 = shalt.err (!%p5494_p2)
}
  0x88   :  { %s5498_s23 = scalar_lea.vmem %s123_s19, 1024  ;;  %p5503_p4 = scmp.lt.s32.totalorder %s123_s19, %s123_s19 }
  0x89   :  { %p5499_p3 = scmp.ne.s32.totalorder %s123_s19, %s5498_s23  ;;  %p5504_p5 = scmp.lt.s32.totalorder %s5498_s23, %s5498_s23 }
  0x8b   :  { %p5505_p6 = por %p5504_p5, %p5503_p4 }
  0x8d   :  { %p5506_p7 = pnand %p5505_p6, %p5499_p3 }
  0x8f   :  { %5509 = shalt.err (!%p5506_p7)
}
  0x90   :  { %128 = dma.hbm_to_vmem [thread:$0]  %s6163_s12, 1024, %s123_s19, [#allocation15], %s5592_s17, %s5592_s17, %s5595_s3  }
  0x91   :  { %5576 = dma.done.wait [#allocation3], 64  }
  0x92   :  { %5577 = vsyncadd [#allocation3], 4294967232 }
  0x93   :  { %5578 = dma.done.wait [#allocation6], 16640  }
  0x94   :  { %5579 = vsyncadd [#allocation6], 4294950656 }
  0x95   :  { %5580 = dma.done.wait [#allocation9], 33024  }
  0x96   :  { %5581 = vsyncadd [#allocation9], 4294934272 }
  0x97   :  { %5582 = dma.done.wait [#allocation12], 3072  }
  0x98   :  { %5583 = vsyncadd [#allocation12], 4294964224 }
  0x99   :  { %5584 = dma.done.wait [#allocation15], 1024  }
  0x9a   :  { %5585 = vsyncadd [#allocation15], 4294966272  ;;  %v5603_v0 = vmov 0   ;;  %v157_v1 = vld [vmem:[#allocation5] sm:$0xff]  ;;  %v158_v3 = vld [vmem:[#allocation5 + $0x8] sm:$0xff]  ;;  %vm5606_vm0 = vmmov 0  }
  0x9b   :  { %957 = vmatprep.mubr.bf16.mxu0 %v5603_v0  ;;  %998 = vmatprep.mubr.bf16.mxu1 %v5603_v0  ;;  %v165_v2 = vld [vmem:[#allocation5 + $0x40] sm:$0xff]  ;;  %v166_v5 = vld [vmem:[#allocation5 + $0x48] sm:$0xff]  ;;  %v159_v63 = vld [vmem:[#allocation5 + $0x10] sm:$0xff] }
  0x9c   :  { %v4331_v4 = vcombine.high %v157_v1, %v165_v2  ;;  %v4330_v6 = vcombine.low %v157_v1, %v165_v2  ;;  %v173_v7 = vld [vmem:[#allocation5 + $0x80] sm:$0xff]  ;;  %v4333_v9 = vcombine.high %v158_v3, %v166_v5  ;;  %v4332_v10 = vcombine.low %v158_v3, %v166_v5  ;;  %v174_v12 = vld [vmem:[#allocation5 + $0x88] sm:$0xff]  ;;  %v167_v1 = vld [vmem:[#allocation5 + $0x50] sm:$0xff] }
  0x9d   :  { %v181_v8 = vld [vmem:[#allocation5 + $0xc0] sm:$0xff]  ;;  %v182_v13 = vld [vmem:[#allocation5 + $0xc8] sm:$0xff]  ;;  %v160_v2 = vld [vmem:[#allocation5 + $0x18] sm:$0xff] }
  0x9e   :  { %v4347_v11 = vcombine.high %v173_v7, %v181_v8  ;;  %v189_v14 = vld [vmem:[#allocation5 + $0x100] sm:$0xff]  ;;  %925 = vmatprep.subr.bf16.mxu0 %v4331_v4  ;;  %v4349_v15 = vcombine.high %v174_v12, %v182_v13  ;;  %v190_v17 = vld [vmem:[#allocation5 + $0x108] sm:$0xff]  ;;  %966 = vmatprep.subr.bf16.mxu1 %v4333_v9  ;;  %v4346_v19 = vcombine.low %v173_v7, %v181_v8  ;;  %v168_v3 = vld [vmem:[#allocation5 + $0x58] sm:$0xff] }
  0x9f   :  { %v197_v16 = vld [vmem:[#allocation5 + $0x140] sm:$0xff]  ;;  %v198_v18 = vld [vmem:[#allocation5 + $0x148] sm:$0xff]  ;;  %926 = vmatpush1.bf16.msra.mxu0 %v4330_v6  ;;  %967 = vmatpush1.bf16.msra.mxu1 %v4332_v10  ;;  %v4348_v20 = vcombine.low %v174_v12, %v182_v13  ;;  %v4335_v6 = vcombine.high %v159_v63, %v167_v1  ;;  %v4337_v7 = vcombine.high %v160_v2, %v168_v3  ;;  %v175_v8 = vld [vmem:[#allocation5 + $0x90] sm:$0xff] }
  0xa0   :  { %927 = vmatprep.subr.bf16.mxu0 %v4347_v11  ;;  %v4363_v21 = vcombine.high %v189_v14, %v197_v16  ;;  %968 = vmatprep.subr.bf16.mxu1 %v4349_v15  ;;  %v4365_v22 = vcombine.high %v190_v17, %v198_v18  ;;  %v205_v23 = vld [vmem:[#allocation5 + $0x180] sm:$0xff]  ;;  %v206_v25 = vld [vmem:[#allocation5 + $0x188] sm:$0xff]  ;;  %v4362_v27 = vcombine.low %v189_v14, %v197_v16  ;;  %v183_v9 = vld [vmem:[#allocation5 + $0xd0] sm:$0xff] }
  0xa1   :  { %v213_v24 = vld [vmem:[#allocation5 + $0x1c0] sm:$0xff]  ;;  %v214_v26 = vld [vmem:[#allocation5 + $0x1c8] sm:$0xff]  ;;  %v4364_v28 = vcombine.low %v190_v17, %v198_v18  ;;  %v176_v10 = vld [vmem:[#allocation5 + $0x98] sm:$0xff]  ;;  %v4334_v13 = vcombine.low %v159_v63, %v167_v1  ;;  %v4336_v14 = vcombine.low %v160_v2, %v168_v3  ;;  %v4351_v15 = vcombine.high %v175_v8, %v183_v9 }
  0xa2   :  { %v4379_v29 = vcombine.high %v205_v23, %v213_v24  ;;  %v4381_v30 = vcombine.high %v206_v25, %v214_v26  ;;  %v221_v31 = vld [vmem:[#allocation5 + $0x200] sm:$0xff]  ;;  %v222_v33 = vld [vmem:[#allocation5 + $0x208] sm:$0xff]  ;;  %v4378_v35 = vcombine.low %v205_v23, %v213_v24  ;;  %v4380_v36 = vcombine.low %v206_v25, %v214_v26  ;;  %v184_v11 = vld [vmem:[#allocation5 + $0xd8] sm:$0xff] }
  0xa3   :  { %928 = vmatpush1.bf16.msra.mxu0 %v4346_v19  ;;  %969 = vmatpush1.bf16.msra.mxu1 %v4348_v20  ;;  %v229_v32 = vld [vmem:[#allocation5 + $0x240] sm:$0xff]  ;;  %v230_v34 = vld [vmem:[#allocation5 + $0x248] sm:$0xff]  ;;  %v5803_v12 = vld [vmem:[#allocation2] sm:$0xf]  ;;  %v4353_v16 = vcombine.high %v176_v10, %v184_v11 }
  0xa4   :  { %929 = vmatprep.subr.bf16.mxu0 %v4363_v21  ;;  %970 = vmatprep.subr.bf16.mxu1 %v4365_v22  ;;  %v4395_v37 = vcombine.high %v221_v31, %v229_v32  ;;  %v4397_v38 = vcombine.high %v222_v33, %v230_v34  ;;  %v237_v39 = vld [vmem:[#allocation5 + $0x280] sm:$0xff]  ;;  %v238_v41 = vld [vmem:[#allocation5 + $0x288] sm:$0xff]  ;;  %v4394_v43 = vcombine.low %v221_v31, %v229_v32  ;;  %v191_v17 = vld [vmem:[#allocation5 + $0x110] sm:$0xff] }
  0xa5   :  { %v245_v40 = vld [vmem:[#allocation5 + $0x2c0] sm:$0xff]  ;;  %v246_v42 = vld [vmem:[#allocation5 + $0x2c8] sm:$0xff]  ;;  %v4396_v44 = vcombine.low %v222_v33, %v230_v34  ;;  %v199_v18 = vld [vmem:[#allocation5 + $0x150] sm:$0xff]  ;;  %v4350_v21 = vcombine.low %v175_v8, %v183_v9  ;;  %v4352_v22 = vcombine.low %v176_v10, %v184_v11 }
  0xa6   :  { %v4411_v45 = vcombine.high %v237_v39, %v245_v40  ;;  %v4413_v46 = vcombine.high %v238_v41, %v246_v42  ;;  %v253_v47 = vld [vmem:[#allocation5 + $0x300] sm:$0xff]  ;;  %v254_v49 = vld [vmem:[#allocation5 + $0x308] sm:$0xff]  ;;  %v4410_v51 = vcombine.low %v237_v39, %v245_v40  ;;  %v4412_v52 = vcombine.low %v238_v41, %v246_v42  ;;  %v192_v19 = vld [vmem:[#allocation5 + $0x118] sm:$0xff] }
  0xa7   :  { %930 = vmatpush1.bf16.msra.mxu0 %v4362_v27  ;;  %971 = vmatpush1.bf16.msra.mxu1 %v4364_v28  ;;  %v261_v48 = vld [vmem:[#allocation5 + $0x340] sm:$0xff]  ;;  %v262_v50 = vld [vmem:[#allocation5 + $0x348] sm:$0xff]  ;;  %v200_v20 = vld [vmem:[#allocation5 + $0x158] sm:$0xff]  ;;  %v4367_v23 = vcombine.high %v191_v17, %v199_v18 }
  0xa8   :  { %931 = vmatprep.subr.bf16.mxu0 %v4379_v29  ;;  %972 = vmatprep.subr.bf16.mxu1 %v4381_v30  ;;  %v4427_v53 = vcombine.high %v253_v47, %v261_v48  ;;  %v4429_v54 = vcombine.high %v254_v49, %v262_v50  ;;  %v269_v55 = vld [vmem:[#allocation5 + $0x380] sm:$0xff]  ;;  %v270_v57 = vld [vmem:[#allocation5 + $0x388] sm:$0xff]  ;;  %v4426_v59 = vcombine.low %v253_v47, %v261_v48  ;;  %v207_v25 = vld [vmem:[#allocation5 + $0x190] sm:$0xff] }
  0xa9   :  { %v277_v56 = vld [vmem:[#allocation5 + $0x3c0] sm:$0xff]  ;;  %v278_v58 = vld [vmem:[#allocation5 + $0x3c8] sm:$0xff]  ;;  %v4428_v60 = vcombine.low %v254_v49, %v262_v50  ;;  %v4369_v24 = vcombine.high %v192_v19, %v200_v20  ;;  %v215_v26 = vld [vmem:[#allocation5 + $0x1d0] sm:$0xff]  ;;  %v4366_v29 = vcombine.low %v191_v17, %v199_v18  ;;  %v4368_v30 = vcombine.low %v192_v19, %v200_v20 }
  0xaa   :  { %v4443_v61 = vcombine.high %v269_v55, %v277_v56  ;;  %v4445_v62 = vcombine.high %v270_v57, %v278_v58  ;;  %v4442_v4 = vcombine.low %v269_v55, %v277_v56  ;;  %v4444_v5 = vcombine.low %v270_v57, %v278_v58  ;;  %v208_v27 = vld [vmem:[#allocation5 + $0x198] sm:$0xff]  ;;  %v223_v32 = vld [vmem:[#allocation5 + $0x210] sm:$0xff]  ;;  %v169_v63 = vld [vmem:[#allocation5 + $0x60] sm:$0xff] }
  0xab   :  { %932 = vmatpush1.bf16.msra.mxu0 %v4378_v35  ;;  %973 = vmatpush1.bf16.msra.mxu1 %v4380_v36  ;;  %v216_v28 = vld [vmem:[#allocation5 + $0x1d8] sm:$0xff]  ;;  %v4383_v31 = vcombine.high %v207_v25, %v215_v26  ;;  %v231_v34 = vld [vmem:[#allocation5 + $0x250] sm:$0xff]  ;;  %v162_v3 = vld [vmem:[#allocation5 + $0x28] sm:$0xff] }
  0xac   :  { %933 = vmatprep.subr.bf16.mxu0 %v4395_v37  ;;  %974 = vmatprep.subr.bf16.mxu1 %v4397_v38  ;;  %v4385_v33 = vcombine.high %v208_v27, %v216_v28  ;;  %v224_v35 = vld [vmem:[#allocation5 + $0x218] sm:$0xff]  ;;  %v4382_v37 = vcombine.low %v207_v25, %v215_v26  ;;  %v239_v38 = vld [vmem:[#allocation5 + $0x290] sm:$0xff]  ;;  %v4384_v40 = vcombine.low %v208_v27, %v216_v28  ;;  %v185_v8 = vld [vmem:[#allocation5 + $0xe0] sm:$0xff] }
  0xad   :  { %v232_v36 = vld [vmem:[#allocation5 + $0x258] sm:$0xff]  ;;  %v247_v39 = vld [vmem:[#allocation5 + $0x2d0] sm:$0xff]  ;;  %v4399_v41 = vcombine.high %v223_v32, %v231_v34  ;;  %v178_v11 = vld [vmem:[#allocation5 + $0xa8] sm:$0xff] }
  0xae   :  { %v240_v42 = vld [vmem:[#allocation5 + $0x298] sm:$0xff]  ;;  %v263_v47 = vld [vmem:[#allocation5 + $0x350] sm:$0xff]  ;;  %v4400_v48 = vcombine.low %v224_v35, %v232_v36  ;;  %v4415_v49 = vcombine.high %v239_v38, %v247_v39  ;;  %v201_v17 = vld [vmem:[#allocation5 + $0x160] sm:$0xff] }
  0xaf   :  { %934 = vmatpush1.bf16.msra.mxu0 %v4394_v43  ;;  %975 = vmatpush1.bf16.msra.mxu1 %v4396_v44  ;;  %v248_v43 = vld [vmem:[#allocation5 + $0x2d8] sm:$0xff]  ;;  %v4401_v44 = vcombine.high %v224_v35, %v232_v36  ;;  %v279_v55 = vld [vmem:[#allocation5 + $0x3d0] sm:$0xff]  ;;  %v194_v20 = vld [vmem:[#allocation5 + $0x128] sm:$0xff] }
  0xb0   :  { %935 = vmatprep.subr.bf16.mxu0 %v4411_v45  ;;  %976 = vmatprep.subr.bf16.mxu1 %v4413_v46  ;;  %v4398_v45 = vcombine.low %v223_v32, %v231_v34  ;;  %v255_v46 = vld [vmem:[#allocation5 + $0x310] sm:$0xff]  ;;  %v256_v50 = vld [vmem:[#allocation5 + $0x318] sm:$0xff]  ;;  %v4416_v56 = vcombine.low %v240_v42, %v248_v43  ;;  %v217_v25 = vld [vmem:[#allocation5 + $0x1e0] sm:$0xff] }
  0xb1   :  { %v4431_v57 = vcombine.high %v255_v46, %v263_v47  ;;  %v272_v58 = vld [vmem:[#allocation5 + $0x398] sm:$0xff]  ;;  %v210_v28 = vld [vmem:[#allocation5 + $0x1a8] sm:$0xff]  ;;  %v225_v32 = vld [vmem:[#allocation5 + $0x220] sm:$0xff] }
  0xb2   :  { %v226_v36 = vld [vmem:[#allocation5 + $0x228] sm:$0xff] }
  0xb3   :  { %936 = vmatpush1.bf16.msra.mxu0 %v4410_v51  ;;  %977 = vmatpush1.bf16.msra.mxu1 %v4412_v52  ;;  %v264_v51 = vld [vmem:[#allocation5 + $0x358] sm:$0xff]  ;;  %v4417_v52 = vcombine.high %v240_v42, %v248_v43 }
  0xb4   :  { %937 = vmatprep.subr.bf16.mxu0 %v4427_v53  ;;  %978 = vmatprep.subr.bf16.mxu1 %v4429_v54  ;;  %v4414_v53 = vcombine.low %v239_v38, %v247_v39  ;;  %v271_v54 = vld [vmem:[#allocation5 + $0x390] sm:$0xff]  ;;  %v4432_v1 = vcombine.low %v256_v50, %v264_v51 }
  0xb5   :  { %v4447_v2 = vcombine.high %v271_v54, %v279_v55 }
  0xb7   :  { %938 = vmatpush1.bf16.msra.mxu0 %v4426_v59  ;;  %979 = vmatpush1.bf16.msra.mxu1 %v4428_v60  ;;  %v280_v59 = vld [vmem:[#allocation5 + $0x3d8] sm:$0xff]  ;;  %v4433_v60 = vcombine.high %v256_v50, %v264_v51 }
  0xb8   :  { %939 = vmatprep.subr.bf16.mxu0 %v4443_v61  ;;  %980 = vmatprep.subr.bf16.mxu1 %v4445_v62  ;;  %v4430_v61 = vcombine.low %v255_v46, %v263_v47  ;;  %v161_v62 = vld [vmem:[#allocation5 + $0x20] sm:$0xff]  ;;  %v4448_v9 = vcombine.low %v272_v58, %v280_v59 }
  0xb9   :  { %v4339_v10 = vcombine.high %v161_v62, %v169_v63 }
  0xbb   :  { %940 = vmatpush1.bf16.msra.mxu0 %v4442_v4  ;;  %981 = vmatpush1.bf16.msra.mxu1 %v4444_v5  ;;  %v170_v4 = vld [vmem:[#allocation5 + $0x68] sm:$0xff]  ;;  %v4449_v5 = vcombine.high %v272_v58, %v280_v59 }
  0xbc   :  { %1007 = vmatprep.subr.bf16.mxu0 %v4335_v6  ;;  %1048 = vmatprep.subr.bf16.mxu1 %v4337_v7  ;;  %v4446_v6 = vcombine.low %v271_v54, %v279_v55  ;;  %v177_v7 = vld [vmem:[#allocation5 + $0xa0] sm:$0xff]  ;;  %v4340_v18 = vcombine.low %v162_v3, %v170_v4 }
  0xbd   :  { %v4355_v19 = vcombine.high %v177_v7, %v185_v8 }
  0xbe   :  { %958 = vmatmul.mubr.bf16.vlgmr.msra.gmra.mrb[0].mxu0 %v5803_v12  ;;  %999 = vmatmul.mubr.bf16.vlgmr.msra.gmra.mrb[0].mxu1 %v5803_v12 }
  0xbf   :  { %1008 = vmatpush1.bf16.msra.mxu0 %v4334_v13  ;;  %1049 = vmatpush1.bf16.msra.mxu1 %v4336_v14  ;;  %v186_v13 = vld [vmem:[#allocation5 + $0xe8] sm:$0xff]  ;;  %v4341_v14 = vcombine.high %v162_v3, %v170_v4 }
  0xc0   :  { %1009 = vmatprep.subr.bf16.mxu0 %v4351_v15  ;;  %1050 = vmatprep.subr.bf16.mxu1 %v4353_v16  ;;  %v4338_v15 = vcombine.low %v161_v62, %v169_v63  ;;  %v193_v16 = vld [vmem:[#allocation5 + $0x120] sm:$0xff]  ;;  %v4356_v26 = vcombine.low %v178_v11, %v186_v13 }
  0xc1   :  { %1039 = vmatprep.mubr.bf16.mxu0 %v5603_v0  ;;  %1080 = vmatprep.mubr.bf16.mxu1 %v5603_v0  ;;  %v4371_v27 = vcombine.high %v193_v16, %v201_v17 }
  0xc3   :  { %1010 = vmatpush1.bf16.msra.mxu0 %v4350_v21  ;;  %1051 = vmatpush1.bf16.msra.mxu1 %v4352_v22  ;;  %v202_v21 = vld [vmem:[#allocation5 + $0x168] sm:$0xff]  ;;  %v4357_v22 = vcombine.high %v178_v11, %v186_v13 }
  0xc4   :  { %1011 = vmatprep.subr.bf16.mxu0 %v4367_v23  ;;  %1052 = vmatprep.subr.bf16.mxu1 %v4369_v24  ;;  %v4354_v23 = vcombine.low %v177_v7, %v185_v8  ;;  %v209_v24 = vld [vmem:[#allocation5 + $0x1a0] sm:$0xff]  ;;  %v4372_v34 = vcombine.low %v194_v20, %v202_v21 }
  0xc5   :  { %v4387_v35 = vcombine.high %v209_v24, %v217_v25  ;;  %v4386_v39 = vcombine.low %v209_v24, %v217_v25 }
  0xc7   :  { %1012 = vmatpush1.bf16.msra.mxu0 %v4366_v29  ;;  %1053 = vmatpush1.bf16.msra.mxu1 %v4368_v30  ;;  %v218_v29 = vld [vmem:[#allocation5 + $0x1e8] sm:$0xff]  ;;  %v4373_v30 = vcombine.high %v194_v20, %v202_v21 }
  0xc8   :  { %1013 = vmatprep.subr.bf16.mxu0 %v4383_v31  ;;  %1054 = vmatprep.subr.bf16.mxu1 %v4385_v33  ;;  %v4370_v31 = vcombine.low %v193_v16, %v201_v17  ;;  %v233_v33 = vld [vmem:[#allocation5 + $0x260] sm:$0xff]  ;;  %v4389_v38 = vcombine.high %v210_v28, %v218_v29  ;;  %v4388_v42 = vcombine.low %v210_v28, %v218_v29 }
  0xc9   :  { %v4403_v43 = vcombine.high %v225_v32, %v233_v33  ;;  %v4402_v47 = vcombine.low %v225_v32, %v233_v33 }
  0xcb   :  { %1014 = vmatpush1.bf16.msra.mxu0 %v4382_v37  ;;  %1055 = vmatpush1.bf16.msra.mxu1 %v4384_v40  ;;  %v234_v37 = vld [vmem:[#allocation5 + $0x268] sm:$0xff]  ;;  %v241_v40 = vld [vmem:[#allocation5 + $0x2a0] sm:$0xff] }
  0xcc   :  { %1015 = vmatprep.subr.bf16.mxu0 %v4399_v41  ;;  %1056 = vmatprep.subr.bf16.mxu1 %v4401_v44  ;;  %v249_v41 = vld [vmem:[#allocation5 + $0x2e0] sm:$0xff]  ;;  %v242_v44 = vld [vmem:[#allocation5 + $0x2a8] sm:$0xff]  ;;  %v4405_v46 = vcombine.high %v226_v36, %v234_v37  ;;  %v4404_v50 = vcombine.low %v226_v36, %v234_v37  ;;  %v228_v37 = vld [vmem:[#allocation5 + $0x238] sm:$0xff] }
  0xcd   :  { %v4419_v51 = vcombine.high %v241_v40, %v249_v41  ;;  %v4418_v55 = vcombine.low %v241_v40, %v249_v41  ;;  %v243_v41 = vld [vmem:[#allocation5 + $0x2b0] sm:$0xff] }
  0xcf   :  { %1016 = vmatpush1.bf16.msra.mxu0 %v4398_v45  ;;  %1057 = vmatpush1.bf16.msra.mxu1 %v4400_v48  ;;  %v250_v45 = vld [vmem:[#allocation5 + $0x2e8] sm:$0xff]  ;;  %v257_v48 = vld [vmem:[#allocation5 + $0x320] sm:$0xff] }
  0xd0   :  { %1017 = vmatprep.subr.bf16.mxu0 %v4415_v49  ;;  %1058 = vmatprep.subr.bf16.mxu1 %v4417_v52  ;;  %v265_v49 = vld [vmem:[#allocation5 + $0x360] sm:$0xff]  ;;  %v258_v52 = vld [vmem:[#allocation5 + $0x328] sm:$0xff]  ;;  %v4421_v54 = vcombine.high %v242_v44, %v250_v45  ;;  %v4420_v58 = vcombine.low %v242_v44, %v250_v45  ;;  %v244_v44 = vld [vmem:[#allocation5 + $0x2b8] sm:$0xff] }
  0xd1   :  { %v4435_v59 = vcombine.high %v257_v48, %v265_v49  ;;  %v4434_v63 = vcombine.low %v257_v48, %v265_v49  ;;  %v252_v45 = vld [vmem:[#allocation5 + $0x2f8] sm:$0xff]  ;;  %v259_v48 = vld [vmem:[#allocation5 + $0x330] sm:$0xff] }
  0xd2   :  { %v267_v49 = vld [vmem:[#allocation5 + $0x370] sm:$0xff] }
  0xd3   :  { %1018 = vmatpush1.bf16.msra.mxu0 %v4414_v53  ;;  %1059 = vmatpush1.bf16.msra.mxu1 %v4416_v56  ;;  %v266_v53 = vld [vmem:[#allocation5 + $0x368] sm:$0xff]  ;;  %v273_v56 = vld [vmem:[#allocation5 + $0x3a0] sm:$0xff] }
  0xd4   :  { %1019 = vmatprep.subr.bf16.mxu0 %v4431_v57  ;;  %1060 = vmatprep.subr.bf16.mxu1 %v4433_v60  ;;  %v281_v57 = vld [vmem:[#allocation5 + $0x3e0] sm:$0xff]  ;;  %v274_v60 = vld [vmem:[#allocation5 + $0x3a8] sm:$0xff]  ;;  %v4437_v62 = vcombine.high %v258_v52, %v266_v53  ;;  %v4436_v3 = vcombine.low %v258_v52, %v266_v53  ;;  %v260_v52 = vld [vmem:[#allocation5 + $0x338] sm:$0xff] }
  0xd5   :  { %v4451_v4 = vcombine.high %v273_v56, %v281_v57  ;;  %v4450_v8 = vcombine.low %v273_v56, %v281_v57  ;;  %v268_v53 = vld [vmem:[#allocation5 + $0x378] sm:$0xff]  ;;  %v275_v56 = vld [vmem:[#allocation5 + $0x3b0] sm:$0xff] }
  0xd6   :  { %v283_v57 = vld [vmem:[#allocation5 + $0x3f0] sm:$0xff] }
  0xd7   :  { %1020 = vmatpush1.bf16.msra.mxu0 %v4430_v61  ;;  %1061 = vmatpush1.bf16.msra.mxu1 %v4432_v1  ;;  %v282_v61 = vld [vmem:[#allocation5 + $0x3e8] sm:$0xff]  ;;  %v163_v1 = vld [vmem:[#allocation5 + $0x30] sm:$0xff] }
  0xd8   :  { %1021 = vmatprep.subr.bf16.mxu0 %v4447_v2  ;;  %1062 = vmatprep.subr.bf16.mxu1 %v4449_v5  ;;  %v171_v2 = vld [vmem:[#allocation5 + $0x70] sm:$0xff]  ;;  %v164_v5 = vld [vmem:[#allocation5 + $0x38] sm:$0xff]  ;;  %v4453_v7 = vcombine.high %v274_v60, %v282_v61  ;;  %v4452_v11 = vcombine.low %v274_v60, %v282_v61 }
  0xd9   :  { %v4343_v13 = vcombine.high %v163_v1, %v171_v2  ;;  %v4342_v17 = vcombine.low %v163_v1, %v171_v2  ;;  %v276_v60 = vld [vmem:[#allocation5 + $0x3b8] sm:$0xff]  ;;  %v4440_v1 = vcombine.low %v260_v52, %v268_v53  ;;  %v4455_v2 = vcombine.high %v275_v56, %v283_v57 }
  0xda   :  { %v284_v61 = vld [vmem:[#allocation5 + $0x3f8] sm:$0xff] }
  0xdb   :  { %1022 = vmatpush1.bf16.msra.mxu0 %v4446_v6  ;;  %1063 = vmatpush1.bf16.msra.mxu1 %v4448_v9  ;;  %v172_v6 = vld [vmem:[#allocation5 + $0x78] sm:$0xff]  ;;  %v179_v9 = vld [vmem:[#allocation5 + $0xb0] sm:$0xff] }
  0xdc   :  { %1089 = vmatprep.subr.bf16.mxu0 %v4339_v10  ;;  %1130 = vmatprep.subr.bf16.mxu1 %v4341_v14  ;;  %v187_v10 = vld [vmem:[#allocation5 + $0xf0] sm:$0xff]  ;;  %v180_v14 = vld [vmem:[#allocation5 + $0xb8] sm:$0xff]  ;;  %v4345_v16 = vcombine.high %v164_v5, %v172_v6  ;;  %v4344_v20 = vcombine.low %v164_v5, %v172_v6  ;;  %v4456_v5 = vcombine.low %v276_v60, %v284_v61 }
  0xdd   :  { %v4359_v21 = vcombine.high %v179_v9, %v187_v10  ;;  %v4358_v25 = vcombine.low %v179_v9, %v187_v10  ;;  %v5333_v6 = vld [vmem:[#allocation2] sm:$0xf]  ;;  %v4875_v9 = vld [vmem:[#allocation10] ss:$8 sps:$4 sm:$0xff]  }
  0xde   :  { %1040 = vmatmul.mubr.bf16.vlgmr.msra.gmra.mrb[4].mxu0 %v5803_v12  ;;  %1081 = vmatmul.mubr.bf16.vlgmr.msra.gmra.mrb[4].mxu1 %v5803_v12  ;;  %v4878_v10 = vld [vmem:[#allocation10 + $0x300] ss:$8 sps:$4 sm:$0xff]  }
  0xdf   :  { %1090 = vmatpush1.bf16.msra.mxu0 %v4338_v15  ;;  %1131 = vmatpush1.bf16.msra.mxu1 %v4340_v18  ;;  %v188_v15 = vld [vmem:[#allocation5 + $0xf8] sm:$0xff]  ;;  %v195_v18 = vld [vmem:[#allocation5 + $0x130] sm:$0xff] }
  0xe0   :  { %1091 = vmatprep.subr.bf16.mxu0 %v4355_v19  ;;  %1132 = vmatprep.subr.bf16.mxu1 %v4357_v22  ;;  %v203_v19 = vld [vmem:[#allocation5 + $0x170] sm:$0xff]  ;;  %v196_v22 = vld [vmem:[#allocation5 + $0x138] sm:$0xff]  ;;  %v4361_v24 = vcombine.high %v180_v14, %v188_v15  ;;  %v4360_v28 = vcombine.low %v180_v14, %v188_v15 }
  0xe1   :  { %1121 = vmatprep.mubr.bf16.mxu0 %v5603_v0  ;;  %1162 = vmatprep.mubr.bf16.mxu1 %v5603_v0  ;;  %v4375_v29 = vcombine.high %v195_v18, %v203_v19  ;;  %v4374_v33 = vcombine.low %v195_v18, %v203_v19  ;;  %v4881_v14 = vld [vmem:[#allocation10 + $0x10] ss:$8 sps:$4 sm:$0xff]   ;;  %v4887_v18 = vld [vmem:[#allocation10 + $0x20] ss:$8 sps:$4 sm:$0xff]  }
  0xe2   :  { %v4884_v15 = vld [vmem:[#allocation10 + $0x310] ss:$8 sps:$4 sm:$0xff]   ;;  %v4890_v19 = vld [vmem:[#allocation10 + $0x320] ss:$8 sps:$4 sm:$0xff]  }
  0xe3   :  { %1092 = vmatpush1.bf16.msra.mxu0 %v4354_v23  ;;  %1133 = vmatpush1.bf16.msra.mxu1 %v4356_v26  ;;  %v204_v23 = vld [vmem:[#allocation5 + $0x178] sm:$0xff]  ;;  %v211_v26 = vld [vmem:[#allocation5 + $0x1b0] sm:$0xff] }
  0xe4   :  { %1093 = vmatprep.subr.bf16.mxu0 %v4371_v27  ;;  %1134 = vmatprep.subr.bf16.mxu1 %v4373_v30  ;;  %v219_v27 = vld [vmem:[#allocation5 + $0x1f0] sm:$0xff]  ;;  %v212_v30 = vld [vmem:[#allocation5 + $0x1b8] sm:$0xff]  ;;  %v4377_v32 = vcombine.high %v196_v22, %v204_v23 }
  0xe5   :  { %v4391_v36 = vcombine.high %v211_v26, %v219_v27  ;;  %v4390_v40 = vcombine.low %v211_v26, %v219_v27  ;;  %v4899_v26 = vld [vmem:[#allocation10 + $0x40] ss:$8 sps:$4 sm:$0xff]  }
  0xe6   :  { %v4902_v27 = vld [vmem:[#allocation10 + $0x340] ss:$8 sps:$4 sm:$0xff]  }
  0xe7   :  { %1094 = vmatpush1.bf16.msra.mxu0 %v4370_v31  ;;  %1135 = vmatpush1.bf16.msra.mxu1 %v4372_v34  ;;  %v220_v31 = vld [vmem:[#allocation5 + $0x1f8] sm:$0xff]  ;;  %v227_v34 = vld [vmem:[#allocation5 + $0x230] sm:$0xff] }
  0xe8   :  { %1095 = vmatprep.subr.bf16.mxu0 %v4387_v35  ;;  %1136 = vmatprep.subr.bf16.mxu1 %v4389_v38  ;;  %v4376_v35 = vcombine.low %v196_v22, %v204_v23  ;;  %v236_v38 = vld [vmem:[#allocation5 + $0x278] sm:$0xff] }
  0xe9   :  { %v4893_v22 = vld [vmem:[#allocation10 + $0x30] ss:$8 sps:$4 sm:$0xff]  }
  0xea   :  { %v4896_v23 = vld [vmem:[#allocation10 + $0x330] ss:$8 sps:$4 sm:$0xff]  }
  0xeb   :  { %1096 = vmatpush1.bf16.msra.mxu0 %v4386_v39  ;;  %1137 = vmatpush1.bf16.msra.mxu1 %v4388_v42  ;;  %v4393_v39 = vcombine.high %v212_v30, %v220_v31  ;;  %v251_v42 = vld [vmem:[#allocation5 + $0x2f0] sm:$0xff] }
  0xec   :  { %1097 = vmatprep.subr.bf16.mxu0 %v4403_v43  ;;  %1138 = vmatprep.subr.bf16.mxu1 %v4405_v46  ;;  %v4392_v43 = vcombine.low %v212_v30, %v220_v31  ;;  %v4409_v46 = vcombine.high %v228_v37, %v236_v38  ;;  %v4905_v30 = vld [vmem:[#allocation10 + $0x50] ss:$8 sps:$4 sm:$0xff]  }
  0xed   :  { %v4908_v31 = vld [vmem:[#allocation10 + $0x350] ss:$8 sps:$4 sm:$0xff]  }
  0xef   :  { %1098 = vmatpush1.bf16.msra.mxu0 %v4402_v47  ;;  %1139 = vmatpush1.bf16.msra.mxu1 %v4404_v50  ;;  %v4408_v50 = vcombine.low %v228_v37, %v236_v38  ;;  %v4917_v37 = vld [vmem:[#allocation10 + $0x70] ss:$8 sps:$4 sm:$0xff]  }
  0xf0   :  { %1099 = vmatprep.subr.bf16.mxu0 %v4419_v51  ;;  %1140 = vmatprep.subr.bf16.mxu1 %v4421_v54  ;;  %v4423_v51 = vcombine.high %v243_v41, %v251_v42  ;;  %v4425_v54 = vcombine.high %v244_v44, %v252_v45  ;;  %v4920_v38 = vld [vmem:[#allocation10 + $0x370] ss:$8 sps:$4 sm:$0xff]  }
  0xf3   :  { %1100 = vmatpush1.bf16.msra.mxu0 %v4418_v55  ;;  %1141 = vmatpush1.bf16.msra.mxu1 %v4420_v58  ;;  %v4422_v55 = vcombine.low %v243_v41, %v251_v42  ;;  %v4424_v58 = vcombine.low %v244_v44, %v252_v45  ;;  %v4923_v41 = vld [vmem:[#allocation10 + $0x80] ss:$8 sps:$4 sm:$0xff]   ;;  %v4929_v44 = vld [vmem:[#allocation10 + $0x90] ss:$8 sps:$4 sm:$0xff]  }
  0xf4   :  { %1101 = vmatprep.subr.bf16.mxu0 %v4435_v59  ;;  %1142 = vmatprep.subr.bf16.mxu1 %v4437_v62  ;;  %v4439_v59 = vcombine.high %v259_v48, %v267_v49  ;;  %v4441_v62 = vcombine.high %v260_v52, %v268_v53  ;;  %v4926_v42 = vld [vmem:[#allocation10 + $0x380] ss:$8 sps:$4 sm:$0xff]   ;;  %v4932_v45 = vld [vmem:[#allocation10 + $0x390] ss:$8 sps:$4 sm:$0xff]  }
  0xf5   :  { %v4941_v52 = vld [vmem:[#allocation10 + $0xb0] ss:$8 sps:$4 sm:$0xff]  }
  0xf6   :  { %v4944_v53 = vld [vmem:[#allocation10 + $0x3b0] ss:$8 sps:$4 sm:$0xff]  }
  0xf7   :  { %1102 = vmatpush1.bf16.msra.mxu0 %v4434_v63  ;;  %1143 = vmatpush1.bf16.msra.mxu1 %v4436_v3  ;;  %v4438_v63 = vcombine.low %v259_v48, %v267_v49  ;;  %v4457_v3 = vcombine.high %v276_v60, %v284_v61  ;;  %v4935_v48 = vld [vmem:[#allocation10 + $0xa0] ss:$8 sps:$4 sm:$0xff]   ;;  %v4953_v60 = vld [vmem:[#allocation10 + $0xd0] ss:$8 sps:$4 sm:$0xff]  }
  0xf8   :  { %1103 = vmatprep.subr.bf16.mxu0 %v4451_v4  ;;  %1144 = vmatprep.subr.bf16.mxu1 %v4453_v7  ;;  %v4454_v4 = vcombine.low %v275_v56, %v283_v57  ;;  %v4877_v7 = vld [vmem:[#allocation10 + $0x4] ss:$8 sps:$4 sm:$0xff]   ;;  %v4938_v49 = vld [vmem:[#allocation10 + $0x3a0] ss:$8 sps:$4 sm:$0xff]   ;;  %v4956_v61 = vld [vmem:[#allocation10 + $0x3d0] ss:$8 sps:$4 sm:$0xff]  }
  0xf9   :  { %v4947_v56 = vld [vmem:[#allocation10 + $0xc0] ss:$8 sps:$4 sm:$0xff]  }
  0xfa   :  { %v4950_v57 = vld [vmem:[#allocation10 + $0x3c0] ss:$8 sps:$4 sm:$0xff]  }
  0xfb   :  { %1104 = vmatpush1.bf16.msra.mxu0 %v4450_v8  ;;  %1145 = vmatpush1.bf16.msra.mxu1 %v4452_v11  ;;  %v4880_v8 = vld [vmem:[#allocation10 + $0x304] ss:$8 sps:$4 sm:$0xff]   ;;  %v4883_v11 = vld [vmem:[#allocation10 + $0x14] ss:$8 sps:$4 sm:$0xff]  }
  0xfc   :  { %1171 = vmatprep.subr.bf16.mxu0 %v4343_v13  ;;  %1212 = vmatprep.subr.bf16.mxu1 %v4345_v16  ;;  %v4886_v13 = vld [vmem:[#allocation10 + $0x314] ss:$8 sps:$4 sm:$0xff]   ;;  %v4889_v16 = vld [vmem:[#allocation10 + $0x24] ss:$8 sps:$4 sm:$0xff]  }
  0xfe   :  { %1122 = vmatmul.mubr.bf16.vlgmr.msra.gmra.mrb[8].mxu0 %v5803_v12  ;;  %1163 = vmatmul.mubr.bf16.vlgmr.msra.gmra.mrb[8].mxu1 %v5803_v12  ;;  %v235_v12 = vld [vmem:[#allocation5 + $0x270] sm:$0xff] }
  0xff   :  { %1172 = vmatpush1.bf16.msra.mxu0 %v4342_v17  ;;  %1213 = vmatpush1.bf16.msra.mxu1 %v4344_v20  ;;  %v4406_v47 = vcombine.low %v227_v34, %v235_v12  ;;  %v4892_v17 = vld [vmem:[#allocation10 + $0x324] ss:$8 sps:$4 sm:$0xff]   ;;  %v4895_v20 = vld [vmem:[#allocation10 + $0x34] ss:$8 sps:$4 sm:$0xff]  }
 0x100   :  { %1173 = vmatprep.subr.bf16.mxu0 %v4359_v21  ;;  %1214 = vmatprep.subr.bf16.mxu1 %v4361_v24  ;;  %v4898_v21 = vld [vmem:[#allocation10 + $0x334] ss:$8 sps:$4 sm:$0xff]   ;;  %v4901_v24 = vld [vmem:[#allocation10 + $0x44] ss:$8 sps:$4 sm:$0xff]  }
 0x101   :  { %1203 = vmatprep.mubr.bf16.mxu0 %v5603_v0  ;;  %1244 = vmatprep.mubr.bf16.mxu1 %v5603_v0  ;;  %v4407_v0 = vcombine.high %v227_v34, %v235_v12  ;;  %v4911_v34 = vld [vmem:[#allocation10 + $0x60] ss:$8 sps:$4 sm:$0xff]  }
 0x102   :  { %v4914_v12 = vld [vmem:[#allocation10 + $0x360] ss:$8 sps:$4 sm:$0xff]  }
 0x103   :  { %1174 = vmatpush1.bf16.msra.mxu0 %v4358_v25  ;;  %1215 = vmatpush1.bf16.msra.mxu1 %v4360_v28  ;;  %v4904_v25 = vld [vmem:[#allocation10 + $0x344] ss:$8 sps:$4 sm:$0xff]   ;;  %v4907_v28 = vld [vmem:[#allocation10 + $0x54] ss:$8 sps:$4 sm:$0xff]  }
 0x104   :  { %1175 = vmatprep.subr.bf16.mxu0 %v4375_v29  ;;  %1216 = vmatprep.subr.bf16.mxu1 %v4377_v32  ;;  %v4910_v29 = vld [vmem:[#allocation10 + $0x354] ss:$8 sps:$4 sm:$0xff]   ;;  %v4913_v32 = vld [vmem:[#allocation10 + $0x64] ss:$8 sps:$4 sm:$0xff]  }
 0x107   :  { %1176 = vmatpush1.bf16.msra.mxu0 %v4374_v33  ;;  %1217 = vmatpush1.bf16.msra.mxu1 %v4376_v35  ;;  %v4916_v33 = vld [vmem:[#allocation10 + $0x364] ss:$8 sps:$4 sm:$0xff]   ;;  %v4919_v35 = vld [vmem:[#allocation10 + $0x74] ss:$8 sps:$4 sm:$0xff]  }
 0x108   :  { %1177 = vmatprep.subr.bf16.mxu0 %v4391_v36  ;;  %1218 = vmatprep.subr.bf16.mxu1 %v4393_v39  ;;  %v4922_v36 = vld [vmem:[#allocation10 + $0x374] ss:$8 sps:$4 sm:$0xff]   ;;  %v4925_v39 = vld [vmem:[#allocation10 + $0x84] ss:$8 sps:$4 sm:$0xff]  }
 0x10b   :  { %1178 = vmatpush1.bf16.msra.mxu0 %v4390_v40  ;;  %1219 = vmatpush1.bf16.msra.mxu1 %v4392_v43  ;;  %v4928_v40 = vld [vmem:[#allocation10 + $0x384] ss:$8 sps:$4 sm:$0xff]   ;;  %v4931_v43 = vld [vmem:[#allocation10 + $0x94] ss:$8 sps:$4 sm:$0xff]  }
 0x10c   :  { %1179 = vmatprep.subr.bf16.mxu0 %v4407_v0  ;;  %1220 = vmatprep.subr.bf16.mxu1 %v4409_v46  ;;  %v4934_v0 = vld [vmem:[#allocation10 + $0x394] ss:$8 sps:$4 sm:$0xff]   ;;  %v4937_v46 = vld [vmem:[#allocation10 + $0xa4] ss:$8 sps:$4 sm:$0xff]  }
 0x10f   :  { %1180 = vmatpush1.bf16.msra.mxu0 %v4406_v47  ;;  %1221 = vmatpush1.bf16.msra.mxu1 %v4408_v50  ;;  %v4940_v47 = vld [vmem:[#allocation10 + $0x3a4] ss:$8 sps:$4 sm:$0xff]   ;;  %v4943_v50 = vld [vmem:[#allocation10 + $0xb4] ss:$8 sps:$4 sm:$0xff]  }
 0x110   :  { %1181 = vmatprep.subr.bf16.mxu0 %v4423_v51  ;;  %1222 = vmatprep.subr.bf16.mxu1 %v4425_v54  ;;  %v4946_v51 = vld [vmem:[#allocation10 + $0x3b4] ss:$8 sps:$4 sm:$0xff]   ;;  %v4949_v54 = vld [vmem:[#allocation10 + $0xc4] ss:$8 sps:$4 sm:$0xff]  }
 0x113   :  { %1182 = vmatpush1.bf16.msra.mxu0 %v4422_v55  ;;  %1223 = vmatpush1.bf16.msra.mxu1 %v4424_v58  ;;  %v4952_v55 = vld [vmem:[#allocation10 + $0x3c4] ss:$8 sps:$4 sm:$0xff]   ;;  %v4955_v58 = vld [vmem:[#allocation10 + $0xd4] ss:$8 sps:$4 sm:$0xff]  }
 0x114   :  { %1183 = vmatprep.subr.bf16.mxu0 %v4439_v59  ;;  %1224 = vmatprep.subr.bf16.mxu1 %v4441_v62  ;;  %v4958_v59 = vld [vmem:[#allocation10 + $0x3d4] ss:$8 sps:$4 sm:$0xff]   ;;  %v4961_v62 = vld [vmem:[#allocation10 + $0xe4] ss:$8 sps:$4 sm:$0xff]  }
 0x117   :  { %1184 = vmatpush1.bf16.msra.mxu0 %v4438_v63  ;;  %1225 = vmatpush1.bf16.msra.mxu1 %v4440_v1  ;;  %v4964_v63 = vld [vmem:[#allocation10 + $0x3e4] ss:$8 sps:$4 sm:$0xff]   ;;  %v4959_v1 = vld [vmem:[#allocation10 + $0xe0] ss:$8 sps:$4 sm:$0xff]  }
 0x118   :  { %1185 = vmatprep.subr.bf16.mxu0 %v4455_v2  ;;  %1226 = vmatprep.subr.bf16.mxu1 %v4457_v3  ;;  %v4962_v2 = vld [vmem:[#allocation10 + $0x3e0] ss:$8 sps:$4 sm:$0xff]   ;;  %v4967_v3 = vld [vmem:[#allocation10 + $0xf4] ss:$8 sps:$4 sm:$0xff]  }
 0x11b   :  { %1186 = vmatpush1.bf16.msra.mxu0 %v4454_v4  ;;  %1227 = vmatpush1.bf16.msra.mxu1 %v4456_v5  ;;  %v4970_v4 = vld [vmem:[#allocation10 + $0x3f4] ss:$8 sps:$4 sm:$0xff]   ;;  %v4965_v5 = vld [vmem:[#allocation10 + $0xf0] ss:$8 sps:$4 sm:$0xff]  }
 0x11c   :  { %3428 = vmatprep.subr.bf16.mxu1 %v4877_v7  ;;  %3551 = vmatprep.subr.bf16.mxu0 %v4880_v8  ;;  %v4973_v7 = vld [vmem:[#allocation10 + $0x104] ss:$8 sps:$4 sm:$0xff]  }
 0x11d   :  { %v4976_v8 = vld [vmem:[#allocation10 + $0x404] ss:$8 sps:$4 sm:$0xff]  }
 0x11e   :  { %1204 = vmatmul.mubr.bf16.vlgmr.msra.gmra.mrb[12].mxu0 %v5333_v6  ;;  %1245 = vmatmul.mubr.bf16.vlgmr.msra.gmra.mrb[12].mxu1 %v5333_v6  ;;  %v4968_v6 = vld [vmem:[#allocation10 + $0x3f0] ss:$8 sps:$4 sm:$0xff]  }
 0x11f   :  { %3429 = vmatpush1.bf16.msra.mxu1 %v4875_v9  ;;  %3552 = vmatpush1.bf16.msra.mxu0 %v4878_v10 }
 0x120   :  { %3430 = vmatprep.subr.bf16.mxu1 %v4883_v11  ;;  %3553 = vmatprep.subr.bf16.mxu0 %v4886_v13 }
 0x123   :  { %3431 = vmatpush1.bf16.msra.mxu1 %v4881_v14  ;;  %3554 = vmatpush1.bf16.msra.mxu0 %v4884_v15 }
 0x124   :  { %3432 = vmatprep.subr.bf16.mxu1 %v4889_v16  ;;  %3555 = vmatprep.subr.bf16.mxu0 %v4892_v17 }
 0x127   :  { %3433 = vmatpush1.bf16.msra.mxu1 %v4887_v18  ;;  %3556 = vmatpush1.bf16.msra.mxu0 %v4890_v19 }
 0x128   :  { %3434 = vmatprep.subr.bf16.mxu1 %v4895_v20  ;;  %3557 = vmatprep.subr.bf16.mxu0 %v4898_v21 }
 0x12b   :  { %3435 = vmatpush1.bf16.msra.mxu1 %v4893_v22  ;;  %3558 = vmatpush1.bf16.msra.mxu0 %v4896_v23 }
 0x12c   :  { %3436 = vmatprep.subr.bf16.mxu1 %v4901_v24  ;;  %3559 = vmatprep.subr.bf16.mxu0 %v4904_v25 }
 0x12f   :  { %3437 = vmatpush1.bf16.msra.mxu1 %v4899_v26  ;;  %3560 = vmatpush1.bf16.msra.mxu0 %v4902_v27 }
 0x130   :  { %3438 = vmatprep.subr.bf16.mxu1 %v4907_v28  ;;  %3561 = vmatprep.subr.bf16.mxu0 %v4910_v29 }
 0x133   :  { %3439 = vmatpush1.bf16.msra.mxu1 %v4905_v30  ;;  %3562 = vmatpush1.bf16.msra.mxu0 %v4908_v31 }
 0x134   :  { %3440 = vmatprep.subr.bf16.mxu1 %v4913_v32  ;;  %3563 = vmatprep.subr.bf16.mxu0 %v4916_v33 }
 0x137   :  { %3441 = vmatpush1.bf16.msra.mxu1 %v4911_v34  ;;  %3564 = vmatpush1.bf16.msra.mxu0 %v4914_v12 }
 0x138   :  { %3442 = vmatprep.subr.bf16.mxu1 %v4919_v35  ;;  %3565 = vmatprep.subr.bf16.mxu0 %v4922_v36 }
 0x13b   :  { %3443 = vmatpush1.bf16.msra.mxu1 %v4917_v37  ;;  %3566 = vmatpush1.bf16.msra.mxu0 %v4920_v38 }
 0x13c   :  { %3444 = vmatprep.subr.bf16.mxu1 %v4925_v39  ;;  %3567 = vmatprep.subr.bf16.mxu0 %v4928_v40 }
 0x13f   :  { %3445 = vmatpush1.bf16.msra.mxu1 %v4923_v41  ;;  %3568 = vmatpush1.bf16.msra.mxu0 %v4926_v42 }
 0x140   :  { %3446 = vmatprep.subr.bf16.mxu1 %v4931_v43  ;;  %3569 = vmatprep.subr.bf16.mxu0 %v4934_v0 }
 0x143   :  { %3447 = vmatpush1.bf16.msra.mxu1 %v4929_v44  ;;  %3570 = vmatpush1.bf16.msra.mxu0 %v4932_v45 }
 0x144   :  { %3448 = vmatprep.subr.bf16.mxu1 %v4937_v46  ;;  %3571 = vmatprep.subr.bf16.mxu0 %v4940_v47 }
 0x147   :  { %3449 = vmatpush1.bf16.msra.mxu1 %v4935_v48  ;;  %3572 = vmatpush1.bf16.msra.mxu0 %v4938_v49 }
 0x148   :  { %3450 = vmatprep.subr.bf16.mxu1 %v4943_v50  ;;  %3573 = vmatprep.subr.bf16.mxu0 %v4946_v51 }
 0x14b   :  { %3451 = vmatpush1.bf16.msra.mxu1 %v4941_v52  ;;  %3574 = vmatpush1.bf16.msra.mxu0 %v4944_v53 }
 0x14c   :  { %3452 = vmatprep.subr.bf16.mxu1 %v4949_v54  ;;  %3575 = vmatprep.subr.bf16.mxu0 %v4952_v55 }
 0x14f   :  { %3453 = vmatpush1.bf16.msra.mxu1 %v4947_v56  ;;  %3576 = vmatpush1.bf16.msra.mxu0 %v4950_v57 }
 0x150   :  { %3454 = vmatprep.subr.bf16.mxu1 %v4955_v58  ;;  %3577 = vmatprep.subr.bf16.mxu0 %v4958_v59 }
 0x153   :  { %3455 = vmatpush1.bf16.msra.mxu1 %v4953_v60  ;;  %3578 = vmatpush1.bf16.msra.mxu0 %v4956_v61 }
 0x154   :  { %3456 = vmatprep.subr.bf16.mxu1 %v4961_v62  ;;  %3579 = vmatprep.subr.bf16.mxu0 %v4964_v63 }
 0x157   :  { %3457 = vmatpush1.bf16.msra.mxu1 %v4959_v1  ;;  %3580 = vmatpush1.bf16.msra.mxu0 %v4962_v2 }
 0x158   :  { %3458 = vmatprep.subr.bf16.mxu1 %v4967_v3  ;;  %3581 = vmatprep.subr.bf16.mxu0 %v4970_v4 }
 0x15b   :  { %3459 = vmatpush1.bf16.msra.mxu1 %v4965_v5  ;;  %3582 = vmatpush1.bf16.msra.mxu0 %v4968_v6 }
 0x15c   :  { %3469 = vmatprep.subr.bf16.mxu1 %v4973_v7  ;;  %3592 = vmatprep.subr.bf16.mxu0 %v4976_v8 }
 0x191   :  { %v959_v9 = vpop.f32.mrb[0].mxu0  ;;  %v1000_v11 = vpop.f32.mrb[0].mxu1 }
 0x192   :  { %v1253_v10 = vrot.slane %v959_v9, 4  ;;  %v961_v13 = vpop.f32.mrb[1].mxu0  ;;  %v1265_v14 = vrot.slane %v1000_v11, 4  ;;  %v1002_v16 = vpop.f32.mrb[1].mxu1 }
 0x193   :  { %v1259_v15 = vrot.slane %v961_v13, 4  ;;  %v963_v17 = vpop.f32.mrb[2].mxu0  ;;  %v1271_v19 = vrot.slane %v1002_v16, 4  ;;  %v1004_v20 = vpop.f32.mrb[2].mxu1 }
 0x194   :  { %v1254_v18 = vadd.f32 %v1253_v10, %v959_v9  ;;  %v964_v21 = vpop.f32.mrb[3].mxu0  ;;  %v1266_v22 = vadd.f32 %v1265_v14, %v1000_v11  ;;  %v1005_v24 = vpop.f32.mrb[3].mxu1 }
 0x195   :  { %v1260_v23 = vadd.f32 %v1259_v15, %v961_v13  ;;  %v1272_v26 = vadd.f32 %v1271_v19, %v1002_v16 }
 0x196   :  { %v1255_v25 = vrot.slane %v1254_v18, 2  ;;  %v1267_v27 = vrot.slane %v1266_v22, 2 }
 0x197   :  { %v1261_v28 = vrot.slane %v1260_v23, 2  ;;  %v1273_v30 = vrot.slane %v1272_v26, 2 }
 0x198   :  { %v1256_v29 = vadd.f32 %v1255_v25, %v1254_v18  ;;  %v1268_v31 = vadd.f32 %v1267_v27, %v1266_v22 }
 0x199   :  { %v1262_v32 = vadd.f32 %v1261_v28, %v1260_v23  ;;  %v1274_v34 = vadd.f32 %v1273_v30, %v1272_v26 }
 0x19a   :  { %v1257_v33 = vrot.slane %v1256_v29, 1  ;;  %v1269_v12 = vrot.slane %v1268_v31, 1 }
 0x19b   :  { %v1263_v35 = vrot.slane %v1262_v32, 1  ;;  %v1275_v37 = vrot.slane %v1274_v34, 1 }
 0x19c   :  { %v1258_v36 = vadd.f32 %v1257_v33, %v1256_v29  ;;  %v1270_v38 = vadd.f32 %v1269_v12, %v1268_v31 }
 0x19d   :  { %v1264_v39 = vadd.f32 %v1263_v35, %v1262_v32  ;;  %v1276_v41 = vadd.f32 %v1275_v37, %v1274_v34  ;;  %v5604_v35 = vmov 1966171168   ;;  %v1567_v37 = vlaneseq }
 0x19e   :  { %v1350_v40 = vmul.f32 0.125, %v1258_v36  ;;  %v1352_v42 = vmul.f32 0.125, %v1270_v38  ;;  %v1565_v36 = vunpack.c.l.s4 %v5604_v35 }
 0x19f   :  { %v1351_v43 = vmul.f32 0.125, %v1264_v39  ;;  %v1353_v44 = vmul.f32 0.125, %v1276_v41 }
 0x1a0   :  { %v5817_v0 = vsub.f32 %v959_v9, %v1350_v40  ;;  %v5819_v45 = vsub.f32 %v1000_v11, %v1352_v42 }
 0x1a1   :  { %v5821_v46 = vsub.f32 %v961_v13, %v1351_v43  ;;  %v5825_v48 = vsub.f32 %v1002_v16, %v1353_v44 }
 0x1a2   :  { %v1382_v47 = vmul.f32 %v5817_v0, %v5817_v0  ;;  %v1384_v49 = vmul.f32 %v5819_v45, %v5819_v45 }
 0x1a3   :  { %v1383_v50 = vmul.f32 %v5821_v46, %v5821_v46  ;;  %v1385_v52 = vmul.f32 %v5825_v48, %v5825_v48 }
 0x1a4   :  { %v1398_v51 = vrot.slane %v1382_v47, 4  ;;  %v1410_v53 = vrot.slane %v1384_v49, 4 }
 0x1a5   :  { %v1404_v54 = vrot.slane %v1383_v50, 4  ;;  %v1416_v56 = vrot.slane %v1385_v52, 4 }
 0x1a6   :  { %v1399_v55 = vadd.f32 %v1398_v51, %v1382_v47  ;;  %v1411_v57 = vadd.f32 %v1410_v53, %v1384_v49 }
 0x1a7   :  { %v1405_v58 = vadd.f32 %v1404_v54, %v1383_v50  ;;  %v1417_v60 = vadd.f32 %v1416_v56, %v1385_v52  ;;  %v1566_v50 = vunpack.c.0.s8 %v1565_v36  ;;  %v5833_v52 = vshrl.u32 %v1567_v37, 7 }
 0x1a8   :  { %v1400_v59 = vrot.slane %v1399_v55, 2  ;;  %v1412_v61 = vrot.slane %v1411_v57, 2 }
 0x1a9   :  { %v1406_v62 = vrot.slane %v1405_v58, 2  ;;  %v1418_v1 = vrot.slane %v1417_v60, 2 }
 0x1aa   :  { %v1401_v63 = vadd.f32 %v1400_v59, %v1399_v55  ;;  %v1413_v2 = vadd.f32 %v1412_v61, %v1411_v57 }
 0x1ab   :  { %v1407_v3 = vadd.f32 %v1406_v62, %v1405_v58  ;;  %v1419_v5 = vadd.f32 %v1418_v1, %v1417_v60 }
 0x1ac   :  { %v1402_v4 = vrot.slane %v1401_v63, 1  ;;  %v1414_v6 = vrot.slane %v1413_v2, 1 }
 0x1ad   :  { %v1408_v7 = vrot.slane %v1407_v3, 1  ;;  %v1420_v9 = vrot.slane %v1419_v5, 1 }
 0x1ae   :  { %v1403_v8 = vadd.f32 %v1402_v4, %v1401_v63  ;;  %v1415_v10 = vadd.f32 %v1414_v6, %v1413_v2  ;;  %v5836_v63 = vsub.s32 %v1566_v50, %v5833_v52 }
 0x1af   :  { %v1409_v11 = vadd.f32 %v1408_v7, %v1407_v3  ;;  %v1421_v14 = vadd.f32 %v1420_v9, %v1419_v5 }
 0x1b0   :  { %v1494_v13 = vmul.f32 0.125, %v1403_v8  ;;  %v1496_v15 = vmul.f32 0.125, %v1415_v10 }
 0x1b1   :  { %v1495_v16 = vmul.f32 0.125, %v1409_v11  ;;  %v1041_v17 = vpop.f32.mrb[4].mxu0  ;;  %v1497_v19 = vmul.f32 0.125, %v1421_v14  ;;  %v1082_v21 = vpop.f32.mrb[4].mxu1 }
 0x1b2   :  { %v1512_v18 = vadd.f32 1e-05, %v1494_v13  ;;  %v1277_v20 = vrot.slane %v1041_v17, 4  ;;  %v1043_v22 = vpop.f32.mrb[5].mxu0  ;;  %v1514_v23 = vadd.f32 1e-05, %v1496_v15 }
 0x1b3   :  { %v1513_v24 = vadd.f32 1e-05, %v1495_v16  ;;  %v1289_v25 = vrot.slane %v1082_v21, 4  ;;  %v1283_v26 = vrot.slane %v1043_v22, 4  ;;  %v1515_v27 = vadd.f32 1e-05, %v1497_v19 }
 0x1b4   :  { %5291 = vrsqrt.f32 %v1512_v18  ;;  %v1278_v28 = vadd.f32 %v1277_v20, %v1041_v17  ;;  %v1084_v29 = vpop.f32.mrb[5].mxu1  ;;  %v1045_v30 = vpop.f32.mrb[6].mxu0 }
 0x1b5   :  { %5293 = vrsqrt.f32 %v1514_v23  ;;  %v1290_v31 = vadd.f32 %v1289_v25, %v1082_v21  ;;  %v1284_v32 = vadd.f32 %v1283_v26, %v1043_v22  ;;  %v1295_v33 = vrot.slane %v1084_v29, 4  ;;  %v1086_v34 = vpop.f32.mrb[6].mxu1  ;;  %v1046_v12 = vpop.f32.mrb[7].mxu0 }
 0x1b6   :  { %5295 = vrsqrt.f32 %v1513_v24  ;;  %v1279_v38 = vrot.slane %v1278_v28, 2  ;;  %v1087_v39 = vpop.f32.mrb[7].mxu1 }
 0x1b7   :  { %5297 = vrsqrt.f32 %v1515_v27  ;;  %v1291_v40 = vrot.slane %v1290_v31, 2  ;;  %v1285_v41 = vrot.slane %v1284_v32, 2  ;;  %v1296_v42 = vadd.f32 %v1295_v33, %v1084_v29 }
 0x1b8   :  { %v1280_v43 = vadd.f32 %v1279_v38, %v1278_v28 }
 0x1b9   :  { %v1292_v44 = vadd.f32 %v1291_v40, %v1290_v31  ;;  %v1286_v47 = vadd.f32 %v1285_v41, %v1284_v32  ;;  %v1297_v49 = vrot.slane %v1296_v42, 2 }
 0x1ba   :  { %v1281_v51 = vrot.slane %v1280_v43, 1 }
 0x1bb   :  { %v1293_v53 = vrot.slane %v1292_v44, 1  ;;  %v1287_v54 = vrot.slane %v1286_v47, 1  ;;  %v1298_v55 = vadd.f32 %v1297_v49, %v1296_v42 }
 0x1bc   :  { %v1282_v56 = vadd.f32 %v1281_v51, %v1280_v43 }
 0x1bd   :  { %v1294_v57 = vadd.f32 %v1293_v53, %v1292_v44  ;;  %v1288_v58 = vadd.f32 %v1287_v54, %v1286_v47  ;;  %v1299_v59 = vrot.slane %v1298_v55, 1 }
 0x1be   :  { %v5292_v60 = vpop.eup %5291  ;;  %v1354_v61 = vmul.f32 0.125, %v1282_v56 }
 0x1bf   :  { %v5294_v62 = vpop.eup %5293  ;;  %v1356_v1 = vmul.f32 0.125, %v1294_v57  ;;  %v1355_v2 = vmul.f32 0.125, %v1288_v58  ;;  %v1300_v3 = vadd.f32 %v1299_v59, %v1298_v55 }
 0x1c0   :  { %v5296_v4 = vpop.eup %5295  ;;  %v5838_v5 = vsub.f32 %v1041_v17, %v1354_v61 }
 0x1c1   :  { %v5298_v6 = vpop.eup %5297  ;;  %v1560_v7 = vcombine.low %v5292_v60, %v5296_v4  ;;  %v5840_v8 = vsub.f32 %v1082_v21, %v1356_v1  ;;  %v5842_v9 = vsub.f32 %v1043_v22, %v1355_v2  ;;  %v1357_v10 = vmul.f32 0.125, %v1300_v3 }
 0x1c2   :  { %v1561_v11 = vcombine.low %v5294_v62, %v5298_v6  ;;  %v1386_v13 = vmul.f32 %v5838_v5, %v5838_v5 }
 0x1c3   :  { %v5847_v14 = vrot.slane %v1560_v7, %v5836_v63  ;;  %v1388_v15 = vmul.f32 %v5840_v8, %v5840_v8  ;;  %v1387_v16 = vmul.f32 %v5842_v9, %v5842_v9  ;;  %v5853_v17 = vsub.f32 %v1084_v29, %v1357_v10 }
 0x1c4   :  { %v5856_v18 = vrot.slane %v1561_v11, %v5836_v63  ;;  %v1422_v19 = vrot.slane %v1386_v13, 4 }
 0x1c5   :  { %v1434_v20 = vrot.slane %v1388_v15, 4  ;;  %v1428_v21 = vrot.slane %v1387_v16, 4  ;;  %v1389_v22 = vmul.f32 %v5853_v17, %v5853_v17 }
 0x1c6   :  { %v1592_v23 = vcombine.low %v5847_v14, %v5856_v18  ;;  %v1423_v24 = vadd.f32 %v1422_v19, %v1386_v13 }
 0x1c7   :  { %v1435_v25 = vadd.f32 %v1434_v20, %v1388_v15  ;;  %v1429_v26 = vadd.f32 %v1428_v21, %v1387_v16  ;;  %v1440_v27 = vrot.slane %v1389_v22, 4 }
 0x1c8   :  { %v1424_v28 = vrot.slane %v1423_v24, 2 }
 0x1c9   :  { %v1436_v30 = vrot.slane %v1435_v25, 2  ;;  %v1430_v29 = vrot.slane %v1429_v26, 2  ;;  %v1441_v31 = vadd.f32 %v1440_v27, %v1389_v22 }
 0x1ca   :  { %v1425_v32 = vadd.f32 %v1424_v28, %v1423_v24 }
 0x1cb   :  { %v1437_v33 = vadd.f32 %v1436_v30, %v1435_v25  ;;  %v1431_v34 = vadd.f32 %v1430_v29, %v1429_v26  ;;  %v1442_v12 = vrot.slane %v1441_v31, 2 }
 0x1cc   :  { %v1426_v35 = vrot.slane %v1425_v32, 1 }
 0x1cd   :  { %v1438_v36 = vrot.slane %v1437_v33, 1  ;;  %v1432_v37 = vrot.slane %v1431_v34, 1  ;;  %v1443_v38 = vadd.f32 %v1442_v12, %v1441_v31 }
 0x1ce   :  { %v1427_v39 = vadd.f32 %v1426_v35, %v1425_v32 }
 0x1cf   :  { %v1439_v40 = vadd.f32 %v1438_v36, %v1437_v33  ;;  %v1433_v41 = vadd.f32 %v1432_v37, %v1431_v34  ;;  %v1444_v42 = vrot.slane %v1443_v38, 1 }
 0x1d0   :  { %v1498_v43 = vmul.f32 0.125, %v1427_v39 }
 0x1d1   :  { %v1500_v44 = vmul.f32 0.125, %v1439_v40  ;;  %v1499_v47 = vmul.f32 0.125, %v1433_v41  ;;  %v1445_v49 = vadd.f32 %v1444_v42, %v1443_v38  ;;  %v1123_v50 = vpop.f32.mrb[8].mxu0  ;;  %v1164_v54 = vpop.f32.mrb[8].mxu1 }
 0x1d2   :  { %v1516_v51 = vadd.f32 1e-05, %v1498_v43  ;;  %v1301_v53 = vrot.slane %v1123_v50, 4  ;;  %v1125_v55 = vpop.f32.mrb[9].mxu0  ;;  %v1313_v59 = vrot.slane %v1164_v54, 4  ;;  %v1166_v62 = vpop.f32.mrb[9].mxu1 }
 0x1d3   :  { %v1518_v56 = vadd.f32 1e-05, %v1500_v44  ;;  %v1517_v57 = vadd.f32 1e-05, %v1499_v47  ;;  %v1501_v58 = vmul.f32 0.125, %v1445_v49  ;;  %v1307_v61 = vrot.slane %v1125_v55, 4 }
 0x1d4   :  { %5299 = vrsqrt.f32 %v1516_v51  ;;  %v1302_v60 = vadd.f32 %v1301_v53, %v1123_v50  ;;  %v1127_v1 = vpop.f32.mrb[10].mxu0  ;;  %v1314_v3 = vadd.f32 %v1313_v59, %v1164_v54  ;;  %v1319_v4 = vrot.slane %v1166_v62, 4  ;;  %v1168_v6 = vpop.f32.mrb[10].mxu1  ;;  %v5870_v51 = vld [vmem:[#allocation8] sm:$0xff] }
 0x1d5   :  { %5301 = vrsqrt.f32 %v1518_v56  ;;  %v1519_v2 = vadd.f32 1e-05, %v1501_v58  ;;  %v1128_v7 = vpop.f32.mrb[11].mxu0  ;;  %v1308_v11 = vadd.f32 %v1307_v61, %v1125_v55  ;;  %v1169_v13 = vpop.f32.mrb[11].mxu1  ;;  %v5882_v58 = vsub.s32 7, %v5833_v52 }
 0x1d6   :  { %5303 = vrsqrt.f32 %v1517_v57  ;;  %v1303_v10 = vrot.slane %v1302_v60, 2  ;;  %v1315_v15 = vrot.slane %v1314_v3, 2  ;;  %v1320_v16 = vadd.f32 %v1319_v4, %v1166_v62 }
 0x1d7   :  { %5305 = vrsqrt.f32 %v1519_v2  ;;  %v1309_v20 = vrot.slane %v1308_v11, 2  ;;  %v5878_v57 = vsub.s32 1, %v5833_v52  ;;  %v5891_v1 = vsub.s32 0, %v5833_v52 }
 0x1d8   :  { %v1304_v19 = vadd.f32 %v1303_v10, %v1302_v60  ;;  %v1316_v21 = vadd.f32 %v1315_v15, %v1314_v3  ;;  %v1321_v22 = vrot.slane %v1320_v16, 2  ;;  %v1795_v6 = vrot.slane %v5870_v51, %v5882_v58 }
 0x1d9   :  { %v1310_v25 = vadd.f32 %v1309_v20, %v1308_v11  ;;  %v5896_v11 = vsub.s32 6, %v5833_v52  ;;  %v5899_v13 = vsub.s32 3, %v5833_v52  ;;  %v1600_v15 = vrot.slane %v1592_v23, %v5836_v63 }
 0x1da   :  { %v1305_v24 = vrot.slane %v1304_v19, 1  ;;  %v1317_v26 = vrot.slane %v1316_v21, 1  ;;  %v1322_v27 = vadd.f32 %v1321_v22, %v1320_v16 }
 0x1db   :  { %v1311_v30 = vrot.slane %v1310_v25, 1  ;;  %v1779_v23 = vrot.slane %v5870_v51, %v5899_v13 }
 0x1dc   :  { %v1306_v28 = vadd.f32 %v1305_v24, %v1304_v19  ;;  %v1318_v29 = vadd.f32 %v1317_v26, %v1316_v21  ;;  %v1323_v31 = vrot.slane %v1322_v27, 1  ;;  %v1510_v21 = vld [vmem:[#allocation7] sm:$0xff]  ;;  %v1791_v26 = vrot.slane %v5870_v51, %v5896_v11 }
 0x1dd   :  { %v1312_v34 = vadd.f32 %v1311_v30, %v1310_v25  ;;  %v1767_v25 = vrot.slane %v5870_v51, %v5891_v1 }
 0x1de   :  { %v5300_v32 = vpop.eup %5299  ;;  %v1358_v33 = vmul.f32 0.125, %v1306_v28  ;;  %v1360_v35 = vmul.f32 0.125, %v1318_v29  ;;  %v1324_v36 = vadd.f32 %v1323_v31, %v1322_v27  ;;  %v5911_v29 = vsub.s32 2, %v5833_v52 }
 0x1df   :  { %v5302_v12 = vpop.eup %5301  ;;  %v1359_v39 = vmul.f32 0.125, %v1312_v34  ;;  %v5916_v31 = vsub.s32 5, %v5833_v52 }
 0x1e0   :  { %v5304_v37 = vpop.eup %5303  ;;  %v5862_v38 = vsub.f32 %v1123_v50, %v1358_v33  ;;  %v5864_v42 = vsub.f32 %v1164_v54, %v1360_v35  ;;  %v1361_v43 = vmul.f32 0.125, %v1324_v36 }
 0x1e1   :  { %v5306_v40 = vpop.eup %5305  ;;  %v1562_v41 = vcombine.low %v5300_v32, %v5304_v37  ;;  %v5868_v49 = vsub.f32 %v1125_v55, %v1359_v39  ;;  %v1775_v37 = vrot.slane %v5870_v51, %v5911_v29  ;;  %v1787_v39 = vrot.slane %v5870_v51, %v5916_v31 }
 0x1e2   :  { %v1563_v44 = vcombine.low %v5302_v12, %v5306_v40  ;;  %v1390_v47 = vmul.f32 %v5862_v38, %v5862_v38  ;;  %v1392_v50 = vmul.f32 %v5864_v42, %v5864_v42  ;;  %v5875_v56 = vsub.f32 %v1166_v62, %v1361_v43 }
 0x1e3   :  { %v1584_v53 = vrot.slane %v1562_v41, %v5836_v63  ;;  %v1391_v55 = vmul.f32 %v5868_v49, %v5868_v49  ;;  %v1771_v62 = vrot.slane %v5870_v51, %v5878_v57  ;;  %v5921_v12 = vsub.s32 4, %v5833_v52 }
 0x1e4   :  { %v1591_v54 = vrot.slane %v1563_v44, %v5836_v63  ;;  %v1446_v59 = vrot.slane %v1390_v47, 4  ;;  %v1458_v60 = vrot.slane %v1392_v50, 4  ;;  %v1393_v61 = vmul.f32 %v5875_v56, %v5875_v56 }
 0x1e5   :  { %v1452_v4 = vrot.slane %v1391_v55, 4 }
 0x1e6   :  { %v1593_v2 = vcombine.low %v1584_v53, %v1591_v54  ;;  %v1447_v3 = vadd.f32 %v1446_v59, %v1390_v47  ;;  %v1459_v7 = vadd.f32 %v1458_v60, %v1392_v50  ;;  %v1464_v10 = vrot.slane %v1393_v61, 4 }
 0x1e7   :  { %v1453_v20 = vadd.f32 %v1452_v4, %v1391_v55 }
 0x1e8   :  { %v1607_v16 = vrot.slane %v1593_v2, %v5836_v63  ;;  %v1448_v19 = vrot.slane %v1447_v3, 2  ;;  %v1460_v22 = vrot.slane %v1459_v7, 2  ;;  %v1465_v24 = vadd.f32 %v1464_v10, %v1393_v61 }
 0x1e9   :  { %v1454_v30 = vrot.slane %v1453_v20, 2 }
 0x1ea   :  { %v1608_v27 = vcombine.low %v1600_v15, %v1607_v16  ;;  %v1449_v28 = vadd.f32 %v1448_v19, %v1447_v3  ;;  %v1461_v14 = vadd.f32 %v1460_v22, %v1459_v7  ;;  %v1466_v18 = vrot.slane %v1465_v24, 2 }
 0x1eb   :  { %v1455_v34 = vadd.f32 %v1454_v30, %v1453_v20 }
 0x1ec   :  { %v5918_v32 = vmul.f32 %v1608_v27, %v1510_v21  ;;  %v1450_v33 = vrot.slane %v1449_v28, 1  ;;  %v1462_v35 = vrot.slane %v1461_v14, 1  ;;  %v1467_v36 = vadd.f32 %v1466_v18, %v1465_v24 }
 0x1ed   :  { %v1456_v43 = vrot.slane %v1455_v34, 1 }
 0x1ee   :  { %v1695_v40 = vrot.slane %v5918_v32, %v5882_v58  ;;  %v1451_v41 = vadd.f32 %v1450_v33, %v1449_v28  ;;  %v1671_v44 = vrot.slane %v5918_v32, %v5878_v57  ;;  %v1463_v47 = vadd.f32 %v1462_v35, %v1461_v14 }
 0x1ef   :  { %v1468_v53 = vrot.slane %v1467_v36, 1  ;;  %v1667_v52 = vrot.slane %v5918_v32, %v5891_v1  ;;  %v1691_v50 = vrot.slane %v5918_v32, %v5896_v11  ;;  %v1457_v55 = vadd.f32 %v1456_v43, %v1455_v34 }
 0x1f0   :  { %v1751_v54 = vmul.f32 %v1695_v40, %v5853_v17  ;;  %v1502_v59 = vmul.f32 0.125, %v1451_v41  ;;  %v1745_v60 = vmul.f32 %v1671_v44, %v5821_v46  ;;  %v1504_v61 = vmul.f32 0.125, %v1463_v47 }
 0x1f1   :  { %v1469_v2 = vadd.f32 %v1468_v53, %v1467_v36  ;;  %v5937_v3 = vpop.f32.mrb[12].mxu0  ;;  %v1744_v4 = vmul.f32 %v1667_v52, %v5817_v0  ;;  %v1750_v7 = vmul.f32 %v1691_v50, %v5840_v8  ;;  %v1503_v15 = vmul.f32 0.125, %v1457_v55  ;;  %v5942_v19 = vpop.f32.mrb[12].mxu1 }
 0x1f2   :  { %v1520_v10 = vadd.f32 1e-05, %v1502_v59  ;;  %v1325_v16 = vrot.slane %v5937_v3, 4  ;;  %v5944_v20 = vpop.f32.mrb[13].mxu0  ;;  %v1845_v17 = vadd.f32 %v1771_v62, %v1745_v60  ;;  %v1522_v21 = vadd.f32 1e-05, %v1504_v61 }
 0x1f3   :  { %v1505_v22 = vmul.f32 0.125, %v1469_v2  ;;  %v1337_v46 = vrot.slane %v5942_v19, 4  ;;  %v1331_v24 = vrot.slane %v5944_v20, 4  ;;  %v5948_v27 = vpop.f32.mrb[13].mxu1  ;;  %v1521_v0 = vadd.f32 1e-05, %v1503_v15 }
 0x1f4   :  { %5307 = vrsqrt.f32 %v1520_v10  ;;  %v1326_v8 = vadd.f32 %v1325_v16, %v5937_v3  ;;  %v1343_v28 = vrot.slane %v5948_v27, 4  ;;  %v1209_v30 = vpop.f32.mrb[14].mxu0  ;;  %v1250_v14 = vpop.f32.mrb[14].mxu1  ;;  %v1861_v41 = vmax.f32 %v1845_v17, 0.0 }
 0x1f5   :  { %5309 = vrsqrt.f32 %v1522_v21  ;;  %v1523_v18 = vadd.f32 1e-05, %v1505_v22  ;;  %v1338_v62 = vadd.f32 %v1337_v46, %v5942_v19  ;;  %v1332_v33 = vadd.f32 %v1331_v24, %v5944_v20  ;;  %v1210_v34 = vpop.f32.mrb[15].mxu0  ;;  %v1251_v35 = vpop.f32.mrb[15].mxu1  ;;  %v4971_v21 = vld [vmem:[#allocation10 + $0x100] ss:$8 sps:$4 sm:$0xff]  }
 0x1f6   :  { %5311 = vrsqrt.f32 %v1521_v0  ;;  %v1327_v36 = vrot.slane %v1326_v8, 2  ;;  %v1344_v40 = vadd.f32 %v1343_v28, %v5948_v27  ;;  %v1851_v47 = vadd.f32 %v1795_v6, %v1751_v54  ;;  %v4974_v24 = vld [vmem:[#allocation10 + $0x400] ss:$8 sps:$4 sm:$0xff]   ;;  %v4979_v28 = vld [vmem:[#allocation10 + $0x114] ss:$8 sps:$4 sm:$0xff]  }
 0x1f7   :  { %5313 = vrsqrt.f32 %v1523_v18  ;;  %v1339_v43 = vrot.slane %v1338_v62, 2  ;;  %v1333_v44 = vrot.slane %v1332_v33, 2  ;;  %v1877_v50 = vpack.c.bf16 %v1861_v41, %v1861_v41  ;;  %v4982_v14 = vld [vmem:[#allocation10 + $0x414] ss:$8 sps:$4 sm:$0xff]  }
 0x1f8   :  { %v1328_v53 = vadd.f32 %v1327_v36, %v1326_v8  ;;  %v1345_v52 = vrot.slane %v1344_v40, 2  ;;  %v1844_v59 = vadd.f32 %v1767_v25, %v1744_v4  ;;  %v1867_v61 = vmax.f32 %v1851_v47, 0.0 }
 0x1f9   :  { %v1340_v55 = vadd.f32 %v1339_v43, %v1338_v62  ;;  %v1334_v60 = vadd.f32 %v1333_v44, %v1332_v33  ;;  %v1850_v2 = vadd.f32 %v1791_v26, %v1750_v7  ;;  %3460 = vmatprep.mubr.bf16.mxu1 %v1877_v50  ;;  %v1679_v6 = vrot.slane %v5918_v32, %v5899_v13  ;;  %v4977_v43 = vld [vmem:[#allocation10 + $0x110] ss:$8 sps:$4 sm:$0xff]  }
 0x1fa   :  { %v1329_v10 = vrot.slane %v1328_v53, 1  ;;  %v1346_v15 = vadd.f32 %v1345_v52, %v1344_v40  ;;  %v1860_v16 = vmax.f32 %v1844_v59, 0.0  ;;  %v1883_v22 = vpack.c.bf16 %v1867_v61, %v1867_v61  ;;  %v4980_v59 = vld [vmem:[#allocation10 + $0x410] ss:$8 sps:$4 sm:$0xff]  }
 0x1fb   :  { %v1341_v54 = vrot.slane %v1340_v55, 1  ;;  %v1335_v17 = vrot.slane %v1334_v60, 1  ;;  %v1866_v46 = vmax.f32 %v1850_v2, 0.0  ;;  %v1747_v8 = vmul.f32 %v1679_v6, %v5825_v48 }
 0x1fc   :  { %v1330_v25 = vadd.f32 %v1329_v10, %v1328_v53  ;;  %v1347_v4 = vrot.slane %v1346_v15, 1  ;;  %v1876_v0 = vpack.c.bf16 %v1860_v16, %v1860_v16  ;;  %3583 = vmatprep.mubr.bf16.mxu0 %v1883_v22  ;;  %v1675_v18 = vrot.slane %v5918_v32, %v5911_v29  ;;  %v4988_v10 = vld [vmem:[#allocation10 + $0x424] ss:$8 sps:$4 sm:$0xff]  }
 0x1fd   :  { %v1342_v26 = vadd.f32 %v1341_v54, %v1340_v55  ;;  %v1336_v7 = vadd.f32 %v1335_v17, %v1334_v60  ;;  %v1882_v30 = vpack.c.bf16 %v1866_v46, %v1866_v46  ;;  %v1847_v35 = vadd.f32 %v1779_v23, %v1747_v8  ;;  %v4986_v46 = vld [vmem:[#allocation10 + $0x420] ss:$8 sps:$4 sm:$0xff]   ;;  %v4994_v8 = vld [vmem:[#allocation10 + $0x434] ss:$8 sps:$4 sm:$0xff]  }
 0x1fe   :  { %v5308_v62 = vpop.eup %5307  ;;  %v1362_v33 = vmul.f32 0.125, %v1330_v25  ;;  %v1348_v34 = vadd.f32 %v1347_v4, %v1346_v15  ;;  %3461 = vmatmul.mubr.bf16.vlgmr.msra.gmra.mrb[16].mxu1 %v1876_v0  ;;  %v1687_v48 = vrot.slane %v5918_v32, %v5916_v31  ;;  %v1746_v44 = vmul.f32 %v1675_v18, %v5819_v45  ;;  %v4991_v25 = vld [vmem:[#allocation10 + $0x134] ss:$8 sps:$4 sm:$0xff]  }
 0x1ff   :  { %v5310_v36 = vpop.eup %5309  ;;  %v1364_v40 = vmul.f32 0.125, %v1342_v26  ;;  %v1363_v41 = vmul.f32 0.125, %v1336_v7  ;;  %3470 = vmatpush1.bf16.msra.mxu1 %v4971_v21  ;;  %3584 = vmatmul.mubr.bf16.vlgmr.msra.gmra.mrb[16].mxu0 %v1882_v30  ;;  %v1683_v47 = vrot.slane %v5918_v32, %v5921_v12  ;;  %v1863_v23 = vmax.f32 %v1847_v35, 0.0  ;;  %v4985_v32 = vld [vmem:[#allocation10 + $0x124] ss:$8 sps:$4 sm:$0xff]  }
 0x200   :  { %v5312_v53 = vpop.eup %5311  ;;  %v5978_v52 = vsub.f32 %v5937_v3, %v1362_v33  ;;  %v1365_v50 = vmul.f32 0.125, %v1348_v34  ;;  %3593 = vmatpush1.bf16.msra.mxu0 %v4974_v24  ;;  %3471 = vmatprep.subr.bf16.mxu1 %v4979_v28  ;;  %v1749_v55 = vmul.f32 %v1687_v48, %v5842_v9  ;;  %v5990_v3 = vadd.f32 %v1775_v37, %v1746_v44  ;;  %v4983_v37 = vld [vmem:[#allocation10 + $0x120] ss:$8 sps:$4 sm:$0xff]   ;;  %v4992_v34 = vld [vmem:[#allocation10 + $0x430] ss:$8 sps:$4 sm:$0xff]  }
 0x201   :  { %v5314_v60 = vpop.eup %5313  ;;  %v1609_v61 = vcombine.low %v5308_v62, %v5312_v53  ;;  %v5982_v2 = vsub.f32 %v5942_v19, %v1364_v40  ;;  %v5985_v45 = vsub.f32 %v5944_v20, %v1363_v41  ;;  %3594 = vmatprep.subr.bf16.mxu0 %v4982_v14  ;;  %v1879_v19 = vpack.c.bf16 %v1863_v23, %v1863_v23  ;;  %v4989_v62 = vld [vmem:[#allocation10 + $0x130] ss:$8 sps:$4 sm:$0xff]   ;;  %v4997_v35 = vld [vmem:[#allocation10 + $0x144] ss:$8 sps:$4 sm:$0xff]   ;;  %v4998_v23 = vld [vmem:[#allocation10 + $0x440] ss:$8 sps:$4 sm:$0xff]  }
 0x202   :  { %v1610_v15 = vcombine.low %v5310_v36, %v5314_v60  ;;  %v1394_v9 = vmul.f32 %v5978_v52, %v5978_v52  ;;  %v5995_v16 = vsub.f32 %v5948_v27, %v1365_v50  ;;  %v1783_v17 = vrot.slane %v5870_v51, %v5921_v12 }
 0x203   :  { %v5998_v6 = vrot.slane %v1609_v61, %v5836_v63  ;;  %v1396_v20 = vmul.f32 %v5982_v2, %v5982_v2  ;;  %v1395_v54 = vmul.f32 %v5985_v45, %v5985_v45  ;;  %3472 = vmatpush1.bf16.msra.mxu1 %v4977_v43  ;;  %3501 = vmatprep.mubr.bf16.mxu1 %v1879_v19  ;;  %v5006_v61 = vld [vmem:[#allocation10 + $0x454] ss:$8 sps:$4 sm:$0xff]   ;;  %v5001_v19 = vld [vmem:[#allocation10 + $0x150] ss:$8 sps:$4 sm:$0xff]  }
 0x204   :  { %v6007_v21 = vrot.slane %v1610_v15, %v5836_v63  ;;  %v1470_v27 = vrot.slane %v1394_v9, 4  ;;  %v1397_v22 = vmul.f32 %v5995_v16, %v5995_v16  ;;  %3595 = vmatpush1.bf16.msra.mxu0 %v4980_v59  ;;  %v6014_v4 = vadd.f32 %v1787_v39, %v1749_v55  ;;  %3473 = vmatprep.subr.bf16.mxu1 %v4985_v32  ;;  %v5003_v59 = vld [vmem:[#allocation10 + $0x154] ss:$8 sps:$4 sm:$0xff]  }
 0x205   :  { %v1482_v24 = vrot.slane %v1396_v20, 4  ;;  %v1476_v0 = vrot.slane %v1395_v54, 4  ;;  %3596 = vmatprep.subr.bf16.mxu0 %v4988_v10  ;;  %v1748_v28 = vmul.f32 %v1683_v47, %v5838_v5  ;;  %v5000_v5 = vld [vmem:[#allocation10 + $0x444] ss:$8 sps:$4 sm:$0xff]   ;;  %v4995_v47 = vld [vmem:[#allocation10 + $0x140] ss:$8 sps:$4 sm:$0xff]  }
 0x206   :  { %v1641_v26 = vcombine.low %v5998_v6, %v6007_v21  ;;  %v1471_v7 = vadd.f32 %v1470_v27, %v1394_v9  ;;  %v1488_v30 = vrot.slane %v1397_v22, 4  ;;  %v5046_v6 = vld [vmem:[#allocation10 + $0x4c0] ss:$8 sps:$4 sm:$0xff]   ;;  %v5051_v21 = vld [vmem:[#allocation10 + $0x1d4] ss:$8 sps:$4 sm:$0xff]  }
 0x207   :  { %v1483_v14 = vadd.f32 %v1482_v24, %v1396_v20  ;;  %v1477_v18 = vadd.f32 %v1476_v0, %v1395_v54  ;;  %3474 = vmatpush1.bf16.msra.mxu1 %v4983_v37  ;;  %v6019_v33 = vadd.f32 %v1783_v17, %v1748_v28  ;;  %v5004_v37 = vld [vmem:[#allocation10 + $0x450] ss:$8 sps:$4 sm:$0xff]   ;;  %v5009_v17 = vld [vmem:[#allocation10 + $0x164] ss:$8 sps:$4 sm:$0xff]   ;;  %v5007_v28 = vld [vmem:[#allocation10 + $0x160] ss:$8 sps:$4 sm:$0xff]  }
 0x208   :  { %v1472_v51 = vrot.slane %v1471_v7, 2  ;;  %v1489_v39 = vadd.f32 %v1488_v30, %v1397_v22  ;;  %3597 = vmatpush1.bf16.msra.mxu0 %v4986_v46  ;;  %3475 = vmatprep.subr.bf16.mxu1 %v4991_v25  ;;  %v5012_v46 = vld [vmem:[#allocation10 + $0x464] ss:$8 sps:$4 sm:$0xff]   ;;  %v5010_v30 = vld [vmem:[#allocation10 + $0x460] ss:$8 sps:$4 sm:$0xff]  }
 0x209   :  { %v1484_v48 = vrot.slane %v1483_v14, 2  ;;  %v1478_v36 = vrot.slane %v1477_v18, 2  ;;  %3598 = vmatprep.subr.bf16.mxu0 %v4994_v8 }
 0x20a   :  { %v1473_v40 = vadd.f32 %v1472_v51, %v1471_v7  ;;  %v1490_v41 = vrot.slane %v1489_v39, 2  ;;  %v5016_v51 = vld [vmem:[#allocation10 + $0x470] ss:$8 sps:$4 sm:$0xff]  }
 0x20b   :  { %v1485_v43 = vadd.f32 %v1484_v48, %v1483_v14  ;;  %v1479_v44 = vadd.f32 %v1478_v36, %v1477_v18  ;;  %3476 = vmatpush1.bf16.msra.mxu1 %v4989_v62  ;;  %v5015_v14 = vld [vmem:[#allocation10 + $0x174] ss:$8 sps:$4 sm:$0xff]   ;;  %v5013_v62 = vld [vmem:[#allocation10 + $0x170] ss:$8 sps:$4 sm:$0xff]   ;;  %v5022_v48 = vld [vmem:[#allocation10 + $0x480] ss:$8 sps:$4 sm:$0xff]  }
 0x20c   :  { %v1474_v53 = vrot.slane %v1473_v40, 1  ;;  %v1491_v50 = vadd.f32 %v1490_v41, %v1489_v39  ;;  %3599 = vmatpush1.bf16.msra.mxu0 %v4992_v34  ;;  %3477 = vmatprep.subr.bf16.mxu1 %v4997_v35  ;;  %v5018_v18 = vld [vmem:[#allocation10 + $0x474] ss:$8 sps:$4 sm:$0xff]   ;;  %v5021_v39 = vld [vmem:[#allocation10 + $0x184] ss:$8 sps:$4 sm:$0xff]  }
 0x20d   :  { %v1486_v55 = vrot.slane %v1485_v43, 1  ;;  %v1480_v60 = vrot.slane %v1479_v44, 1  ;;  %3600 = vmatprep.subr.bf16.mxu0 %v5000_v5  ;;  %v5024_v34 = vld [vmem:[#allocation10 + $0x484] ss:$8 sps:$4 sm:$0xff]   ;;  %v5019_v35 = vld [vmem:[#allocation10 + $0x180] ss:$8 sps:$4 sm:$0xff]  }
 0x20e   :  { %v1475_v32 = vadd.f32 %v1474_v53, %v1473_v40  ;;  %v1492_v10 = vrot.slane %v1491_v50, 1  ;;  %v5027_v36 = vld [vmem:[#allocation10 + $0x194] ss:$8 sps:$4 sm:$0xff]   ;;  %v5033_v53 = vld [vmem:[#allocation10 + $0x1a4] ss:$8 sps:$4 sm:$0xff]  }
 0x20f   :  { %v1487_v15 = vadd.f32 %v1486_v55, %v1485_v43  ;;  %v1481_v9 = vadd.f32 %v1480_v60, %v1479_v44  ;;  %3478 = vmatpush1.bf16.msra.mxu1 %v4995_v47  ;;  %v5030_v5 = vld [vmem:[#allocation10 + $0x494] ss:$8 sps:$4 sm:$0xff]   ;;  %v5025_v43 = vld [vmem:[#allocation10 + $0x190] ss:$8 sps:$4 sm:$0xff]  }
 0x210   :  { %v1506_v20 = vmul.f32 0.125, %v1475_v32  ;;  %v1493_v54 = vadd.f32 %v1492_v10, %v1491_v50  ;;  %3601 = vmatpush1.bf16.msra.mxu0 %v4998_v23  ;;  %3479 = vmatprep.subr.bf16.mxu1 %v5003_v59  ;;  %v5028_v47 = vld [vmem:[#allocation10 + $0x490] ss:$8 sps:$4 sm:$0xff]   ;;  %v5036_v59 = vld [vmem:[#allocation10 + $0x4a4] ss:$8 sps:$4 sm:$0xff]  }
 0x211   :  { %v1508_v27 = vmul.f32 0.125, %v1487_v15  ;;  %v1507_v22 = vmul.f32 0.125, %v1481_v9  ;;  %3602 = vmatprep.subr.bf16.mxu0 %v5006_v61  ;;  %v5031_v61 = vld [vmem:[#allocation10 + $0x1a0] ss:$8 sps:$4 sm:$0xff]   ;;  %v5039_v15 = vld [vmem:[#allocation10 + $0x1b4] ss:$8 sps:$4 sm:$0xff]  }
 0x212   :  { %v1524_v25 = vadd.f32 1e-05, %v1506_v20  ;;  %v1509_v24 = vmul.f32 0.125, %v1493_v54  ;;  %v5034_v10 = vld [vmem:[#allocation10 + $0x4a0] ss:$8 sps:$4 sm:$0xff]   ;;  %v1649_v54 = vrot.slane %v1641_v26, %v5836_v63 }
 0x213   :  { %v1526_v0 = vadd.f32 1e-05, %v1508_v27  ;;  %v1525_v8 = vadd.f32 1e-05, %v1507_v22  ;;  %3480 = vmatpush1.bf16.msra.mxu1 %v5001_v19  ;;  %v5042_v9 = vld [vmem:[#allocation10 + $0x4b4] ss:$8 sps:$4 sm:$0xff]  }
 0x214   :  { %5315 = vrsqrt.f32 %v1524_v25  ;;  %v1527_v7 = vadd.f32 1e-05, %v1509_v24  ;;  %3603 = vmatpush1.bf16.msra.mxu0 %v5004_v37  ;;  %3481 = vmatprep.subr.bf16.mxu1 %v5009_v17  ;;  %v5037_v20 = vld [vmem:[#allocation10 + $0x1b0] ss:$8 sps:$4 sm:$0xff]   ;;  %v5045_v27 = vld [vmem:[#allocation10 + $0x1c4] ss:$8 sps:$4 sm:$0xff]  }
 0x215   :  { %5317 = vrsqrt.f32 %v1526_v0  ;;  %3604 = vmatprep.subr.bf16.mxu0 %v5012_v46  ;;  %v5040_v17 = vld [vmem:[#allocation10 + $0x4b0] ss:$8 sps:$4 sm:$0xff]   ;;  %v1511_v46 = vld [vmem:[#allocation7 + $0x8] sm:$0xff] }
 0x216   :  { %5319 = vrsqrt.f32 %v1525_v8  ;;  %v1761_v22 = vld [vmem:[#allocation8 + $0x8] sm:$0xff]  ;;  %v5048_v25 = vld [vmem:[#allocation10 + $0x4c4] ss:$8 sps:$4 sm:$0xff]   ;;  %v5043_v0 = vld [vmem:[#allocation10 + $0x1c0] ss:$8 sps:$4 sm:$0xff]  }
 0x217   :  { %5321 = vrsqrt.f32 %v1527_v7  ;;  %3482 = vmatpush1.bf16.msra.mxu1 %v5007_v28  ;;  %v1803_v8 = vrot.slane %v1761_v22, %v5878_v57  ;;  %v1799_v28 = vrot.slane %v1761_v22, %v5891_v1  ;;  %v1811_v26 = vrot.slane %v1761_v22, %v5899_v13 }
 0x218   :  { %3605 = vmatpush1.bf16.msra.mxu0 %v5010_v30  ;;  %3483 = vmatprep.subr.bf16.mxu1 %v5015_v14  ;;  %v1807_v30 = vrot.slane %v1761_v22, %v5911_v29  ;;  %v5054_v14 = vld [vmem:[#allocation10 + $0x4d4] ss:$8 sps:$4 sm:$0xff]  }
 0x219   :  { %3606 = vmatprep.subr.bf16.mxu0 %v5018_v18  ;;  %v1819_v18 = vrot.slane %v1761_v22, %v5916_v31 }
 0x21b   :  { %3484 = vmatpush1.bf16.msra.mxu1 %v5013_v62  ;;  %v1815_v62 = vrot.slane %v1761_v22, %v5921_v12 }
 0x21c   :  { %3607 = vmatpush1.bf16.msra.mxu0 %v5016_v51  ;;  %3485 = vmatprep.subr.bf16.mxu1 %v5021_v39  ;;  %v1827_v51 = vrot.slane %v1761_v22, %v5882_v58  ;;  %v1823_v39 = vrot.slane %v1761_v22, %v5896_v11  ;;  %v5067_v22 = vld [vmem:[#allocation10 + $0x200] ss:$8 sps:$4 sm:$0xff]  }
 0x21d   :  { %3608 = vmatprep.subr.bf16.mxu0 %v5024_v34 }
 0x21e   :  { %v5316_v40 = vpop.eup %5315 }
 0x21f   :  { %v5318_v41 = vpop.eup %5317  ;;  %3486 = vmatpush1.bf16.msra.mxu1 %v5019_v35 }
 0x220   :  { %v5320_v44 = vpop.eup %5319  ;;  %3609 = vmatpush1.bf16.msra.mxu0 %v5022_v48  ;;  %3487 = vmatprep.subr.bf16.mxu1 %v5027_v36 }
 0x221   :  { %v5322_v50 = vpop.eup %5321  ;;  %v1611_v23 = vcombine.low %v5316_v40, %v5320_v44  ;;  %3610 = vmatprep.subr.bf16.mxu0 %v5030_v5  ;;  %v5049_v5 = vld [vmem:[#allocation10 + $0x1d0] ss:$8 sps:$4 sm:$0xff]  }
 0x222   :  { %v1612_v55 = vcombine.low %v5318_v41, %v5322_v50 }
 0x223   :  { %v1633_v60 = vrot.slane %v1611_v23, %v5836_v63  ;;  %3488 = vmatpush1.bf16.msra.mxu1 %v5025_v43  ;;  %v5060_v23 = vld [vmem:[#allocation10 + $0x4e4] ss:$8 sps:$4 sm:$0xff]  }
 0x224   :  { %v1640_v32 = vrot.slane %v1612_v55, %v5836_v63  ;;  %3611 = vmatpush1.bf16.msra.mxu0 %v5028_v47  ;;  %3489 = vmatprep.subr.bf16.mxu1 %v5033_v53  ;;  %v5057_v53 = vld [vmem:[#allocation10 + $0x1e4] ss:$8 sps:$4 sm:$0xff]  }
 0x225   :  { %3612 = vmatprep.subr.bf16.mxu0 %v5036_v59 }
 0x226   :  { %v1642_v19 = vcombine.low %v1633_v60, %v1640_v32  ;;  %v5055_v60 = vld [vmem:[#allocation10 + $0x1e0] ss:$8 sps:$4 sm:$0xff]  }
 0x227   :  { %3490 = vmatpush1.bf16.msra.mxu1 %v5031_v61 }
 0x228   :  { %v1656_v37 = vrot.slane %v1642_v19, %v5836_v63  ;;  %3613 = vmatpush1.bf16.msra.mxu0 %v5034_v10  ;;  %3491 = vmatprep.subr.bf16.mxu1 %v5039_v15  ;;  %v5066_v15 = vld [vmem:[#allocation10 + $0x4f4] ss:$8 sps:$4 sm:$0xff]   ;;  %v5064_v19 = vld [vmem:[#allocation10 + $0x4f0] ss:$8 sps:$4 sm:$0xff]  }
 0x229   :  { %3614 = vmatprep.subr.bf16.mxu0 %v5042_v9  ;;  %v5061_v9 = vld [vmem:[#allocation10 + $0x1f0] ss:$8 sps:$4 sm:$0xff]  }
 0x22a   :  { %v1657_v24 = vcombine.low %v1649_v54, %v1656_v37  ;;  %v5069_v54 = vld [vmem:[#allocation10 + $0x204] ss:$8 sps:$4 sm:$0xff]  }
 0x22b   :  { %3492 = vmatpush1.bf16.msra.mxu1 %v5037_v20  ;;  %v1862_v20 = vmax.f32 %v5990_v3, 0.0  ;;  %v5078_v3 = vld [vmem:[#allocation10 + $0x514] ss:$8 sps:$4 sm:$0xff]  }
 0x22c   :  { %v1661_v7 = vmul.f32 %v1657_v24, %v1511_v46  ;;  %3615 = vmatpush1.bf16.msra.mxu0 %v5040_v17  ;;  %3493 = vmatprep.subr.bf16.mxu1 %v5045_v27  ;;  %v5072_v17 = vld [vmem:[#allocation10 + $0x504] ss:$8 sps:$4 sm:$0xff]   ;;  %v1865_v27 = vmax.f32 %v6014_v4, 0.0 }
 0x22d   :  { %3616 = vmatprep.subr.bf16.mxu0 %v5048_v25  ;;  %v1878_v25 = vpack.c.bf16 %v1862_v20, %v1862_v20  ;;  %v5081_v4 = vld [vmem:[#allocation10 + $0x224] ss:$8 sps:$4 sm:$0xff]  }
 0x22e   :  { %v1727_v34 = vrot.slane %v1661_v7, %v5882_v58  ;;  %v1703_v35 = vrot.slane %v1661_v7, %v5878_v57  ;;  %v1699_v48 = vrot.slane %v1661_v7, %v5891_v1  ;;  %v1711_v36 = vrot.slane %v1661_v7, %v5899_v13  ;;  %v5052_v58 = vld [vmem:[#allocation10 + $0x4d0] ss:$8 sps:$4 sm:$0xff]   ;;  %v5141_v20 = vld [vmem:[#allocation10 + $0x2c4] ss:$8 sps:$4 sm:$0xff]  }
 0x22f   :  { %3494 = vmatpush1.bf16.msra.mxu1 %v5043_v0  ;;  %v1707_v40 = vrot.slane %v1661_v7, %v5911_v29  ;;  %v1719_v41 = vrot.slane %v1661_v7, %v5916_v31  ;;  %v1715_v43 = vrot.slane %v1661_v7, %v5921_v12  ;;  %v1723_v44 = vrot.slane %v1661_v7, %v5896_v11  ;;  %v5075_v0 = vld [vmem:[#allocation10 + $0x214] ss:$8 sps:$4 sm:$0xff]  }
 0x230   :  { %v1759_v47 = vmul.f32 %v1727_v34, %v5995_v16  ;;  %3617 = vmatpush1.bf16.msra.mxu0 %v5046_v6  ;;  %3495 = vmatprep.subr.bf16.mxu1 %v5051_v21  ;;  %v1753_v50 = vmul.f32 %v1703_v35, %v5868_v49  ;;  %v1752_v13 = vmul.f32 %v1699_v48, %v5862_v38  ;;  %v5073_v6 = vld [vmem:[#allocation10 + $0x210] ss:$8 sps:$4 sm:$0xff]   ;;  %v5096_v35 = vld [vmem:[#allocation10 + $0x544] ss:$8 sps:$4 sm:$0xff]   ;;  %v5091_v48 = vld [vmem:[#allocation10 + $0x240] ss:$8 sps:$4 sm:$0xff]  }
 0x231   :  { %3618 = vmatprep.subr.bf16.mxu0 %v5054_v14  ;;  %v1755_v29 = vmul.f32 %v1711_v36, %v5875_v56  ;;  %v1754_v31 = vmul.f32 %v1707_v40, %v5864_v42  ;;  %v1757_v12 = vmul.f32 %v1719_v41, %v5985_v45  ;;  %v1756_v11 = vmul.f32 %v1715_v43, %v5978_v52  ;;  %v5058_v42 = vld [vmem:[#allocation10 + $0x4e0] ss:$8 sps:$4 sm:$0xff]   ;;  %v5063_v56 = vld [vmem:[#allocation10 + $0x1f4] ss:$8 sps:$4 sm:$0xff]   ;;  %v5076_v21 = vld [vmem:[#allocation10 + $0x510] ss:$8 sps:$4 sm:$0xff]  }
 0x232   :  { %v1853_v59 = vadd.f32 %v1803_v8, %v1753_v50  ;;  %v6051_v16 = vadd.f32 %v1827_v51, %v1759_v47  ;;  %v1758_v55 = vmul.f32 %v1723_v44, %v5982_v2  ;;  %v1852_v52 = vadd.f32 %v1799_v28, %v1752_v13  ;;  %v5070_v8 = vld [vmem:[#allocation10 + $0x500] ss:$8 sps:$4 sm:$0xff]   ;;  %v5087_v14 = vld [vmem:[#allocation10 + $0x234] ss:$8 sps:$4 sm:$0xff]   ;;  %v5085_v51 = vld [vmem:[#allocation10 + $0x230] ss:$8 sps:$4 sm:$0xff]  }
 0x233   :  { %3496 = vmatpush1.bf16.msra.mxu1 %v5049_v5  ;;  %v1855_v49 = vadd.f32 %v1811_v26, %v1755_v29  ;;  %v6054_v61 = vadd.f32 %v1807_v30, %v1754_v31  ;;  %v6056_v38 = vadd.f32 %v1819_v18, %v1757_v12  ;;  %v6058_v32 = vadd.f32 %v1815_v62, %v1756_v11  ;;  %v5084_v26 = vld [vmem:[#allocation10 + $0x524] ss:$8 sps:$4 sm:$0xff]   ;;  %v5079_v30 = vld [vmem:[#allocation10 + $0x220] ss:$8 sps:$4 sm:$0xff]   ;;  %v5090_v62 = vld [vmem:[#allocation10 + $0x534] ss:$8 sps:$4 sm:$0xff]  }
 0x234   :  { %3619 = vmatpush1.bf16.msra.mxu0 %v5052_v58  ;;  %3497 = vmatprep.subr.bf16.mxu1 %v5057_v53  ;;  %v1869_v45 = vmax.f32 %v1853_v59, 0.0  ;;  %v6060_v10 = vadd.f32 %v1823_v39, %v1758_v55  ;;  %v1868_v37 = vmax.f32 %v1852_v52, 0.0  ;;  %v1881_v28 = vpack.c.bf16 %v1865_v27, %v1865_v27  ;;  %v5082_v18 = vld [vmem:[#allocation10 + $0x520] ss:$8 sps:$4 sm:$0xff]   ;;  %v5093_v39 = vld [vmem:[#allocation10 + $0x244] ss:$8 sps:$4 sm:$0xff]  }
 0x235   :  { %3620 = vmatprep.subr.bf16.mxu0 %v5060_v23  ;;  %v1871_v46 = vmax.f32 %v1855_v49, 0.0  ;;  %v5088_v34 = vld [vmem:[#allocation10 + $0x530] ss:$8 sps:$4 sm:$0xff]   ;;  %v5099_v36 = vld [vmem:[#allocation10 + $0x254] ss:$8 sps:$4 sm:$0xff]  }
 0x236   :  { %v1885_v2 = vpack.c.bf16 %v1869_v45, %v1869_v45  ;;  %v1884_v24 = vpack.c.bf16 %v1868_v37, %v1868_v37  ;;  %v5094_v5 = vld [vmem:[#allocation10 + $0x540] ss:$8 sps:$4 sm:$0xff]   ;;  %v5102_v40 = vld [vmem:[#allocation10 + $0x554] ss:$8 sps:$4 sm:$0xff]   ;;  %v5097_v41 = vld [vmem:[#allocation10 + $0x250] ss:$8 sps:$4 sm:$0xff]  }
 0x237   :  { %3498 = vmatpush1.bf16.msra.mxu1 %v5055_v60  ;;  %v1887_v7 = vpack.c.bf16 %v1871_v46, %v1871_v46  ;;  %v5105_v43 = vld [vmem:[#allocation10 + $0x264] ss:$8 sps:$4 sm:$0xff]   ;;  %v5100_v44 = vld [vmem:[#allocation10 + $0x550] ss:$8 sps:$4 sm:$0xff]   ;;  %v5103_v58 = vld [vmem:[#allocation10 + $0x260] ss:$8 sps:$4 sm:$0xff]  }
 0x238   :  { %3621 = vmatpush1.bf16.msra.mxu0 %v5058_v42  ;;  %3499 = vmatprep.subr.bf16.mxu1 %v5063_v56  ;;  %v5108_v47 = vld [vmem:[#allocation10 + $0x564] ss:$8 sps:$4 sm:$0xff]   ;;  %v5111_v53 = vld [vmem:[#allocation10 + $0x274] ss:$8 sps:$4 sm:$0xff]   ;;  %v5106_v50 = vld [vmem:[#allocation10 + $0x560] ss:$8 sps:$4 sm:$0xff]  }
 0x239   :  { %3622 = vmatprep.subr.bf16.mxu0 %v5066_v15  ;;  %3624 = vmatprep.mubr.bf16.mxu0 %v1885_v2  ;;  %v5114_v13 = vld [vmem:[#allocation10 + $0x574] ss:$8 sps:$4 sm:$0xff]   ;;  %v5109_v23 = vld [vmem:[#allocation10 + $0x270] ss:$8 sps:$4 sm:$0xff]   ;;  %v5117_v29 = vld [vmem:[#allocation10 + $0x284] ss:$8 sps:$4 sm:$0xff]  }
 0x23a   :  { %v5112_v31 = vld [vmem:[#allocation10 + $0x570] ss:$8 sps:$4 sm:$0xff]   ;;  %v5120_v12 = vld [vmem:[#allocation10 + $0x584] ss:$8 sps:$4 sm:$0xff]   ;;  %v5115_v11 = vld [vmem:[#allocation10 + $0x280] ss:$8 sps:$4 sm:$0xff]  }
 0x23b   :  { %3500 = vmatpush1.bf16.msra.mxu1 %v5061_v9  ;;  %v5123_v59 = vld [vmem:[#allocation10 + $0x294] ss:$8 sps:$4 sm:$0xff]   ;;  %v5118_v55 = vld [vmem:[#allocation10 + $0x580] ss:$8 sps:$4 sm:$0xff]   ;;  %v5121_v49 = vld [vmem:[#allocation10 + $0x290] ss:$8 sps:$4 sm:$0xff]  }
 0x23c   :  { %3623 = vmatpush1.bf16.msra.mxu0 %v5064_v19  ;;  %3510 = vmatprep.subr.bf16.mxu1 %v5069_v54  ;;  %v5126_v60 = vld [vmem:[#allocation10 + $0x594] ss:$8 sps:$4 sm:$0xff]   ;;  %v5129_v42 = vld [vmem:[#allocation10 + $0x2a4] ss:$8 sps:$4 sm:$0xff]   ;;  %v5124_v56 = vld [vmem:[#allocation10 + $0x590] ss:$8 sps:$4 sm:$0xff]  }
 0x23d   :  { %3633 = vmatprep.subr.bf16.mxu0 %v5072_v17  ;;  %v5132_v45 = vld [vmem:[#allocation10 + $0x5a4] ss:$8 sps:$4 sm:$0xff]   ;;  %v5127_v52 = vld [vmem:[#allocation10 + $0x2a0] ss:$8 sps:$4 sm:$0xff]   ;;  %v5135_v15 = vld [vmem:[#allocation10 + $0x2b4] ss:$8 sps:$4 sm:$0xff]  }
 0x23e   :  { %3502 = vmatmul.mubr.bf16.vlgmr.msra.gmra.mrb[16].mxu1 %v1878_v25  ;;  %v5130_v2 = vld [vmem:[#allocation10 + $0x5a0] ss:$8 sps:$4 sm:$0xff]   ;;  %v5138_v9 = vld [vmem:[#allocation10 + $0x5b4] ss:$8 sps:$4 sm:$0xff]   ;;  %v5133_v19 = vld [vmem:[#allocation10 + $0x2b0] ss:$8 sps:$4 sm:$0xff]  }
 0x23f   :  { %3511 = vmatpush1.bf16.msra.mxu1 %v5067_v22  ;;  %3542 = vmatprep.mubr.bf16.mxu1 %v1881_v28  ;;  %v5136_v54 = vld [vmem:[#allocation10 + $0x5b0] ss:$8 sps:$4 sm:$0xff]   ;;  %v5144_v37 = vld [vmem:[#allocation10 + $0x5c4] ss:$8 sps:$4 sm:$0xff]   ;;  %v5139_v17 = vld [vmem:[#allocation10 + $0x2c0] ss:$8 sps:$4 sm:$0xff]  }
 0x240   :  { %3625 = vmatmul.mubr.bf16.vlgmr.msra.gmra.mrb[16].mxu0 %v1884_v24  ;;  %3512 = vmatprep.subr.bf16.mxu1 %v5075_v0  ;;  %v5147_v27 = vld [vmem:[#allocation10 + $0x2d4] ss:$8 sps:$4 sm:$0xff]   ;;  %v5142_v22 = vld [vmem:[#allocation10 + $0x5c0] ss:$8 sps:$4 sm:$0xff]   ;;  %v5145_v25 = vld [vmem:[#allocation10 + $0x2d0] ss:$8 sps:$4 sm:$0xff]  }
 0x241   :  { %3634 = vmatpush1.bf16.msra.mxu0 %v5070_v8  ;;  %3665 = vmatprep.mubr.bf16.mxu0 %v1887_v7  ;;  %v5150_v46 = vld [vmem:[#allocation10 + $0x5d4] ss:$8 sps:$4 sm:$0xff]   ;;  %v5153_v24 = vld [vmem:[#allocation10 + $0x2e4] ss:$8 sps:$4 sm:$0xff]   ;;  %v5148_v0 = vld [vmem:[#allocation10 + $0x5d0] ss:$8 sps:$4 sm:$0xff]  }
 0x242   :  { %3635 = vmatprep.subr.bf16.mxu0 %v5078_v3  ;;  %v5156_v8 = vld [vmem:[#allocation10 + $0x5e4] ss:$8 sps:$4 sm:$0xff]   ;;  %v5151_v28 = vld [vmem:[#allocation10 + $0x2e0] ss:$8 sps:$4 sm:$0xff]   ;;  %v5159_v3 = vld [vmem:[#allocation10 + $0x2f4] ss:$8 sps:$4 sm:$0xff]  }
 0x243   :  { %3513 = vmatpush1.bf16.msra.mxu1 %v5073_v6  ;;  %v5154_v7 = vld [vmem:[#allocation10 + $0x5e0] ss:$8 sps:$4 sm:$0xff]   ;;  %v5162_v6 = vld [vmem:[#allocation10 + $0x5f4] ss:$8 sps:$4 sm:$0xff]  }
 0x244   :  { %3514 = vmatprep.subr.bf16.mxu1 %v5081_v4  ;;  %v5157_v4 = vld [vmem:[#allocation10 + $0x2f0] ss:$8 sps:$4 sm:$0xff]  }
 0x245   :  { %3636 = vmatpush1.bf16.msra.mxu0 %v5076_v21  ;;  %v1864_v21 = vmax.f32 %v6019_v33, 0.0  ;;  %v5166_v33 = vld [vmem:[#allocation10 + $0x610] ss:$8 sps:$4 sm:$0xff]  }
 0x246   :  { %3637 = vmatprep.subr.bf16.mxu0 %v5084_v26  ;;  %v5160_v26 = vld [vmem:[#allocation10 + $0x5f0] ss:$8 sps:$4 sm:$0xff]  }
 0x247   :  { %3515 = vmatpush1.bf16.msra.mxu1 %v5079_v30  ;;  %v1870_v30 = vmax.f32 %v6054_v61, 0.0  ;;  %v5169_v61 = vld [vmem:[#allocation10 + $0x620] ss:$8 sps:$4 sm:$0xff]  }
 0x248   :  { %3516 = vmatprep.subr.bf16.mxu1 %v5087_v14  ;;  %v5165_v14 = vld [vmem:[#allocation10 + $0x604] ss:$8 sps:$4 sm:$0xff]  }
 0x249   :  { %3638 = vmatpush1.bf16.msra.mxu0 %v5082_v18  ;;  %v1873_v18 = vmax.f32 %v6056_v38, 0.0  ;;  %v5172_v38 = vld [vmem:[#allocation10 + $0x630] ss:$8 sps:$4 sm:$0xff]  }
 0x24a   :  { %3639 = vmatprep.subr.bf16.mxu0 %v5090_v62  ;;  %v1880_v62 = vpack.c.bf16 %v1864_v21, %v1864_v21  ;;  %v5235_v21 = vld [vmem:[#allocation10 + $0x780] ss:$8 sps:$4 sm:$0xff]  }
 0x24b   :  { %3517 = vmatpush1.bf16.msra.mxu1 %v5085_v51  ;;  %v5163_v51 = vld [vmem:[#allocation10 + $0x600] ss:$8 sps:$4 sm:$0xff]  }
 0x24c   :  { %3518 = vmatprep.subr.bf16.mxu1 %v5093_v39  ;;  %v1886_v39 = vpack.c.bf16 %v1870_v30, %v1870_v30  ;;  %v5238_v30 = vld [vmem:[#allocation10 + $0x790] ss:$8 sps:$4 sm:$0xff]  }
 0x24d   :  { %3640 = vmatpush1.bf16.msra.mxu0 %v5088_v34  ;;  %v5168_v34 = vld [vmem:[#allocation10 + $0x614] ss:$8 sps:$4 sm:$0xff]  }
 0x24e   :  { %3641 = vmatprep.subr.bf16.mxu0 %v5096_v35  ;;  %v1889_v35 = vpack.c.bf16 %v1873_v18, %v1873_v18  ;;  %v5241_v18 = vld [vmem:[#allocation10 + $0x7a0] ss:$8 sps:$4 sm:$0xff]  }
 0x24f   :  { %3519 = vmatpush1.bf16.msra.mxu1 %v5091_v48  ;;  %v5171_v48 = vld [vmem:[#allocation10 + $0x624] ss:$8 sps:$4 sm:$0xff]  }
 0x250   :  { %3520 = vmatprep.subr.bf16.mxu1 %v5099_v36  ;;  %v5174_v36 = vld [vmem:[#allocation10 + $0x634] ss:$8 sps:$4 sm:$0xff]  }
 0x251   :  { %3642 = vmatpush1.bf16.msra.mxu0 %v5094_v5  ;;  %v5177_v5 = vld [vmem:[#allocation10 + $0x644] ss:$8 sps:$4 sm:$0xff]  }
 0x252   :  { %3643 = vmatprep.subr.bf16.mxu0 %v5102_v40  ;;  %v5175_v40 = vld [vmem:[#allocation10 + $0x640] ss:$8 sps:$4 sm:$0xff]  }
 0x253   :  { %3521 = vmatpush1.bf16.msra.mxu1 %v5097_v41  ;;  %v5180_v41 = vld [vmem:[#allocation10 + $0x654] ss:$8 sps:$4 sm:$0xff]  }
 0x254   :  { %3522 = vmatprep.subr.bf16.mxu1 %v5105_v43  ;;  %v5178_v43 = vld [vmem:[#allocation10 + $0x650] ss:$8 sps:$4 sm:$0xff]  }
 0x255   :  { %3644 = vmatpush1.bf16.msra.mxu0 %v5100_v44  ;;  %v5183_v44 = vld [vmem:[#allocation10 + $0x664] ss:$8 sps:$4 sm:$0xff]  }
 0x256   :  { %3645 = vmatprep.subr.bf16.mxu0 %v5108_v47  ;;  %v5181_v47 = vld [vmem:[#allocation10 + $0x660] ss:$8 sps:$4 sm:$0xff]  }
 0x257   :  { %3523 = vmatpush1.bf16.msra.mxu1 %v5103_v58  ;;  %v5186_v58 = vld [vmem:[#allocation10 + $0x674] ss:$8 sps:$4 sm:$0xff]  }
 0x258   :  { %3524 = vmatprep.subr.bf16.mxu1 %v5111_v53  ;;  %v5184_v53 = vld [vmem:[#allocation10 + $0x670] ss:$8 sps:$4 sm:$0xff]  }
 0x259   :  { %3646 = vmatpush1.bf16.msra.mxu0 %v5106_v50  ;;  %v5189_v50 = vld [vmem:[#allocation10 + $0x684] ss:$8 sps:$4 sm:$0xff]  }
 0x25a   :  { %3647 = vmatprep.subr.bf16.mxu0 %v5114_v13  ;;  %v5187_v13 = vld [vmem:[#allocation10 + $0x680] ss:$8 sps:$4 sm:$0xff]  }
 0x25b   :  { %3525 = vmatpush1.bf16.msra.mxu1 %v5109_v23  ;;  %v5192_v23 = vld [vmem:[#allocation10 + $0x694] ss:$8 sps:$4 sm:$0xff]  }
 0x25c   :  { %3526 = vmatprep.subr.bf16.mxu1 %v5117_v29  ;;  %v5190_v29 = vld [vmem:[#allocation10 + $0x690] ss:$8 sps:$4 sm:$0xff]  }
 0x25d   :  { %3648 = vmatpush1.bf16.msra.mxu0 %v5112_v31  ;;  %v5195_v31 = vld [vmem:[#allocation10 + $0x6a4] ss:$8 sps:$4 sm:$0xff]  }
 0x25e   :  { %3649 = vmatprep.subr.bf16.mxu0 %v5120_v12  ;;  %v5193_v12 = vld [vmem:[#allocation10 + $0x6a0] ss:$8 sps:$4 sm:$0xff]  }
 0x25f   :  { %3527 = vmatpush1.bf16.msra.mxu1 %v5115_v11  ;;  %v5198_v11 = vld [vmem:[#allocation10 + $0x6b4] ss:$8 sps:$4 sm:$0xff]  }
 0x260   :  { %3528 = vmatprep.subr.bf16.mxu1 %v5123_v59  ;;  %v5196_v59 = vld [vmem:[#allocation10 + $0x6b0] ss:$8 sps:$4 sm:$0xff]  }
 0x261   :  { %3650 = vmatpush1.bf16.msra.mxu0 %v5118_v55  ;;  %v5201_v55 = vld [vmem:[#allocation10 + $0x6c4] ss:$8 sps:$4 sm:$0xff]  }
 0x262   :  { %3651 = vmatprep.subr.bf16.mxu0 %v5126_v60  ;;  %v5199_v60 = vld [vmem:[#allocation10 + $0x6c0] ss:$8 sps:$4 sm:$0xff]  }
 0x263   :  { %3529 = vmatpush1.bf16.msra.mxu1 %v5121_v49  ;;  %v5204_v49 = vld [vmem:[#allocation10 + $0x6d4] ss:$8 sps:$4 sm:$0xff]  }
 0x264   :  { %3530 = vmatprep.subr.bf16.mxu1 %v5129_v42  ;;  %v5202_v42 = vld [vmem:[#allocation10 + $0x6d0] ss:$8 sps:$4 sm:$0xff]  }
 0x265   :  { %3652 = vmatpush1.bf16.msra.mxu0 %v5124_v56  ;;  %v5207_v56 = vld [vmem:[#allocation10 + $0x6e4] ss:$8 sps:$4 sm:$0xff]  }
 0x266   :  { %3653 = vmatprep.subr.bf16.mxu0 %v5132_v45  ;;  %v5205_v45 = vld [vmem:[#allocation10 + $0x6e0] ss:$8 sps:$4 sm:$0xff]  }
 0x267   :  { %3531 = vmatpush1.bf16.msra.mxu1 %v5127_v52  ;;  %v5210_v52 = vld [vmem:[#allocation10 + $0x6f4] ss:$8 sps:$4 sm:$0xff]  }
 0x268   :  { %3532 = vmatprep.subr.bf16.mxu1 %v5135_v15  ;;  %v5208_v15 = vld [vmem:[#allocation10 + $0x6f0] ss:$8 sps:$4 sm:$0xff]  }
 0x269   :  { %3654 = vmatpush1.bf16.msra.mxu0 %v5130_v2  ;;  %v1872_v2 = vmax.f32 %v6058_v32, 0.0  ;;  %v5220_v32 = vld [vmem:[#allocation10 + $0x730] ss:$8 sps:$4 sm:$0xff]  }
 0x26a   :  { %3655 = vmatprep.subr.bf16.mxu0 %v5138_v9  ;;  %v5213_v9 = vld [vmem:[#allocation10 + $0x704] ss:$8 sps:$4 sm:$0xff]  }
 0x26b   :  { %3533 = vmatpush1.bf16.msra.mxu1 %v5133_v19  ;;  %v1875_v19 = vmax.f32 %v6051_v16, 0.0  ;;  %v5225_v16 = vld [vmem:[#allocation10 + $0x744] ss:$8 sps:$4 sm:$0xff]  }
 0x26c   :  { %3534 = vmatprep.subr.bf16.mxu1 %v5141_v20  ;;  %v5211_v20 = vld [vmem:[#allocation10 + $0x700] ss:$8 sps:$4 sm:$0xff]  }
 0x26d   :  { %3656 = vmatpush1.bf16.msra.mxu0 %v5136_v54  ;;  %v1888_v54 = vpack.c.bf16 %v1872_v2, %v1872_v2 }
 0x26e   :  { %3657 = vmatprep.subr.bf16.mxu0 %v5144_v37  ;;  %v5216_v37 = vld [vmem:[#allocation10 + $0x714] ss:$8 sps:$4 sm:$0xff]  }
 0x26f   :  { %3535 = vmatpush1.bf16.msra.mxu1 %v5139_v17  ;;  %v1891_v17 = vpack.c.bf16 %v1875_v19, %v1875_v19 }
 0x270   :  { %3536 = vmatprep.subr.bf16.mxu1 %v5147_v27  ;;  %v5214_v27 = vld [vmem:[#allocation10 + $0x710] ss:$8 sps:$4 sm:$0xff]  }
 0x271   :  { %3658 = vmatpush1.bf16.msra.mxu0 %v5142_v22  ;;  %v5219_v22 = vld [vmem:[#allocation10 + $0x724] ss:$8 sps:$4 sm:$0xff]  }
 0x272   :  { %3659 = vmatprep.subr.bf16.mxu0 %v5150_v46  ;;  %v5217_v46 = vld [vmem:[#allocation10 + $0x720] ss:$8 sps:$4 sm:$0xff]  }
 0x273   :  { %3537 = vmatpush1.bf16.msra.mxu1 %v5145_v25  ;;  %v5222_v25 = vld [vmem:[#allocation10 + $0x734] ss:$8 sps:$4 sm:$0xff]  }
 0x274   :  { %3538 = vmatprep.subr.bf16.mxu1 %v5153_v24  ;;  %v5223_v24 = vld [vmem:[#allocation10 + $0x740] ss:$8 sps:$4 sm:$0xff]  }
 0x275   :  { %3660 = vmatpush1.bf16.msra.mxu0 %v5148_v0  ;;  %v5228_v0 = vld [vmem:[#allocation10 + $0x754] ss:$8 sps:$4 sm:$0xff]  }
 0x276   :  { %3661 = vmatprep.subr.bf16.mxu0 %v5156_v8  ;;  %v5226_v8 = vld [vmem:[#allocation10 + $0x750] ss:$8 sps:$4 sm:$0xff]  }
 0x277   :  { %3539 = vmatpush1.bf16.msra.mxu1 %v5151_v28  ;;  %v5231_v28 = vld [vmem:[#allocation10 + $0x764] ss:$8 sps:$4 sm:$0xff]  }
 0x278   :  { %3540 = vmatprep.subr.bf16.mxu1 %v5159_v3  ;;  %v5229_v3 = vld [vmem:[#allocation10 + $0x760] ss:$8 sps:$4 sm:$0xff]  }
 0x279   :  { %3662 = vmatpush1.bf16.msra.mxu0 %v5154_v7  ;;  %v5234_v7 = vld [vmem:[#allocation10 + $0x774] ss:$8 sps:$4 sm:$0xff]  }
 0x27a   :  { %3663 = vmatprep.subr.bf16.mxu0 %v5162_v6  ;;  %v5232_v6 = vld [vmem:[#allocation10 + $0x770] ss:$8 sps:$4 sm:$0xff]  }
 0x27b   :  { %3541 = vmatpush1.bf16.msra.mxu1 %v5157_v4  ;;  %v5237_v4 = vld [vmem:[#allocation10 + $0x784] ss:$8 sps:$4 sm:$0xff]  }
 0x27d   :  { %3664 = vmatpush1.bf16.msra.mxu0 %v5160_v26  ;;  %v5240_v26 = vld [vmem:[#allocation10 + $0x794] ss:$8 sps:$4 sm:$0xff]  }
 0x27e   :  { %3543 = vmatmul.mubr.bf16.vlgmr.msra.gmra.mrb[16].mxu1 %v1880_v62  ;;  %3674 = vmatprep.subr.bf16.mxu0 %v5165_v14  ;;  %v5243_v14 = vld [vmem:[#allocation10 + $0x7a4] ss:$8 sps:$4 sm:$0xff]   ;;  %v5246_v62 = vld [vmem:[#allocation10 + $0x7b4] ss:$8 sps:$4 sm:$0xff]  }
 0x280   :  { %3666 = vmatmul.mubr.bf16.vlgmr.msra.gmra.mrb[16].mxu0 %v1886_v39  ;;  %v5249_v39 = vld [vmem:[#allocation10 + $0x7c4] ss:$8 sps:$4 sm:$0xff]  }
 0x281   :  { %3675 = vmatpush1.bf16.msra.mxu0 %v5163_v51  ;;  %3706 = vmatprep.mubr.bf16.mxu0 %v1889_v35  ;;  %v5244_v51 = vld [vmem:[#allocation10 + $0x7b0] ss:$8 sps:$4 sm:$0xff]   ;;  %v5252_v35 = vld [vmem:[#allocation10 + $0x7d4] ss:$8 sps:$4 sm:$0xff]  }
 0x282   :  { %3676 = vmatprep.subr.bf16.mxu0 %v5168_v34  ;;  %v5247_v34 = vld [vmem:[#allocation10 + $0x7c0] ss:$8 sps:$4 sm:$0xff]  }
 0x285   :  { %3677 = vmatpush1.bf16.msra.mxu0 %v5166_v33  ;;  %v5250_v33 = vld [vmem:[#allocation10 + $0x7d0] ss:$8 sps:$4 sm:$0xff]  }
 0x286   :  { %3678 = vmatprep.subr.bf16.mxu0 %v5171_v48  ;;  %v5255_v48 = vld [vmem:[#allocation10 + $0x7e4] ss:$8 sps:$4 sm:$0xff]  }
 0x289   :  { %3679 = vmatpush1.bf16.msra.mxu0 %v5169_v61  ;;  %v5253_v61 = vld [vmem:[#allocation10 + $0x7e0] ss:$8 sps:$4 sm:$0xff]  }
 0x28a   :  { %3680 = vmatprep.subr.bf16.mxu0 %v5174_v36  ;;  %v5258_v36 = vld [vmem:[#allocation10 + $0x7f4] ss:$8 sps:$4 sm:$0xff]  }
 0x28d   :  { %3681 = vmatpush1.bf16.msra.mxu0 %v5172_v38  ;;  %v5256_v38 = vld [vmem:[#allocation10 + $0x7f0] ss:$8 sps:$4 sm:$0xff]  }
 0x28e   :  { %3682 = vmatprep.subr.bf16.mxu0 %v5177_v5  ;;  %v1874_v5 = vmax.f32 %v6060_v10, 0.0  ;;  %v5266_v10 = vld [vmem:[#allocation11 + $0x18] sm:$0xff]  }
 0x291   :  { %3683 = vmatpush1.bf16.msra.mxu0 %v5175_v40  ;;  %v1890_v40 = vpack.c.bf16 %v1874_v5, %v1874_v5 }
 0x292   :  { %3684 = vmatprep.subr.bf16.mxu0 %v5180_v41 }
 0x295   :  { %3685 = vmatpush1.bf16.msra.mxu0 %v5178_v43 }
 0x296   :  { %3686 = vmatprep.subr.bf16.mxu0 %v5183_v44 }
 0x299   :  { %3687 = vmatpush1.bf16.msra.mxu0 %v5181_v47 }
 0x29a   :  { %3688 = vmatprep.subr.bf16.mxu0 %v5186_v58  ;;  %v5259_v58 = vld [vmem:[#allocation11 + $0x40] sm:$0xff]  }
 0x29b   :  { %4749 = vmatprep.subr.bf16.mxu1 %v5259_v58 }
 0x29d   :  { %3689 = vmatpush1.bf16.msra.mxu0 %v5184_v53  ;;  %v5260_v53 = vld [vmem:[#allocation11] sm:$0xff]  }
 0x29e   :  { %3690 = vmatprep.subr.bf16.mxu0 %v5189_v50  ;;  %v5261_v50 = vld [vmem:[#allocation11 + $0x48] sm:$0xff]   ;;  %4750 = vmatpush3.bf16.msra.mxu1 %v5260_v53  ;;  %v3825_v53 = vld [vmem:[%s6157_s6] sm:$0x3] }
 0x29f   :  { %4751 = vmatprep.subr.bf16.mxu1 %v5261_v50 }
 0x2a1   :  { %3691 = vmatpush1.bf16.msra.mxu0 %v5187_v13  ;;  %v5262_v13 = vld [vmem:[#allocation11 + $0x8] sm:$0xff]  }
 0x2a2   :  { %3692 = vmatprep.subr.bf16.mxu0 %v5192_v23  ;;  %v5263_v23 = vld [vmem:[#allocation11 + $0x50] sm:$0xff]   ;;  %4752 = vmatpush3.bf16.msra.mxu1 %v5262_v13 }
 0x2a3   :  { %4753 = vmatprep.subr.bf16.mxu1 %v5263_v23  ;;  %v3830_v23 = vrot.slane %v3825_v53, %v5891_v1 }
 0x2a5   :  { %3693 = vmatpush1.bf16.msra.mxu0 %v5190_v29  ;;  %v5264_v29 = vld [vmem:[#allocation11 + $0x10] sm:$0xff]  }
 0x2a6   :  { %3694 = vmatprep.subr.bf16.mxu0 %v5195_v31  ;;  %v5265_v31 = vld [vmem:[#allocation11 + $0x58] sm:$0xff]   ;;  %4754 = vmatpush3.bf16.msra.mxu1 %v5264_v29  ;;  %v3834_v29 = vrot.slane %v3825_v53, %v5878_v57 }
 0x2a7   :  { %4755 = vmatprep.subr.bf16.mxu1 %v5265_v31 }
 0x2a9   :  { %3695 = vmatpush1.bf16.msra.mxu0 %v5193_v12  ;;  %v5267_v12 = vld [vmem:[#allocation11 + $0x60] sm:$0xff]  }
 0x2aa   :  { %3696 = vmatprep.subr.bf16.mxu0 %v5198_v11  ;;  %4756 = vmatpush3.bf16.msra.mxu1 %v5266_v10  ;;  %v5268_v11 = vld [vmem:[#allocation11 + $0x20] sm:$0xff]  }
 0x2ab   :  { %4757 = vmatprep.subr.bf16.mxu1 %v5267_v12 }
 0x2ad   :  { %3697 = vmatpush1.bf16.msra.mxu0 %v5196_v59  ;;  %v5269_v59 = vld [vmem:[#allocation11 + $0x68] sm:$0xff]  }
 0x2ae   :  { %3698 = vmatprep.subr.bf16.mxu0 %v5201_v55  ;;  %4758 = vmatpush3.bf16.msra.mxu1 %v5268_v11  ;;  %v5270_v55 = vld [vmem:[#allocation11 + $0x28] sm:$0xff]  }
 0x2af   :  { %4759 = vmatprep.subr.bf16.mxu1 %v5269_v59 }
 0x2b1   :  { %3699 = vmatpush1.bf16.msra.mxu0 %v5199_v60  ;;  %v5271_v60 = vld [vmem:[#allocation11 + $0x70] sm:$0xff]  }
 0x2b2   :  { %3700 = vmatprep.subr.bf16.mxu0 %v5204_v49  ;;  %4760 = vmatpush3.bf16.msra.mxu1 %v5270_v55  ;;  %v5272_v49 = vld [vmem:[#allocation11 + $0x30] sm:$0xff]  }
 0x2b3   :  { %4761 = vmatprep.subr.bf16.mxu1 %v5271_v60 }
 0x2b5   :  { %3701 = vmatpush1.bf16.msra.mxu0 %v5202_v42  ;;  %v5273_v42 = vld [vmem:[#allocation11 + $0x78] sm:$0xff]  }
 0x2b6   :  { %3702 = vmatprep.subr.bf16.mxu0 %v5207_v56  ;;  %4762 = vmatpush3.bf16.msra.mxu1 %v5272_v49  ;;  %v5274_v56 = vld [vmem:[#allocation11 + $0x38] sm:$0xff]  }
 0x2b7   :  { %4763 = vmatprep.subr.bf16.mxu1 %v5273_v42  ;;  %v5275_v42 = vld [vmem:[#allocation13] sm:$0xff]  }
 0x2b9   :  { %3703 = vmatpush1.bf16.msra.mxu0 %v5205_v45 }
 0x2ba   :  { %3704 = vmatprep.subr.bf16.mxu0 %v5210_v52  ;;  %4764 = vmatpush3.bf16.msra.mxu1 %v5274_v56  ;;  %v5605_v56 = vmov 0.0  }
 0x2bb   :  { %4789 = vmatprep.subr.bf16.mxu1 %v5605_v56 }
 0x2bd   :  { %3705 = vmatpush1.bf16.msra.mxu0 %v5208_v15 }
 0x2be   :  { %3715 = vmatprep.subr.bf16.mxu0 %v5213_v9 }
 0x2c0   :  { %3707 = vmatmul.mubr.bf16.vlgmr.msra.gmra.mrb[16].mxu0 %v1888_v54 }
 0x2c1   :  { %3716 = vmatpush1.bf16.msra.mxu0 %v5211_v20  ;;  %3747 = vmatprep.mubr.bf16.mxu0 %v1891_v17 }
 0x2c2   :  { %3717 = vmatprep.subr.bf16.mxu0 %v5216_v37 }
 0x2c5   :  { %3718 = vmatpush1.bf16.msra.mxu0 %v5214_v27 }
 0x2c6   :  { %3719 = vmatprep.subr.bf16.mxu0 %v5219_v22 }
 0x2c9   :  { %3720 = vmatpush1.bf16.msra.mxu0 %v5217_v46 }
 0x2ca   :  { %3721 = vmatprep.subr.bf16.mxu0 %v5222_v25 }
 0x2cd   :  { %3722 = vmatpush1.bf16.msra.mxu0 %v5220_v32 }
 0x2ce   :  { %3723 = vmatprep.subr.bf16.mxu0 %v5225_v16 }
 0x2d1   :  { %3724 = vmatpush1.bf16.msra.mxu0 %v5223_v24 }
 0x2d2   :  { %3725 = vmatprep.subr.bf16.mxu0 %v5228_v0 }
 0x2d5   :  { %3726 = vmatpush1.bf16.msra.mxu0 %v5226_v8 }
 0x2d6   :  { %3727 = vmatprep.subr.bf16.mxu0 %v5231_v28 }
 0x2d9   :  { %3728 = vmatpush1.bf16.msra.mxu0 %v5229_v3 }
 0x2da   :  { %3729 = vmatprep.subr.bf16.mxu0 %v5234_v7 }
 0x2dd   :  { %3730 = vmatpush1.bf16.msra.mxu0 %v5232_v6 }
 0x2de   :  { %3731 = vmatprep.subr.bf16.mxu0 %v5237_v4 }
 0x2e1   :  { %3732 = vmatpush1.bf16.msra.mxu0 %v5235_v21 }
 0x2e2   :  { %3733 = vmatprep.subr.bf16.mxu0 %v5240_v26 }
 0x2e5   :  { %3734 = vmatpush1.bf16.msra.mxu0 %v5238_v30 }
 0x2e6   :  { %3735 = vmatprep.subr.bf16.mxu0 %v5243_v14 }
 0x2e9   :  { %3736 = vmatpush1.bf16.msra.mxu0 %v5241_v18 }
 0x2ea   :  { %3737 = vmatprep.subr.bf16.mxu0 %v5246_v62 }
 0x2ed   :  { %3738 = vmatpush1.bf16.msra.mxu0 %v5244_v51 }
 0x2ee   :  { %3739 = vmatprep.subr.bf16.mxu0 %v5249_v39 }
 0x2f1   :  { %3740 = vmatpush1.bf16.msra.mxu0 %v5247_v34 }
 0x2f2   :  { %3741 = vmatprep.subr.bf16.mxu0 %v5252_v35 }
 0x2f5   :  { %3742 = vmatpush1.bf16.msra.mxu0 %v5250_v33 }
 0x2f6   :  { %3743 = vmatprep.subr.bf16.mxu0 %v5255_v48 }
 0x2f9   :  { %3744 = vmatpush1.bf16.msra.mxu0 %v5253_v61 }
 0x2fa   :  { %3745 = vmatprep.subr.bf16.mxu0 %v5258_v36 }
 0x2fd   :  { %3746 = vmatpush1.bf16.msra.mxu0 %v5256_v38 }
 0x300   :  { %3748 = vmatmul.mubr.bf16.vlgmr.msra.gmra.mrb[16].mxu0 %v1890_v40 }
 0x351   :  { %v3544_v41 = vpop.f32.mrb[16].mxu1 }
 0x352   :  { %v3546_v43 = vpop.f32.mrb[17].mxu1 }
 0x353   :  { %v3548_v44 = vpop.f32.mrb[18].mxu1 }
 0x354   :  { %v3549_v47 = vpop.f32.mrb[19].mxu1 }
 0x355   :  { %v3788_v47 = vld [vmem:[%s6156_s5] sm:$0x3] }
 0x3d3   :  { %v3749_v45 = vpop.f32.mrb[16].mxu0 }
 0x3d4   :  { %v4829_v52 = vadd.f32 %v3749_v45, %v3544_v41  ;;  %v3751_v15 = vpop.f32.mrb[17].mxu0  ;;  %v5277_v45 = vld [vmem:[#allocation13 + $0x10] sm:$0xff]  }
 0x3d5   :  { %v4830_v2 = vadd.f32 %v3751_v15, %v3546_v43  ;;  %v3753_v9 = vpop.f32.mrb[18].mxu0  ;;  %v5279_v15 = vld [vmem:[#allocation13 + $0x20] sm:$0xff]  }
 0x3d6   :  { %v3756_v19 = vrot.slane %v4829_v52, 4  ;;  %v3754_v20 = vpop.f32.mrb[19].mxu0  ;;  %v5281_v9 = vld [vmem:[#allocation13 + $0x30] sm:$0xff]  }
 0x3d7   :  { %v3762_v54 = vrot.slane %v4830_v2, 4 }
 0x3d8   :  { %v3757_v37 = vadd.f32 %v4829_v52, %v3756_v19  ;;  %v5282_v19 = vld [vmem:[#allocation13 + $0x38] sm:$0xff]  }
 0x3d9   :  { %v3763_v17 = vadd.f32 %v4830_v2, %v3762_v54 }
 0x3da   :  { %v3758_v27 = vrot.slane %v3757_v37, 2 }
 0x3db   :  { %v3764_v22 = vrot.slane %v3763_v17, 2 }
 0x3dc   :  { %v3759_v46 = vadd.f32 %v3758_v27, %v3757_v37 }
 0x3dd   :  { %v3765_v25 = vadd.f32 %v3764_v22, %v3763_v17 }
 0x3de   :  { %v3760_v32 = vrot.slane %v3759_v46, 1 }
 0x3df   :  { %v3766_v16 = vrot.slane %v3765_v25, 1 }
 0x3e0   :  { %v3761_v24 = vadd.f32 %v3760_v32, %v3759_v46 }
 0x3e1   :  { %v3767_v0 = vadd.f32 %v3766_v16, %v3765_v25 }
 0x3e2   :  { %v3768_v8 = vmul.f32 0.125, %v3761_v24 }
 0x3e3   :  { %v3769_v28 = vmul.f32 0.125, %v3767_v0 }
 0x3e4   :  { %v3770_v3 = vsub.f32 %v4829_v52, %v3768_v8  ;;  %v5278_v52 = vld [vmem:[#allocation13 + $0x18] sm:$0xff]  }
 0x3e5   :  { %v3771_v7 = vsub.f32 %v4830_v2, %v3769_v28  ;;  %v5280_v2 = vld [vmem:[#allocation13 + $0x28] sm:$0xff]  }
 0x3e6   :  { %v3772_v6 = vmul.f32 %v3770_v3, %v3770_v3 }
 0x3e7   :  { %v3773_v4 = vmul.f32 %v3771_v7, %v3771_v7 }
 0x3e8   :  { %v3774_v21 = vrot.slane %v3772_v6, 4 }
 0x3e9   :  { %v3780_v26 = vrot.slane %v3773_v4, 4 }
 0x3ea   :  { %v3775_v30 = vadd.f32 %v3774_v21, %v3772_v6 }
 0x3eb   :  { %v3781_v14 = vadd.f32 %v3780_v26, %v3773_v4 }
 0x3ec   :  { %v3776_v18 = vrot.slane %v3775_v30, 2 }
 0x3ed   :  { %v3782_v62 = vrot.slane %v3781_v14, 2 }
 0x3ee   :  { %v3777_v51 = vadd.f32 %v3776_v18, %v3775_v30  ;;  %v4027_v18 = vld [vmem:[%s6159_s8] sm:$0x1] }
 0x3ef   :  { %v3783_v39 = vadd.f32 %v3782_v62, %v3781_v14 }
 0x3f0   :  { %v3778_v34 = vrot.slane %v3777_v51, 1 }
 0x3f1   :  { %v3784_v35 = vrot.slane %v3783_v39, 1 }
 0x3f2   :  { %v3779_v33 = vadd.f32 %v3778_v34, %v3777_v51  ;;  %v4730_v34 = vld [vmem:[%s6160_s9] ss:$0 sm:$0xff] }
 0x3f3   :  { %v3785_v48 = vadd.f32 %v3784_v35, %v3783_v39 }
 0x3f4   :  { %v3786_v61 = vmul.f32 0.125, %v3779_v33 }
 0x3f5   :  { %v3787_v36 = vmul.f32 0.125, %v3785_v48 }
 0x3f6   :  { %v3789_v38 = vadd.f32 1e-05, %v3786_v61  ;;  %v5283_v61 = vld [vmem:[#allocation14] sm:$0xff]  }
 0x3f7   :  { %v3790_v5 = vadd.f32 1e-05, %v3787_v36 }
 0x3f8   :  { %5323 = vrsqrt.f32 %v3789_v38  ;;  %v5284_v38 = vld [vmem:[#allocation14 + $0x8] sm:$0xff]  }
 0x3f9   :  { %5325 = vrsqrt.f32 %v3790_v5  ;;  %v5285_v5 = vld [vmem:[#allocation14 + $0x10] sm:$0xff]  }
 0x402   :  { %v5324_v40 = vpop.eup %5323 }
 0x403   :  { %v5326_v41 = vpop.eup %5325 }
 0x404   :  { %v3795_v43 = vcombine.low %v5324_v40, %v5326_v41  ;;  %v5287_v40 = vld [vmem:[#allocation14 + $0x20] sm:$0xff]   ;;  %v5288_v41 = vld [vmem:[#allocation14 + $0x28] sm:$0xff]  }
 0x406   :  { %v3802_v44 = vrot.slane %v3795_v43, %v5836_v63  ;;  %v5289_v43 = vld [vmem:[#allocation14 + $0x30] sm:$0xff]  }
 0x408   :  { %v3809_v58 = vrot.slane %v3802_v44, %v5836_v63  ;;  %v5290_v44 = vld [vmem:[#allocation14 + $0x38] sm:$0xff]  }
 0x40a   :  { %v3811_v50 = vmul.f32 %v3809_v58, %v3788_v47  ;;  %v4731_v47 = vld [vmem:[%s6162_s11] ss:$0 sm:$0xff]  ;;  %s5607_s11 = smov [#allocation17]  }
 0x40b   :  { %s4300_s21 = sshll.u32 %s5607_s11, 4  ;;  %s4301_s21 = int_to_ptr.vmem [resolvable:$true] %s4300_s21 }
 0x40c   :  { %v3820_v13 = vrot.slane %v3811_v50, %v5878_v57  ;;  %v3816_v31 = vrot.slane %v3811_v50, %v5891_v1  ;;  %v5276_v57 = vld [vmem:[#allocation13 + $0x8] sm:$0xff]   ;;  %s5510_s28 = scalar_lea.vmem %s4301_s21, 128  ;;  %p5515_p9 = scmp.lt.s32.totalorder %s4301_s21, %s4301_s21 }
 0x40d   :  { %p5511_p8 = scmp.ne.s32.totalorder %s4301_s21, %s5510_s28  ;;  %p5516_p10 = scmp.lt.s32.totalorder %s5510_s28, %s5510_s28 }
 0x40e   :  { %v3824_v10 = vmul.f32 %v3820_v13, %v3771_v7  ;;  %v3823_v12 = vmul.f32 %v3816_v31, %v3770_v3 }
 0x40f   :  { %p5517_p11 = por %p5516_p10, %p5515_p9 }
 0x410   :  { %v3838_v11 = vadd.f32 %v3834_v29, %v3824_v10  ;;  %v3837_v59 = vadd.f32 %v3830_v23, %v3823_v12  ;;  %v4740_v10 = vld [vmem:[%s6164_s13] ss:$0 sm:$0xff] }
 0x411   :  { %p5518_p12 = pnand %p5517_p11, %p5511_p8 }
 0x412   :  { %v3840_v55 = vmax.f32 %v3838_v11, 0.0  ;;  %v3839_v60 = vmax.f32 %v3837_v59, 0.0 }
 0x414   :  { %v3842_v63 = vpack.c.bf16 %v3840_v55, %v3840_v55  ;;  %v3841_v49 = vpack.c.bf16 %v3839_v60, %v3839_v60 }
 0x416   :  { %4003 = vmatprep.mubr.bf16.mxu1 %v3842_v63 }
 0x417   :  { %4004 = vmatmul.mubr.bf16.vlgmr.msra.gmra.mrb[20].mxu1 %v3841_v49 }
 0x418   :  { %4790 = vmatpush3.bf16.msra.mxu1 %v5275_v42  ;;  %4805 = vmatprep.mubr.msk.bf16.mxu1 %vm5606_vm0, %v5605_v56 }
 0x419   :  { %4791 = vmatprep.subr.bf16.mxu1 %v5605_v56 }
 0x41c   :  { %4792 = vmatpush3.bf16.msra.mxu1 %v5276_v57 }
 0x41d   :  { %4793 = vmatprep.subr.bf16.mxu1 %v5605_v56 }
 0x420   :  { %4794 = vmatpush3.bf16.msra.mxu1 %v5277_v45 }
 0x421   :  { %4795 = vmatprep.subr.bf16.mxu1 %v5605_v56 }
 0x424   :  { %4796 = vmatpush3.bf16.msra.mxu1 %v5278_v52 }
 0x425   :  { %4797 = vmatprep.subr.bf16.mxu1 %v5605_v56 }
 0x428   :  { %4798 = vmatpush3.bf16.msra.mxu1 %v5279_v15 }
 0x429   :  { %4799 = vmatprep.subr.bf16.mxu1 %v5605_v56 }
 0x42c   :  { %4800 = vmatpush3.bf16.msra.mxu1 %v5280_v2 }
 0x42d   :  { %4801 = vmatprep.subr.bf16.mxu1 %v5605_v56 }
 0x430   :  { %4802 = vmatpush3.bf16.msra.mxu1 %v5281_v9 }
 0x431   :  { %4803 = vmatprep.subr.bf16.mxu1 %v5605_v56 }
 0x434   :  { %4804 = vmatpush3.bf16.msra.mxu1 %v5282_v19 }
 0x435   :  { %4809 = vmatprep.subr.bf16.mxu1 %v5605_v56 }
 0x4ea   :  { %v4765_v20 = vpop.f32.mrb[20].mxu1 }
 0x4eb   :  { %v4766_v54 = vpop.f32.mrb[21].mxu1 }
 0x4ec   :  { %v4767_v37 = vadd.f32 %v4766_v54, %v4765_v20  ;;  %v4768_v17 = vpop.f32.mrb[22].mxu1 }
 0x4ed   :  { %v4769_v27 = vpop.f32.mrb[23].mxu1 }
 0x4ee   :  { %v4011_v22 = vrot.slane %v4767_v37, 4 }
 0x4f0   :  { %v4012_v46 = vadd.f32 %v4767_v37, %v4011_v22 }
 0x4f2   :  { %v4013_v25 = vrot.slane %v4012_v46, 2 }
 0x4f4   :  { %v4014_v32 = vadd.f32 %v4013_v25, %v4012_v46 }
 0x4f6   :  { %v4015_v16 = vrot.slane %v4014_v32, 1 }
 0x4f8   :  { %v4016_v24 = vadd.f32 %v4015_v16, %v4014_v32 }
 0x4fa   :  { %v4017_v0 = vmul.f32 0.125, %v4016_v24 }
 0x4fc   :  { %v4018_v8 = vsub.f32 %v4767_v37, %v4017_v0 }
 0x4fe   :  { %v4019_v28 = vmul.f32 %v4018_v8, %v4018_v8 }
 0x500   :  { %v4020_v3 = vrot.slane %v4019_v28, 4 }
 0x502   :  { %v4021_v7 = vadd.f32 %v4020_v3, %v4019_v28 }
 0x504   :  { %v4022_v6 = vrot.slane %v4021_v7, 2 }
 0x506   :  { %v4023_v4 = vadd.f32 %v4022_v6, %v4021_v7 }
 0x508   :  { %v4024_v21 = vrot.slane %v4023_v4, 1 }
 0x50a   :  { %v4025_v26 = vadd.f32 %v4024_v21, %v4023_v4 }
 0x50c   :  { %v4026_v30 = vmul.f32 0.125, %v4025_v26 }
 0x50e   :  { %v4028_v14 = vadd.f32 1e-05, %v4026_v30 }
 0x510   :  { %5327 = vrsqrt.f32 %v4028_v14 }
 0x51a   :  { %v5328_v62 = vpop.eup %5327 }
 0x51b   :  { %v4030_v51 = vmul.f32 %v5328_v62, %v4027_v18 }
 0x51d   :  { %v4035_v39 = vrot.slane %v4030_v51, %v5891_v1  ;;  %v5286_v1 = vld [vmem:[#allocation14 + $0x18] sm:$0xff]  }
 0x51f   :  { %v4037_v35 = vmul.f32 %v4035_v39, %v4018_v8 }
 0x521   :  { %v4045_v33 = vadd.f32 %v4730_v34, %v4037_v35 }
 0x523   :  { %v4046_v48 = vmax.f32 %v4045_v33, 0.0 }
 0x525   :  { %v4047_v36 = vpack.c.bf16 %v4046_v48, %v4046_v48 }
 0x527   :  { %4806 = vmatmul.mubr.bf16.vlgmr.msra.gmra.mrb[24].mxu1 %v4047_v36 }
 0x528   :  { %4810 = vmatpush3.bf16.msra.mxu1 %v5283_v61  ;;  %4825 = vmatprep.mubr.msk.bf16.mxu1 %vm5606_vm0, %v5605_v56 }
 0x529   :  { %4811 = vmatprep.subr.bf16.mxu1 %v5605_v56 }
 0x52c   :  { %4812 = vmatpush3.bf16.msra.mxu1 %v5284_v38 }
 0x52d   :  { %4813 = vmatprep.subr.bf16.mxu1 %v5605_v56 }
 0x530   :  { %4814 = vmatpush3.bf16.msra.mxu1 %v5285_v5 }
 0x531   :  { %4815 = vmatprep.subr.bf16.mxu1 %v5605_v56 }
 0x534   :  { %4816 = vmatpush3.bf16.msra.mxu1 %v5286_v1 }
 0x535   :  { %4817 = vmatprep.subr.bf16.mxu1 %v5605_v56 }
 0x538   :  { %4818 = vmatpush3.bf16.msra.mxu1 %v5287_v40 }
 0x539   :  { %4819 = vmatprep.subr.bf16.mxu1 %v5605_v56 }
 0x53c   :  { %4820 = vmatpush3.bf16.msra.mxu1 %v5288_v41 }
 0x53d   :  { %4821 = vmatprep.subr.bf16.mxu1 %v5605_v56 }
 0x540   :  { %4822 = vmatpush3.bf16.msra.mxu1 %v5289_v43 }
 0x541   :  { %4823 = vmatprep.subr.bf16.mxu1 %v5605_v56 }
 0x544   :  { %4824 = vmatpush3.bf16.msra.mxu1 %v5290_v44 }
 0x5fa   :  { %v4153_v58 = vpop.f32.mrb[24].mxu1 }
 0x5fb   :  { %v4154_v53 = vadd.f32 %v4731_v47, %v4153_v58  ;;  %v4807_v50 = vpop.f32.mrb[25].mxu1 }
 0x5fc   :  { %v4156_v13 = vpop.f32.mrb[26].mxu1 }
 0x5fd   :  { %v4159_v23 = vmax.f32 %v4154_v53, 0.0  ;;  %v4808_v29 = vpop.f32.mrb[27].mxu1 }
 0x5ff   :  { %v4160_v31 = vpack.c.bf16 %v4159_v23, %v4159_v23  ;;  %4282 = vst [vmem:[#allocation17] sm:$0xff] %v4159_v23 }
 0x601   :  { %4826 = vmatmul.mubr.bf16.vlgmr.msra.gmra.mrb[28].mxu1 %v4160_v31 }
 0x6d4   :  { %v4266_v12 = vpop.f32.mrb[28].mxu1 }
 0x6d5   :  { %v4267_v11 = vadd.f32 %v4740_v10, %v4266_v12  ;;  %v4827_v59 = vpop.f32.mrb[29].mxu1 }
 0x6d6   :  { %v4269_v55 = vpop.f32.mrb[30].mxu1 }
 0x6d7   :  { %4283 = vst [vmem:[#allocation19] sm:$0xff] %v4267_v11  ;;  %4272 = vmax.xlane.f32.xlu0 %v4267_v11  ;;  %v4828_v60 = vpop.f32.mrb[31].mxu1 }
 0x764   :  { %v4273_v63 = vpop.xlane.xlu0 %4272 }
 0x765   :  { %v4274_v49 = vsub.f32 %v4267_v11, %v4273_v63 }
 0x767   :  { %v4275_v42 = vmul.f32 1.442695, %v4274_v49 }
 0x769   :  { %5329 = vpow2.f32 %v4275_v42 }
 0x773   :  { %v5330_v56 = vpop.eup %5329 }
 0x774   :  { %4277 = vadd.xlane.f32.xlu0 %v5330_v56 }
 0x775   :  { %5521 = shalt.err (!%p5518_p12)
}
 0x776   :  { %s5522_s25 = scalar_lea.hbm %s6166_s15, 128 }
 0x777   :  { %p5523_p13 = scmp.ne.s32.totalorder %s6166_s15, %s5522_s25  ;;  %p5526_p0 = scmp.lt.u32.totalorder %s5522_s25, %s6166_s15 }
 0x779   :  { %p5528_p1 = pnand %p5526_p0, %p5523_p13 }
 0x77b   :  { %5531 = shalt.err (!%p5528_p1)
}
 0x77c   :  { %4303 = dma.vmem_to_hbm [thread:$0]  %s4301_s21, 128, %s6166_s15, [#allocation18]  }
 0x77d   :  { %s5608_s20 = smov [#allocation19]  }
 0x77e   :  { %s4310_s30 = sshll.u32 %s5608_s20, 4  ;;  %s4311_s30 = int_to_ptr.vmem [resolvable:$true] %s4310_s30 }
 0x77f   :  { %s5532_s23 = scalar_lea.vmem %s4311_s30, 128  ;;  %p5537_p3 = scmp.lt.s32.totalorder %s4311_s30, %s4311_s30 }
 0x780   :  { %p5533_p2 = scmp.ne.s32.totalorder %s4311_s30, %s5532_s23  ;;  %p5538_p4 = scmp.lt.s32.totalorder %s5532_s23, %s5532_s23 }
 0x782   :  { %p5539_p5 = por %p5538_p4, %p5537_p3 }
 0x784   :  { %p5540_p6 = pnand %p5539_p5, %p5533_p2 }
 0x786   :  { %5543 = shalt.err (!%p5540_p6)
}
 0x787   :  { %s5544_s12 = scalar_lea.hbm %s6167_s16, 128 }
 0x788   :  { %p5545_p7 = scmp.ne.s32.totalorder %s6167_s16, %s5544_s12  ;;  %p5548_p8 = scmp.lt.u32.totalorder %s5544_s12, %s6167_s16 }
 0x78a   :  { %p5550_p9 = pnand %p5548_p8, %p5545_p7 }
 0x78c   :  { %5553 = shalt.err (!%p5550_p9)
}
 0x78d   :  { %4313 = dma.vmem_to_hbm [thread:$0]  %s4311_s30, 128, %s6167_s16, [#allocation18]  }
 0x78e   :  { %s5609_s26 = smov [#allocation16]  }
 0x78f   :  { %s4290_s7 = sshll.u32 %s5609_s26, 4  ;;  %s4291_s7 = int_to_ptr.vmem [resolvable:$true] %s4290_s7 }
 0x790   :  { %s5554_s8 = scalar_lea.vmem %s4291_s7, 128  ;;  %p5559_p11 = scmp.lt.s32.totalorder %s4291_s7, %s4291_s7 }
 0x791   :  { %p5555_p10 = scmp.ne.s32.totalorder %s4291_s7, %s5554_s8  ;;  %p5560_p12 = scmp.lt.s32.totalorder %s5554_s8, %s5554_s8 }
 0x793   :  { %p5561_p13 = por %p5560_p12, %p5559_p11 }
 0x795   :  { %p5562_p0 = pnand %p5561_p13, %p5555_p10 }
 0x801   :  { %v4278_v57 = vpop.xlane.xlu0 %4277 }
 0x802   :  { %5331 = vrcp.f32 %v4278_v57 }
 0x80c   :  { %v5332_v45 = vpop.eup %5331 }
 0x80d   :  { %v4280_v52 = vmul.f32 %v5332_v45, %v5330_v56 }
 0x80f   :  { %4281 = vst [vmem:[#allocation16] sm:$0xff] %v4280_v52 }
 0x810   :  { %5565 = shalt.err (!%p5562_p0)
}
 0x811   :  { %s6173_s27 = sld [smem:[#allocation28_spill]] }
 0x817   :  { %s5566_s11 = scalar_lea.hbm %s6173_s27, 128 }
 0x818   :  { %p5567_p1 = scmp.ne.s32.totalorder %s6173_s27, %s5566_s11  ;;  %p5570_p2 = scmp.lt.u32.totalorder %s5566_s11, %s6173_s27 }
 0x81a   :  { %p5572_p3 = pnand %p5570_p2, %p5567_p1 }
 0x81c   :  { %5575 = shalt.err (!%p5572_p3)
}
 0x81d   :  { %4293 = dma.vmem_to_hbm [thread:$0]  %s4291_s7, 128, %s6173_s27, [#allocation4]  }
 0x81e   :  { %5586 = dma.done.wait [#allocation4], 128  }
 0x81f   :  { %5587 = vsyncadd [#allocation4], 4294967168 }
 0x820   :  { %5588 = dma.done.wait [#allocation18], 256  }
 0x821   :  { %5589 = vsyncadd [#allocation18], 4294967040 }
 0x822   :  { %4323 = vsyncpa [#allocation3], 1 }
 0x823   :  { %4324 = vsyncpa [#allocation6], 1 }
 0x824   :  { %4325 = vsyncpa [#allocation9], 1 }
 0x825   :  { %4326 = vsyncpa [#allocation12], 1 }
 0x826   :  { %4327 = vsyncpa [#allocation15], 1 }
 0x827   :  { %4328 = vsyncpa [#allocation4], 1 }
 0x828   :  { %4329 = vsyncpa [#allocation18], 1 }

</bundles_post_ra>
